<compile_context>
chip_gen: v6e
topology: v6e:2x2x1
jax: 0.10.0
libtpu: 0.0.40
codegen_flags: <defaults>
</compile_context>

<pallas_src>
from functools import partial

import jax
import jax.numpy as jnp
from jax.experimental import pallas as pl
from jax.experimental.pallas import tpu as pltpu


# --------------------------------------------------------------------------- in-kernel helpers
# These run inside the Pallas kernel on VMEM-resident values (plain traced jnp ops).

def _pad_hw(x):
    """Zero-pad a (H, W, C) activation to (H+2, W+2, C) in VMEM (no HBM padded copy)."""
    H, W, C = x.shape
    zc = jnp.zeros((H, 1, C), x.dtype)
    x = jnp.concatenate([zc, x, zc], axis=1)
    zr = jnp.zeros((1, W + 2, C), x.dtype)
    return jnp.concatenate([zr, x, zr], axis=0)


def _tap_patches(x, stride):
    """The 9 tap patches of a 3x3 / pad=1 conv as static contiguous slices.

    stride=1: patches are shifted windows of the padded input.
    stride=2: the padded input is split into its 4 (row, col)-parity subgrids so each
              strided tap is a direct static slice (no dense compute + subsample).
    Returns 9 arrays of shape (Ho, Wo, C), tap order t = 3*dy + dx.
    """
    H, W, C = x.shape
    xp = _pad_hw(x)                                            # (H+2, W+2, C)
    if stride == 1:
        return [xp[dy:dy + H, dx:dx + W, :] for dy in range(3) for dx in range(3)]

    Ho, Wo = H // 2, W // 2
    par = {}
    for pr in (0, 1):
        rows = jnp.concatenate([xp[h:h + 1] for h in range(pr, H + 2, 2)], axis=0)
        for pc in (0, 1):
            par[(pr, pc)] = jnp.concatenate(
                [rows[:, w:w + 1, :] for w in range(pc, W + 2, 2)], axis=1)
    return [par[(dy % 2, dx % 2)][dy // 2:dy // 2 + Ho, dx // 2:dx // 2 + Wo, :]
            for dy in range(3) for dx in range(3)]


def _conv3x3(x, w, b, *, stride, relu):
    """Standard 3x3 conv, pad=1 (MXU, bf16 in / f32 accum).

    x: (H, W, Cin) f32
    w: (9*Cin, Cout) bf16  -> im2col, one matmul with K = 9*Cin   (used for the SSD head)
       (9, Cin, Cout) bf16 -> 9 accumulating matmuls              (used for conv0, Cin=3)
    b: (1, Cout) f32
    """
    H, W, Cin = x.shape
    Cout = w.shape[-1]
    Ho, Wo = (H, W) if stride == 1 else (H // 2, W // 2)
    taps = [t.reshape(Ho * Wo, Cin) for t in _tap_patches(x, stride)]
    if w.ndim == 2:
        patch = jnp.concatenate(taps, axis=-1).astype(jnp.bfloat16)      # (Ho*Wo, 9*Cin)
        acc = jnp.dot(patch, w, preferred_element_type=jnp.float32)
    else:
        acc = jnp.zeros((Ho * Wo, Cout), jnp.float32)
        for t in range(9):
            acc = acc + jnp.dot(taps[t].astype(jnp.bfloat16), w[t],
                                preferred_element_type=jnp.float32)
    acc = acc + b
    if relu:
        acc = jnp.maximum(acc, 0.0)
    return acc.reshape(Ho, Wo, Cout)


def _dwconv3x3(x, w9, b, *, stride, relu):
    """Depthwise 3x3 conv, pad=1 (VPU, f32).  x:(H,W,C), w9:(9,C), b:(1,C)."""
    H, W, C = x.shape
    Ho, Wo = (H, W) if stride == 1 else (H // 2, W // 2)
    taps = _tap_patches(x, stride)
    acc = jnp.zeros((Ho, Wo, C), jnp.float32)
    for t in range(9):
        acc = acc + taps[t] * w9[t, :]
    acc = acc + b[0, :]
    if relu:
        acc = jnp.maximum(acc, 0.0)
    return acc


def _pwconv1x1(x, w, b, *, relu):
    """Pointwise 1x1 conv (MXU, bf16 in / f32 accum).  x:(H,W,Cin), w:(Cin,Cout) bf16."""
    H, W, Cin = x.shape
    Cout = w.shape[-1]
    acc = jnp.dot(x.reshape(H * W, Cin).astype(jnp.bfloat16), w,
                  preferred_element_type=jnp.float32) + b
    if relu:
        acc = jnp.maximum(acc, 0.0)
    return acc.reshape(H, W, Cout)


# --------------------------------------------------------------------------- fused kernel

def _odc_fused_kernel(*refs, block_strides):
    n_blocks = len(block_strides)
    x_ref, c0w_ref, c0b_ref = refs[0], refs[1], refs[2]
    blk_refs = refs[3:3 + 4 * n_blocks]
    head_w_ref = refs[3 + 4 * n_blocks]
    head_b_ref = refs[4 + 4 * n_blocks]
    out_ref = refs[5 + 4 * n_blocks]

    # ----- MobileNetV1 encoder: conv0 (3x3, stride 2) + dw-separable blocks -----
    x = x_ref[0].astype(jnp.float32)                       # (H, W, 3)
    x = _conv3x3(x, c0w_ref[...], c0b_ref[...], stride=2, relu=True)
    for i in range(n_blocks):
        dww, dwb, pww, pwb = blk_refs[4 * i:4 * i + 4]
        x = _dwconv3x3(x, dww[...], dwb[...], stride=block_strides[i], relu=True)
        x = _pwconv1x1(x, pww[...], pwb[...], relu=True)

    # ----- fused SSD head (cls ++ reg, Cout zero-padded to 128 lanes, raw logits) -----
    y = _conv3x3(x, head_w_ref[...], head_b_ref[...], stride=1, relu=False)
    Ho, Wo, Cp = y.shape
    out_ref[0] = y.reshape(Ho * Wo, Cp).astype(out_ref.dtype)   # lane-dense (Ho*Wo, 128k) store


# --------------------------------------------------------------------------- model / wrapper

BOXES_PER_LOCATION = 6          # SSD priors per feature-map cell
# (depthwise stride, base output channels) of the reduced MobileNetV1 encoder
ENCODER_CFG = ((1, 64), (2, 128), (1, 128), (2, 256), (1, 256))
_LANE = 128


def init_params(num_classes, width_mult, key):
    ch = lambda c: max(1, int(c * width_mult))
    keys = iter(jax.random.split(key, 64))

    def conv_w(kh, kw, cin, cout):
        std = (2.0 / (kh * kw * cin)) ** 0.5
        return jax.random.normal(next(keys), (kh, kw, cin, cout), jnp.float32) * std

    def dw_w(c):
        std = (2.0 / 9.0) ** 0.5
        return jax.random.normal(next(keys), (3, 3, c), jnp.float32) * std

    p = {}
    c0 = ch(32)
    p["conv0_w"] = conv_w(3, 3, 3, c0)
    p["conv0_b"] = jnp.zeros((c0,), jnp.float32)

    blocks = []
    cin = c0
    for _, cbase in ENCODER_CFG:
        cout = ch(cbase)
        blocks.append(dict(
            dw_w=dw_w(cin),
            dw_b=jnp.zeros((cin,), jnp.float32),
            pw_w=conv_w(1, 1, cin, cout).reshape(cin, cout),
            pw_b=jnp.zeros((cout,), jnp.float32),
        ))
        cin = cout
    p["blocks"] = blocks

    # SSD heads (classification + regression); is_test=False -> raw logits
    p["cls_w"] = conv_w(3, 3, cin, BOXES_PER_LOCATION * num_classes)
    p["cls_b"] = jnp.zeros((BOXES_PER_LOCATION * num_classes,), jnp.float32)
    p["reg_w"] = conv_w(3, 3, cin, BOXES_PER_LOCATION * 4)
    p["reg_b"] = jnp.zeros((BOXES_PER_LOCATION * 4,), jnp.float32)
    return p


def _full_spec(shape):
    nd = len(shape)
    return pl.BlockSpec(shape, lambda n, _nd=nd: (0,) * _nd)


def object_detection_cell_forward(params, x_nchw, num_classes):
    """Forward pass: (confidences, locations), matching the PyTorch module's contract."""
    x = jnp.transpose(x_nchw, (0, 2, 3, 1)).astype(jnp.float32)     # NCHW -> NHWC
    N, H, W, Cin = x.shape
    block_strides = tuple(s for s, _ in ENCODER_CFG)

    # ---- weight packing: bf16 for MXU paths, f32 for depthwise (VPU) and biases ----
    c0 = params["conv0_w"].shape[-1]
    c0w = params["conv0_w"].reshape(9, Cin, c0).astype(jnp.bfloat16)     # per-tap layout
    c0b = params["conv0_b"].reshape(1, c0)

    inputs = [x, c0w, c0b]
    for blk in params["blocks"]:
        cdw = blk["dw_w"].shape[-1]
        inputs += [blk["dw_w"].reshape(9, cdw),
                   blk["dw_b"].reshape(1, cdw),
                   blk["pw_w"].astype(jnp.bfloat16),
                   blk["pw_b"].reshape(1, -1)]

    # fused SSD head: concat cls/reg along Cout, zero-pad to a multiple of 128 so the
    # kernel's single HBM store is lane-dense; wrapper slices the real channels out.
    head_w = jnp.concatenate([params["cls_w"], params["reg_w"]], axis=-1)
    head_b = jnp.concatenate([params["cls_b"], params["reg_b"]], axis=-1)
    c_feat, c_head = head_w.shape[2], head_w.shape[-1]
    c_pad = -(-c_head // _LANE) * _LANE
    head_w = jnp.pad(head_w, ((0, 0), (0, 0), (0, 0), (0, c_pad - c_head)))
    head_b = jnp.pad(head_b, ((0, c_pad - c_head),))
    inputs += [head_w.reshape(9 * c_feat, c_pad).astype(jnp.bfloat16),   # im2col layout
               head_b.reshape(1, c_pad)]

    # final feature-map size: conv0 stride 2, then the block strides
    ho, wo = H // 2, W // 2
    for s in block_strides:
        ho, wo = ho // s, wo // s

    in_specs = [pl.BlockSpec((1, H, W, Cin), lambda n: (n, 0, 0, 0))]
    in_specs += [_full_spec(tuple(a.shape)) for a in inputs[1:]]

    out = pl.pallas_call(
        partial(_odc_fused_kernel, block_strides=block_strides),
        out_shape=jax.ShapeDtypeStruct((N, ho * wo, c_pad), jnp.float32),
        grid=(N,),
        in_specs=in_specs,
        out_specs=pl.BlockSpec((1, ho * wo, c_pad), lambda n: (n, 0, 0)),
        compiler_params=pltpu.CompilerParams(
            dimension_semantics=("parallel",),          # v7x: one batch element per TensorCore
            vmem_limit_bytes=32 * 1024 * 1024,          # explicit budget; actual use ~1 MiB
        ),
    )(*inputs)

    n_cls = BOXES_PER_LOCATION * num_classes
    n_reg = BOXES_PER_LOCATION * 4
    confidences = out[..., :n_cls].reshape(N, -1, num_classes)   # (N, H*W*boxes, num_classes)
    locations = out[..., n_cls:n_cls + n_reg].reshape(N, -1, 4)  # (N, H*W*boxes, 4)
    return confidences, locations


# --------------------------------------------------------------------------- main

if __name__ == "__main__":
    num_classes = 3
    width_mult = 0.5

    key = jax.random.PRNGKey(0)
    k_in, k_par = jax.random.split(key)

    x = jax.random.normal(k_in, (2, 3, 16, 16), jnp.float32)   # NCHW, like the PyTorch module
    params = init_params(num_classes, width_mult, k_par)

    fwd = jax.jit(partial(object_detection_cell_forward, num_classes=num_classes))
    confidences, locations = fwd(params, x)
    jax.block_until_ready((confidences, locations))

    # Spatial: 16 -> 8 (conv0 s2) -> 8 -> 4 -> 4 -> 2 -> 2; priors = 2*2*6 = 24
    assert confidences.shape == (2, 24, num_classes), confidences.shape
    assert locations.shape == (2, 24, 4), locations.shape
    assert bool(jnp.all(jnp.isfinite(confidences))) and bool(jnp.all(jnp.isfinite(locations)))

    print("KERNEL_OK")
</pallas_src>

<mosaic_0001>
module attributes {stable_mosaic.version = 11 : i64} {
  func.func @_odc_fused_kernel(%arg0: i32, %arg1: memref<1x16x16x3xf32, #tpu.memory_space<vmem>>, %arg2: memref<9x3x16xbf16, #tpu.memory_space<vmem>>, %arg3: memref<1x16xf32, #tpu.memory_space<vmem>>, %arg4: memref<9x16xf32, #tpu.memory_space<vmem>>, %arg5: memref<1x16xf32, #tpu.memory_space<vmem>>, %arg6: memref<16x32xbf16, #tpu.memory_space<vmem>>, %arg7: memref<1x32xf32, #tpu.memory_space<vmem>>, %arg8: memref<9x32xf32, #tpu.memory_space<vmem>>, %arg9: memref<1x32xf32, #tpu.memory_space<vmem>>, %arg10: memref<32x64xbf16, #tpu.memory_space<vmem>>, %arg11: memref<1x64xf32, #tpu.memory_space<vmem>>, %arg12: memref<9x64xf32, #tpu.memory_space<vmem>>, %arg13: memref<1x64xf32, #tpu.memory_space<vmem>>, %arg14: memref<64x64xbf16, #tpu.memory_space<vmem>>, %arg15: memref<1x64xf32, #tpu.memory_space<vmem>>, %arg16: memref<9x64xf32, #tpu.memory_space<vmem>>, %arg17: memref<1x64xf32, #tpu.memory_space<vmem>>, %arg18: memref<64x128xbf16, #tpu.memory_space<vmem>>, %arg19: memref<1x128xf32, #tpu.memory_space<vmem>>, %arg20: memref<9x128xf32, #tpu.memory_space<vmem>>, %arg21: memref<1x128xf32, #tpu.memory_space<vmem>>, %arg22: memref<128x128xbf16, #tpu.memory_space<vmem>>, %arg23: memref<1x128xf32, #tpu.memory_space<vmem>>, %arg24: memref<1152x128xbf16, #tpu.memory_space<vmem>>, %arg25: memref<1x128xf32, #tpu.memory_space<vmem>>, %arg26: memref<1x4x128xf32, #tpu.memory_space<vmem>>) attributes {dimension_semantics = [#tpu.dimension_semantics<parallel>], iteration_bounds = array<i64: 2>, scalar_prefetch = 0 : i64, scratch_operands = 0 : i64, tpu.core_type = #tpu.core_type<tc>, window_params = [{transform_indices = @transform_0, window_bounds = array<i64: 1, 16, 16, 3>}, {pipeline_mode = #tpu.pipeline_mode<synchronous>, transform_indices = @transform_1, window_bounds = array<i64: 9, 3, 16>}, {pipeline_mode = #tpu.pipeline_mode<synchronous>, transform_indices = @transform_2, window_bounds = array<i64: 1, 16>}, {pipeline_mode = #tpu.pipeline_mode<synchronous>, transform_indices = @transform_3, window_bounds = array<i64: 9, 16>}, {pipeline_mode = #tpu.pipeline_mode<synchronous>, transform_indices = @transform_4, window_bounds = array<i64: 1, 16>}, {pipeline_mode = #tpu.pipeline_mode<synchronous>, transform_indices = @transform_5, window_bounds = array<i64: 16, 32>}, {pipeline_mode = #tpu.pipeline_mode<synchronous>, transform_indices = @transform_6, window_bounds = array<i64: 1, 32>}, {pipeline_mode = #tpu.pipeline_mode<synchronous>, transform_indices = @transform_7, window_bounds = array<i64: 9, 32>}, {pipeline_mode = #tpu.pipeline_mode<synchronous>, transform_indices = @transform_8, window_bounds = array<i64: 1, 32>}, {pipeline_mode = #tpu.pipeline_mode<synchronous>, transform_indices = @transform_9, window_bounds = array<i64: 32, 64>}, {pipeline_mode = #tpu.pipeline_mode<synchronous>, transform_indices = @transform_10, window_bounds = array<i64: 1, 64>}, {pipeline_mode = #tpu.pipeline_mode<synchronous>, transform_indices = @transform_11, window_bounds = array<i64: 9, 64>}, {pipeline_mode = #tpu.pipeline_mode<synchronous>, transform_indices = @transform_12, window_bounds = array<i64: 1, 64>}, {pipeline_mode = #tpu.pipeline_mode<synchronous>, transform_indices = @transform_13, window_bounds = array<i64: 64, 64>}, {pipeline_mode = #tpu.pipeline_mode<synchronous>, transform_indices = @transform_14, window_bounds = array<i64: 1, 64>}, {pipeline_mode = #tpu.pipeline_mode<synchronous>, transform_indices = @transform_15, window_bounds = array<i64: 9, 64>}, {pipeline_mode = #tpu.pipeline_mode<synchronous>, transform_indices = @transform_16, window_bounds = array<i64: 1, 64>}, {pipeline_mode = #tpu.pipeline_mode<synchronous>, transform_indices = @transform_17, window_bounds = array<i64: 64, 128>}, {pipeline_mode = #tpu.pipeline_mode<synchronous>, transform_indices = @transform_18, window_bounds = array<i64: 1, 128>}, {pipeline_mode = #tpu.pipeline_mode<synchronous>, transform_indices = @transform_19, window_bounds = array<i64: 9, 128>}, {pipeline_mode = #tpu.pipeline_mode<synchronous>, transform_indices = @transform_20, window_bounds = array<i64: 1, 128>}, {pipeline_mode = #tpu.pipeline_mode<synchronous>, transform_indices = @transform_21, window_bounds = array<i64: 128, 128>}, {pipeline_mode = #tpu.pipeline_mode<synchronous>, transform_indices = @transform_22, window_bounds = array<i64: 1, 128>}, {pipeline_mode = #tpu.pipeline_mode<synchronous>, transform_indices = @transform_23, window_bounds = array<i64: 1152, 128>}, {pipeline_mode = #tpu.pipeline_mode<synchronous>, transform_indices = @transform_24, window_bounds = array<i64: 1, 128>}, {transform_indices = @transform_25, window_bounds = array<i64: 1, 4, 128>}]} {
    %c0 = arith.constant 0 : index
    %c0_0 = arith.constant 0 : index
    %c0_1 = arith.constant 0 : index
    %c0_2 = arith.constant 0 : index
    %0 = vector.load %arg1[%c0, %c0_0, %c0_1, %c0_2] : memref<1x16x16x3xf32, #tpu.memory_space<vmem>>, vector<1x16x16x3xf32>
    %1 = vector.shape_cast %0 : vector<1x16x16x3xf32> to vector<16x16x3xf32>
    %c0_3 = arith.constant 0 : index
    %c0_4 = arith.constant 0 : index
    %c0_5 = arith.constant 0 : index
    %2 = vector.load %arg2[%c0_3, %c0_4, %c0_5] : memref<9x3x16xbf16, #tpu.memory_space<vmem>>, vector<9x3x16xbf16>
    %c0_6 = arith.constant 0 : index
    %c0_7 = arith.constant 0 : index
    %3 = vector.load %arg3[%c0_6, %c0_7] : memref<1x16xf32, #tpu.memory_space<vmem>>, vector<1x16xf32>
    %cst = arith.constant 0.000000e+00 : f32
    %4 = vector.broadcast %cst : f32 to vector<16x1x3xf32>
    %5 = tpu.concatenate %4, %1, %4 in 1 : vector<16x1x3xf32>, vector<16x16x3xf32>, vector<16x1x3xf32> -> vector<16x18x3xf32>
    %cst_8 = arith.constant 0.000000e+00 : f32
    %6 = vector.broadcast %cst_8 : f32 to vector<1x18x3xf32>
    %7 = tpu.concatenate %6, %5, %6 in 0 : vector<1x18x3xf32>, vector<16x18x3xf32>, vector<1x18x3xf32> -> vector<18x18x3xf32>
    %8 = vector.extract_strided_slice %7 {offsets = [0, 0, 0], sizes = [1, 18, 3], strides = [1, 1, 1]} : vector<18x18x3xf32> to vector<1x18x3xf32>
    %9 = vector.extract_strided_slice %7 {offsets = [2, 0, 0], sizes = [1, 18, 3], strides = [1, 1, 1]} : vector<18x18x3xf32> to vector<1x18x3xf32>
    %10 = vector.extract_strided_slice %7 {offsets = [4, 0, 0], sizes = [1, 18, 3], strides = [1, 1, 1]} : vector<18x18x3xf32> to vector<1x18x3xf32>
    %11 = vector.extract_strided_slice %7 {offsets = [6, 0, 0], sizes = [1, 18, 3], strides = [1, 1, 1]} : vector<18x18x3xf32> to vector<1x18x3xf32>
    %12 = vector.extract_strided_slice %7 {offsets = [8, 0, 0], sizes = [1, 18, 3], strides = [1, 1, 1]} : vector<18x18x3xf32> to vector<1x18x3xf32>
    %13 = vector.extract_strided_slice %7 {offsets = [10, 0, 0], sizes = [1, 18, 3], strides = [1, 1, 1]} : vector<18x18x3xf32> to vector<1x18x3xf32>
    %14 = vector.extract_strided_slice %7 {offsets = [12, 0, 0], sizes = [1, 18, 3], strides = [1, 1, 1]} : vector<18x18x3xf32> to vector<1x18x3xf32>
    %15 = vector.extract_strided_slice %7 {offsets = [14, 0, 0], sizes = [1, 18, 3], strides = [1, 1, 1]} : vector<18x18x3xf32> to vector<1x18x3xf32>
    %16 = vector.extract_strided_slice %7 {offsets = [16, 0, 0], sizes = [1, 18, 3], strides = [1, 1, 1]} : vector<18x18x3xf32> to vector<1x18x3xf32>
    %17 = tpu.concatenate %8, %9, %10, %11, %12, %13, %14, %15, %16 in 0 : vector<1x18x3xf32>, vector<1x18x3xf32>, vector<1x18x3xf32>, vector<1x18x3xf32>, vector<1x18x3xf32>, vector<1x18x3xf32>, vector<1x18x3xf32>, vector<1x18x3xf32>, vector<1x18x3xf32> -> vector<9x18x3xf32>
    %18 = vector.extract_strided_slice %17 {offsets = [0, 0, 0], sizes = [9, 1, 3], strides = [1, 1, 1]} : vector<9x18x3xf32> to vector<9x1x3xf32>
    %19 = vector.extract_strided_slice %17 {offsets = [0, 2, 0], sizes = [9, 1, 3], strides = [1, 1, 1]} : vector<9x18x3xf32> to vector<9x1x3xf32>
    %20 = vector.extract_strided_slice %17 {offsets = [0, 4, 0], sizes = [9, 1, 3], strides = [1, 1, 1]} : vector<9x18x3xf32> to vector<9x1x3xf32>
    %21 = vector.extract_strided_slice %17 {offsets = [0, 6, 0], sizes = [9, 1, 3], strides = [1, 1, 1]} : vector<9x18x3xf32> to vector<9x1x3xf32>
    %22 = vector.extract_strided_slice %17 {offsets = [0, 8, 0], sizes = [9, 1, 3], strides = [1, 1, 1]} : vector<9x18x3xf32> to vector<9x1x3xf32>
    %23 = vector.extract_strided_slice %17 {offsets = [0, 10, 0], sizes = [9, 1, 3], strides = [1, 1, 1]} : vector<9x18x3xf32> to vector<9x1x3xf32>
    %24 = vector.extract_strided_slice %17 {offsets = [0, 12, 0], sizes = [9, 1, 3], strides = [1, 1, 1]} : vector<9x18x3xf32> to vector<9x1x3xf32>
    %25 = vector.extract_strided_slice %17 {offsets = [0, 14, 0], sizes = [9, 1, 3], strides = [1, 1, 1]} : vector<9x18x3xf32> to vector<9x1x3xf32>
    %26 = vector.extract_strided_slice %17 {offsets = [0, 16, 0], sizes = [9, 1, 3], strides = [1, 1, 1]} : vector<9x18x3xf32> to vector<9x1x3xf32>
    %27 = tpu.concatenate %18, %19, %20, %21, %22, %23, %24, %25, %26 in 1 : vector<9x1x3xf32>, vector<9x1x3xf32>, vector<9x1x3xf32>, vector<9x1x3xf32>, vector<9x1x3xf32>, vector<9x1x3xf32>, vector<9x1x3xf32>, vector<9x1x3xf32>, vector<9x1x3xf32> -> vector<9x9x3xf32>
    %28 = vector.extract_strided_slice %17 {offsets = [0, 1, 0], sizes = [9, 1, 3], strides = [1, 1, 1]} : vector<9x18x3xf32> to vector<9x1x3xf32>
    %29 = vector.extract_strided_slice %17 {offsets = [0, 3, 0], sizes = [9, 1, 3], strides = [1, 1, 1]} : vector<9x18x3xf32> to vector<9x1x3xf32>
    %30 = vector.extract_strided_slice %17 {offsets = [0, 5, 0], sizes = [9, 1, 3], strides = [1, 1, 1]} : vector<9x18x3xf32> to vector<9x1x3xf32>
    %31 = vector.extract_strided_slice %17 {offsets = [0, 7, 0], sizes = [9, 1, 3], strides = [1, 1, 1]} : vector<9x18x3xf32> to vector<9x1x3xf32>
    %32 = vector.extract_strided_slice %17 {offsets = [0, 9, 0], sizes = [9, 1, 3], strides = [1, 1, 1]} : vector<9x18x3xf32> to vector<9x1x3xf32>
    %33 = vector.extract_strided_slice %17 {offsets = [0, 11, 0], sizes = [9, 1, 3], strides = [1, 1, 1]} : vector<9x18x3xf32> to vector<9x1x3xf32>
    %34 = vector.extract_strided_slice %17 {offsets = [0, 13, 0], sizes = [9, 1, 3], strides = [1, 1, 1]} : vector<9x18x3xf32> to vector<9x1x3xf32>
    %35 = vector.extract_strided_slice %17 {offsets = [0, 15, 0], sizes = [9, 1, 3], strides = [1, 1, 1]} : vector<9x18x3xf32> to vector<9x1x3xf32>
    %36 = vector.extract_strided_slice %17 {offsets = [0, 17, 0], sizes = [9, 1, 3], strides = [1, 1, 1]} : vector<9x18x3xf32> to vector<9x1x3xf32>
    %37 = tpu.concatenate %28, %29, %30, %31, %32, %33, %34, %35, %36 in 1 : vector<9x1x3xf32>, vector<9x1x3xf32>, vector<9x1x3xf32>, vector<9x1x3xf32>, vector<9x1x3xf32>, vector<9x1x3xf32>, vector<9x1x3xf32>, vector<9x1x3xf32>, vector<9x1x3xf32> -> vector<9x9x3xf32>
    %38 = vector.extract_strided_slice %7 {offsets = [1, 0, 0], sizes = [1, 18, 3], strides = [1, 1, 1]} : vector<18x18x3xf32> to vector<1x18x3xf32>
    %39 = vector.extract_strided_slice %7 {offsets = [3, 0, 0], sizes = [1, 18, 3], strides = [1, 1, 1]} : vector<18x18x3xf32> to vector<1x18x3xf32>
    %40 = vector.extract_strided_slice %7 {offsets = [5, 0, 0], sizes = [1, 18, 3], strides = [1, 1, 1]} : vector<18x18x3xf32> to vector<1x18x3xf32>
    %41 = vector.extract_strided_slice %7 {offsets = [7, 0, 0], sizes = [1, 18, 3], strides = [1, 1, 1]} : vector<18x18x3xf32> to vector<1x18x3xf32>
    %42 = vector.extract_strided_slice %7 {offsets = [9, 0, 0], sizes = [1, 18, 3], strides = [1, 1, 1]} : vector<18x18x3xf32> to vector<1x18x3xf32>
    %43 = vector.extract_strided_slice %7 {offsets = [11, 0, 0], sizes = [1, 18, 3], strides = [1, 1, 1]} : vector<18x18x3xf32> to vector<1x18x3xf32>
    %44 = vector.extract_strided_slice %7 {offsets = [13, 0, 0], sizes = [1, 18, 3], strides = [1, 1, 1]} : vector<18x18x3xf32> to vector<1x18x3xf32>
    %45 = vector.extract_strided_slice %7 {offsets = [15, 0, 0], sizes = [1, 18, 3], strides = [1, 1, 1]} : vector<18x18x3xf32> to vector<1x18x3xf32>
    %46 = vector.extract_strided_slice %7 {offsets = [17, 0, 0], sizes = [1, 18, 3], strides = [1, 1, 1]} : vector<18x18x3xf32> to vector<1x18x3xf32>
    %47 = tpu.concatenate %38, %39, %40, %41, %42, %43, %44, %45, %46 in 0 : vector<1x18x3xf32>, vector<1x18x3xf32>, vector<1x18x3xf32>, vector<1x18x3xf32>, vector<1x18x3xf32>, vector<1x18x3xf32>, vector<1x18x3xf32>, vector<1x18x3xf32>, vector<1x18x3xf32> -> vector<9x18x3xf32>
    %48 = vector.extract_strided_slice %47 {offsets = [0, 0, 0], sizes = [9, 1, 3], strides = [1, 1, 1]} : vector<9x18x3xf32> to vector<9x1x3xf32>
    %49 = vector.extract_strided_slice %47 {offsets = [0, 2, 0], sizes = [9, 1, 3], strides = [1, 1, 1]} : vector<9x18x3xf32> to vector<9x1x3xf32>
    %50 = vector.extract_strided_slice %47 {offsets = [0, 4, 0], sizes = [9, 1, 3], strides = [1, 1, 1]} : vector<9x18x3xf32> to vector<9x1x3xf32>
    %51 = vector.extract_strided_slice %47 {offsets = [0, 6, 0], sizes = [9, 1, 3], strides = [1, 1, 1]} : vector<9x18x3xf32> to vector<9x1x3xf32>
    %52 = vector.extract_strided_slice %47 {offsets = [0, 8, 0], sizes = [9, 1, 3], strides = [1, 1, 1]} : vector<9x18x3xf32> to vector<9x1x3xf32>
    %53 = vector.extract_strided_slice %47 {offsets = [0, 10, 0], sizes = [9, 1, 3], strides = [1, 1, 1]} : vector<9x18x3xf32> to vector<9x1x3xf32>
    %54 = vector.extract_strided_slice %47 {offsets = [0, 12, 0], sizes = [9, 1, 3], strides = [1, 1, 1]} : vector<9x18x3xf32> to vector<9x1x3xf32>
    %55 = vector.extract_strided_slice %47 {offsets = [0, 14, 0], sizes = [9, 1, 3], strides = [1, 1, 1]} : vector<9x18x3xf32> to vector<9x1x3xf32>
    %56 = vector.extract_strided_slice %47 {offsets = [0, 16, 0], sizes = [9, 1, 3], strides = [1, 1, 1]} : vector<9x18x3xf32> to vector<9x1x3xf32>
    %57 = tpu.concatenate %48, %49, %50, %51, %52, %53, %54, %55, %56 in 1 : vector<9x1x3xf32>, vector<9x1x3xf32>, vector<9x1x3xf32>, vector<9x1x3xf32>, vector<9x1x3xf32>, vector<9x1x3xf32>, vector<9x1x3xf32>, vector<9x1x3xf32>, vector<9x1x3xf32> -> vector<9x9x3xf32>
    %58 = vector.extract_strided_slice %47 {offsets = [0, 1, 0], sizes = [9, 1, 3], strides = [1, 1, 1]} : vector<9x18x3xf32> to vector<9x1x3xf32>
    %59 = vector.extract_strided_slice %47 {offsets = [0, 3, 0], sizes = [9, 1, 3], strides = [1, 1, 1]} : vector<9x18x3xf32> to vector<9x1x3xf32>
    %60 = vector.extract_strided_slice %47 {offsets = [0, 5, 0], sizes = [9, 1, 3], strides = [1, 1, 1]} : vector<9x18x3xf32> to vector<9x1x3xf32>
    %61 = vector.extract_strided_slice %47 {offsets = [0, 7, 0], sizes = [9, 1, 3], strides = [1, 1, 1]} : vector<9x18x3xf32> to vector<9x1x3xf32>
    %62 = vector.extract_strided_slice %47 {offsets = [0, 9, 0], sizes = [9, 1, 3], strides = [1, 1, 1]} : vector<9x18x3xf32> to vector<9x1x3xf32>
    %63 = vector.extract_strided_slice %47 {offsets = [0, 11, 0], sizes = [9, 1, 3], strides = [1, 1, 1]} : vector<9x18x3xf32> to vector<9x1x3xf32>
    %64 = vector.extract_strided_slice %47 {offsets = [0, 13, 0], sizes = [9, 1, 3], strides = [1, 1, 1]} : vector<9x18x3xf32> to vector<9x1x3xf32>
    %65 = vector.extract_strided_slice %47 {offsets = [0, 15, 0], sizes = [9, 1, 3], strides = [1, 1, 1]} : vector<9x18x3xf32> to vector<9x1x3xf32>
    %66 = vector.extract_strided_slice %47 {offsets = [0, 17, 0], sizes = [9, 1, 3], strides = [1, 1, 1]} : vector<9x18x3xf32> to vector<9x1x3xf32>
    %67 = tpu.concatenate %58, %59, %60, %61, %62, %63, %64, %65, %66 in 1 : vector<9x1x3xf32>, vector<9x1x3xf32>, vector<9x1x3xf32>, vector<9x1x3xf32>, vector<9x1x3xf32>, vector<9x1x3xf32>, vector<9x1x3xf32>, vector<9x1x3xf32>, vector<9x1x3xf32> -> vector<9x9x3xf32>
    %68 = vector.extract_strided_slice %27 {offsets = [0, 0, 0], sizes = [8, 8, 3], strides = [1, 1, 1]} : vector<9x9x3xf32> to vector<8x8x3xf32>
    %69 = vector.extract_strided_slice %37 {offsets = [0, 0, 0], sizes = [8, 8, 3], strides = [1, 1, 1]} : vector<9x9x3xf32> to vector<8x8x3xf32>
    %70 = vector.extract_strided_slice %27 {offsets = [0, 1, 0], sizes = [8, 8, 3], strides = [1, 1, 1]} : vector<9x9x3xf32> to vector<8x8x3xf32>
    %71 = vector.extract_strided_slice %57 {offsets = [0, 0, 0], sizes = [8, 8, 3], strides = [1, 1, 1]} : vector<9x9x3xf32> to vector<8x8x3xf32>
    %72 = vector.extract_strided_slice %67 {offsets = [0, 0, 0], sizes = [8, 8, 3], strides = [1, 1, 1]} : vector<9x9x3xf32> to vector<8x8x3xf32>
    %73 = vector.extract_strided_slice %57 {offsets = [0, 1, 0], sizes = [8, 8, 3], strides = [1, 1, 1]} : vector<9x9x3xf32> to vector<8x8x3xf32>
    %74 = vector.extract_strided_slice %27 {offsets = [1, 0, 0], sizes = [8, 8, 3], strides = [1, 1, 1]} : vector<9x9x3xf32> to vector<8x8x3xf32>
    %75 = vector.extract_strided_slice %37 {offsets = [1, 0, 0], sizes = [8, 8, 3], strides = [1, 1, 1]} : vector<9x9x3xf32> to vector<8x8x3xf32>
    %76 = vector.extract_strided_slice %27 {offsets = [1, 1, 0], sizes = [8, 8, 3], strides = [1, 1, 1]} : vector<9x9x3xf32> to vector<8x8x3xf32>
    %77 = vector.shape_cast %68 : vector<8x8x3xf32> to vector<64x3xf32>
    %78 = vector.shape_cast %69 : vector<8x8x3xf32> to vector<64x3xf32>
    %79 = vector.shape_cast %70 : vector<8x8x3xf32> to vector<64x3xf32>
    %80 = vector.shape_cast %71 : vector<8x8x3xf32> to vector<64x3xf32>
    %81 = vector.shape_cast %72 : vector<8x8x3xf32> to vector<64x3xf32>
    %82 = vector.shape_cast %73 : vector<8x8x3xf32> to vector<64x3xf32>
    %83 = vector.shape_cast %74 : vector<8x8x3xf32> to vector<64x3xf32>
    %84 = vector.shape_cast %75 : vector<8x8x3xf32> to vector<64x3xf32>
    %85 = vector.shape_cast %76 : vector<8x8x3xf32> to vector<64x3xf32>
    %cst_9 = arith.constant 0.000000e+00 : f32
    %86 = vector.broadcast %cst_9 : f32 to vector<64x16xf32>
    %87 = arith.truncf %77 : vector<64x3xf32> to vector<64x3xbf16>
    %88 = vector.extract_strided_slice %2 {offsets = [0, 0, 0], sizes = [1, 3, 16], strides = [1, 1, 1]} : vector<9x3x16xbf16> to vector<1x3x16xbf16>
    %89 = vector.shape_cast %88 : vector<1x3x16xbf16> to vector<3x16xbf16>
    %cst_10 = arith.constant dense<0.000000e+00> : vector<64x16xf32>
    %90 = tpu.matmul %87, %89, %cst_10 {dimension_numbers = #tpu.dot_dimension_numbers<[1], [0], [0], [1], [0, 0, 1, 1], [], []>} : vector<64x3xbf16>, vector<3x16xbf16>, vector<64x16xf32> -> vector<64x16xf32>
    %91 = arith.addf %86, %90 : vector<64x16xf32>
    %92 = arith.truncf %78 : vector<64x3xf32> to vector<64x3xbf16>
    %93 = vector.extract_strided_slice %2 {offsets = [1, 0, 0], sizes = [1, 3, 16], strides = [1, 1, 1]} : vector<9x3x16xbf16> to vector<1x3x16xbf16>
    %94 = vector.shape_cast %93 : vector<1x3x16xbf16> to vector<3x16xbf16>
    %cst_11 = arith.constant dense<0.000000e+00> : vector<64x16xf32>
    %95 = tpu.matmul %92, %94, %cst_11 {dimension_numbers = #tpu.dot_dimension_numbers<[1], [0], [0], [1], [0, 0, 1, 1], [], []>} : vector<64x3xbf16>, vector<3x16xbf16>, vector<64x16xf32> -> vector<64x16xf32>
    %96 = arith.addf %91, %95 : vector<64x16xf32>
    %97 = arith.truncf %79 : vector<64x3xf32> to vector<64x3xbf16>
    %98 = vector.extract_strided_slice %2 {offsets = [2, 0, 0], sizes = [1, 3, 16], strides = [1, 1, 1]} : vector<9x3x16xbf16> to vector<1x3x16xbf16>
    %99 = vector.shape_cast %98 : vector<1x3x16xbf16> to vector<3x16xbf16>
    %cst_12 = arith.constant dense<0.000000e+00> : vector<64x16xf32>
    %100 = tpu.matmul %97, %99, %cst_12 {dimension_numbers = #tpu.dot_dimension_numbers<[1], [0], [0], [1], [0, 0, 1, 1], [], []>} : vector<64x3xbf16>, vector<3x16xbf16>, vector<64x16xf32> -> vector<64x16xf32>
    %101 = arith.addf %96, %100 : vector<64x16xf32>
    %102 = arith.truncf %80 : vector<64x3xf32> to vector<64x3xbf16>
    %103 = vector.extract_strided_slice %2 {offsets = [3, 0, 0], sizes = [1, 3, 16], strides = [1, 1, 1]} : vector<9x3x16xbf16> to vector<1x3x16xbf16>
    %104 = vector.shape_cast %103 : vector<1x3x16xbf16> to vector<3x16xbf16>
    %cst_13 = arith.constant dense<0.000000e+00> : vector<64x16xf32>
    %105 = tpu.matmul %102, %104, %cst_13 {dimension_numbers = #tpu.dot_dimension_numbers<[1], [0], [0], [1], [0, 0, 1, 1], [], []>} : vector<64x3xbf16>, vector<3x16xbf16>, vector<64x16xf32> -> vector<64x16xf32>
    %106 = arith.addf %101, %105 : vector<64x16xf32>
    %107 = arith.truncf %81 : vector<64x3xf32> to vector<64x3xbf16>
    %108 = vector.extract_strided_slice %2 {offsets = [4, 0, 0], sizes = [1, 3, 16], strides = [1, 1, 1]} : vector<9x3x16xbf16> to vector<1x3x16xbf16>
    %109 = vector.shape_cast %108 : vector<1x3x16xbf16> to vector<3x16xbf16>
    %cst_14 = arith.constant dense<0.000000e+00> : vector<64x16xf32>
    %110 = tpu.matmul %107, %109, %cst_14 {dimension_numbers = #tpu.dot_dimension_numbers<[1], [0], [0], [1], [0, 0, 1, 1], [], []>} : vector<64x3xbf16>, vector<3x16xbf16>, vector<64x16xf32> -> vector<64x16xf32>
    %111 = arith.addf %106, %110 : vector<64x16xf32>
    %112 = arith.truncf %82 : vector<64x3xf32> to vector<64x3xbf16>
    %113 = vector.extract_strided_slice %2 {offsets = [5, 0, 0], sizes = [1, 3, 16], strides = [1, 1, 1]} : vector<9x3x16xbf16> to vector<1x3x16xbf16>
    %114 = vector.shape_cast %113 : vector<1x3x16xbf16> to vector<3x16xbf16>
    %cst_15 = arith.constant dense<0.000000e+00> : vector<64x16xf32>
    %115 = tpu.matmul %112, %114, %cst_15 {dimension_numbers = #tpu.dot_dimension_numbers<[1], [0], [0], [1], [0, 0, 1, 1], [], []>} : vector<64x3xbf16>, vector<3x16xbf16>, vector<64x16xf32> -> vector<64x16xf32>
    %116 = arith.addf %111, %115 : vector<64x16xf32>
    %117 = arith.truncf %83 : vector<64x3xf32> to vector<64x3xbf16>
    %118 = vector.extract_strided_slice %2 {offsets = [6, 0, 0], sizes = [1, 3, 16], strides = [1, 1, 1]} : vector<9x3x16xbf16> to vector<1x3x16xbf16>
    %119 = vector.shape_cast %118 : vector<1x3x16xbf16> to vector<3x16xbf16>
    %cst_16 = arith.constant dense<0.000000e+00> : vector<64x16xf32>
    %120 = tpu.matmul %117, %119, %cst_16 {dimension_numbers = #tpu.dot_dimension_numbers<[1], [0], [0], [1], [0, 0, 1, 1], [], []>} : vector<64x3xbf16>, vector<3x16xbf16>, vector<64x16xf32> -> vector<64x16xf32>
    %121 = arith.addf %116, %120 : vector<64x16xf32>
    %122 = arith.truncf %84 : vector<64x3xf32> to vector<64x3xbf16>
    %123 = vector.extract_strided_slice %2 {offsets = [7, 0, 0], sizes = [1, 3, 16], strides = [1, 1, 1]} : vector<9x3x16xbf16> to vector<1x3x16xbf16>
    %124 = vector.shape_cast %123 : vector<1x3x16xbf16> to vector<3x16xbf16>
    %cst_17 = arith.constant dense<0.000000e+00> : vector<64x16xf32>
    %125 = tpu.matmul %122, %124, %cst_17 {dimension_numbers = #tpu.dot_dimension_numbers<[1], [0], [0], [1], [0, 0, 1, 1], [], []>} : vector<64x3xbf16>, vector<3x16xbf16>, vector<64x16xf32> -> vector<64x16xf32>
    %126 = arith.addf %121, %125 : vector<64x16xf32>
    %127 = arith.truncf %85 : vector<64x3xf32> to vector<64x3xbf16>
    %128 = vector.extract_strided_slice %2 {offsets = [8, 0, 0], sizes = [1, 3, 16], strides = [1, 1, 1]} : vector<9x3x16xbf16> to vector<1x3x16xbf16>
    %129 = vector.shape_cast %128 : vector<1x3x16xbf16> to vector<3x16xbf16>
    %cst_18 = arith.constant dense<0.000000e+00> : vector<64x16xf32>
    %130 = tpu.matmul %127, %129, %cst_18 {dimension_numbers = #tpu.dot_dimension_numbers<[1], [0], [0], [1], [0, 0, 1, 1], [], []>} : vector<64x3xbf16>, vector<3x16xbf16>, vector<64x16xf32> -> vector<64x16xf32>
    %131 = arith.addf %126, %130 : vector<64x16xf32>
    %132 = vector.broadcast %3 : vector<1x16xf32> to vector<64x16xf32>
    %133 = arith.addf %131, %132 : vector<64x16xf32>
    %cst_19 = arith.constant 0.000000e+00 : f32
    %134 = vector.broadcast %cst_19 : f32 to vector<64x16xf32>
    %135 = arith.maximumf %133, %134 : vector<64x16xf32>
    %136 = vector.shape_cast %135 : vector<64x16xf32> to vector<8x8x16xf32>
    %c0_20 = arith.constant 0 : index
    %c0_21 = arith.constant 0 : index
    %137 = vector.load %arg4[%c0_20, %c0_21] : memref<9x16xf32, #tpu.memory_space<vmem>>, vector<9x16xf32>
    %c0_22 = arith.constant 0 : index
    %c0_23 = arith.constant 0 : index
    %138 = vector.load %arg5[%c0_22, %c0_23] : memref<1x16xf32, #tpu.memory_space<vmem>>, vector<1x16xf32>
    %cst_24 = arith.constant 0.000000e+00 : f32
    %139 = vector.broadcast %cst_24 : f32 to vector<8x1x16xf32>
    %140 = tpu.concatenate %139, %136, %139 in 1 : vector<8x1x16xf32>, vector<8x8x16xf32>, vector<8x1x16xf32> -> vector<8x10x16xf32>
    %cst_25 = arith.constant 0.000000e+00 : f32
    %141 = vector.broadcast %cst_25 : f32 to vector<1x10x16xf32>
    %142 = tpu.concatenate %141, %140, %141 in 0 : vector<1x10x16xf32>, vector<8x10x16xf32>, vector<1x10x16xf32> -> vector<10x10x16xf32>
    %143 = vector.extract_strided_slice %142 {offsets = [0, 0, 0], sizes = [8, 8, 16], strides = [1, 1, 1]} : vector<10x10x16xf32> to vector<8x8x16xf32>
    %144 = vector.extract_strided_slice %142 {offsets = [0, 1, 0], sizes = [8, 8, 16], strides = [1, 1, 1]} : vector<10x10x16xf32> to vector<8x8x16xf32>
    %145 = vector.extract_strided_slice %142 {offsets = [0, 2, 0], sizes = [8, 8, 16], strides = [1, 1, 1]} : vector<10x10x16xf32> to vector<8x8x16xf32>
    %146 = vector.extract_strided_slice %142 {offsets = [1, 0, 0], sizes = [8, 8, 16], strides = [1, 1, 1]} : vector<10x10x16xf32> to vector<8x8x16xf32>
    %147 = vector.extract_strided_slice %142 {offsets = [1, 1, 0], sizes = [8, 8, 16], strides = [1, 1, 1]} : vector<10x10x16xf32> to vector<8x8x16xf32>
    %148 = vector.extract_strided_slice %142 {offsets = [1, 2, 0], sizes = [8, 8, 16], strides = [1, 1, 1]} : vector<10x10x16xf32> to vector<8x8x16xf32>
    %149 = vector.extract_strided_slice %142 {offsets = [2, 0, 0], sizes = [8, 8, 16], strides = [1, 1, 1]} : vector<10x10x16xf32> to vector<8x8x16xf32>
    %150 = vector.extract_strided_slice %142 {offsets = [2, 1, 0], sizes = [8, 8, 16], strides = [1, 1, 1]} : vector<10x10x16xf32> to vector<8x8x16xf32>
    %151 = vector.extract_strided_slice %142 {offsets = [2, 2, 0], sizes = [8, 8, 16], strides = [1, 1, 1]} : vector<10x10x16xf32> to vector<8x8x16xf32>
    %cst_26 = arith.constant 0.000000e+00 : f32
    %152 = vector.broadcast %cst_26 : f32 to vector<8x8x16xf32>
    %153 = vector.extract_strided_slice %137 {offsets = [0, 0], sizes = [1, 16], strides = [1, 1]} : vector<9x16xf32> to vector<1x16xf32>
    %154 = vector.shape_cast %153 : vector<1x16xf32> to vector<16xf32>
    %155 = vector.shape_cast %154 : vector<16xf32> to vector<1x1x16xf32>
    %156 = vector.broadcast %155 : vector<1x1x16xf32> to vector<8x8x16xf32>
    %157 = arith.mulf %143, %156 : vector<8x8x16xf32>
    %158 = arith.addf %152, %157 : vector<8x8x16xf32>
    %159 = vector.extract_strided_slice %137 {offsets = [1, 0], sizes = [1, 16], strides = [1, 1]} : vector<9x16xf32> to vector<1x16xf32>
    %160 = vector.shape_cast %159 : vector<1x16xf32> to vector<16xf32>
    %161 = vector.shape_cast %160 : vector<16xf32> to vector<1x1x16xf32>
    %162 = vector.broadcast %161 : vector<1x1x16xf32> to vector<8x8x16xf32>
    %163 = arith.mulf %144, %162 : vector<8x8x16xf32>
    %164 = arith.addf %158, %163 : vector<8x8x16xf32>
    %165 = vector.extract_strided_slice %137 {offsets = [2, 0], sizes = [1, 16], strides = [1, 1]} : vector<9x16xf32> to vector<1x16xf32>
    %166 = vector.shape_cast %165 : vector<1x16xf32> to vector<16xf32>
    %167 = vector.shape_cast %166 : vector<16xf32> to vector<1x1x16xf32>
    %168 = vector.broadcast %167 : vector<1x1x16xf32> to vector<8x8x16xf32>
    %169 = arith.mulf %145, %168 : vector<8x8x16xf32>
    %170 = arith.addf %164, %169 : vector<8x8x16xf32>
    %171 = vector.extract_strided_slice %137 {offsets = [3, 0], sizes = [1, 16], strides = [1, 1]} : vector<9x16xf32> to vector<1x16xf32>
    %172 = vector.shape_cast %171 : vector<1x16xf32> to vector<16xf32>
    %173 = vector.shape_cast %172 : vector<16xf32> to vector<1x1x16xf32>
    %174 = vector.broadcast %173 : vector<1x1x16xf32> to vector<8x8x16xf32>
    %175 = arith.mulf %146, %174 : vector<8x8x16xf32>
    %176 = arith.addf %170, %175 : vector<8x8x16xf32>
    %177 = vector.extract_strided_slice %137 {offsets = [4, 0], sizes = [1, 16], strides = [1, 1]} : vector<9x16xf32> to vector<1x16xf32>
    %178 = vector.shape_cast %177 : vector<1x16xf32> to vector<16xf32>
    %179 = vector.shape_cast %178 : vector<16xf32> to vector<1x1x16xf32>
    %180 = vector.broadcast %179 : vector<1x1x16xf32> to vector<8x8x16xf32>
    %181 = arith.mulf %147, %180 : vector<8x8x16xf32>
    %182 = arith.addf %176, %181 : vector<8x8x16xf32>
    %183 = vector.extract_strided_slice %137 {offsets = [5, 0], sizes = [1, 16], strides = [1, 1]} : vector<9x16xf32> to vector<1x16xf32>
    %184 = vector.shape_cast %183 : vector<1x16xf32> to vector<16xf32>
    %185 = vector.shape_cast %184 : vector<16xf32> to vector<1x1x16xf32>
    %186 = vector.broadcast %185 : vector<1x1x16xf32> to vector<8x8x16xf32>
    %187 = arith.mulf %148, %186 : vector<8x8x16xf32>
    %188 = arith.addf %182, %187 : vector<8x8x16xf32>
    %189 = vector.extract_strided_slice %137 {offsets = [6, 0], sizes = [1, 16], strides = [1, 1]} : vector<9x16xf32> to vector<1x16xf32>
    %190 = vector.shape_cast %189 : vector<1x16xf32> to vector<16xf32>
    %191 = vector.shape_cast %190 : vector<16xf32> to vector<1x1x16xf32>
    %192 = vector.broadcast %191 : vector<1x1x16xf32> to vector<8x8x16xf32>
    %193 = arith.mulf %149, %192 : vector<8x8x16xf32>
    %194 = arith.addf %188, %193 : vector<8x8x16xf32>
    %195 = vector.extract_strided_slice %137 {offsets = [7, 0], sizes = [1, 16], strides = [1, 1]} : vector<9x16xf32> to vector<1x16xf32>
    %196 = vector.shape_cast %195 : vector<1x16xf32> to vector<16xf32>
    %197 = vector.shape_cast %196 : vector<16xf32> to vector<1x1x16xf32>
    %198 = vector.broadcast %197 : vector<1x1x16xf32> to vector<8x8x16xf32>
    %199 = arith.mulf %150, %198 : vector<8x8x16xf32>
    %200 = arith.addf %194, %199 : vector<8x8x16xf32>
    %201 = vector.extract_strided_slice %137 {offsets = [8, 0], sizes = [1, 16], strides = [1, 1]} : vector<9x16xf32> to vector<1x16xf32>
    %202 = vector.shape_cast %201 : vector<1x16xf32> to vector<16xf32>
    %203 = vector.shape_cast %202 : vector<16xf32> to vector<1x1x16xf32>
    %204 = vector.broadcast %203 : vector<1x1x16xf32> to vector<8x8x16xf32>
    %205 = arith.mulf %151, %204 : vector<8x8x16xf32>
    %206 = arith.addf %200, %205 : vector<8x8x16xf32>
    %207 = vector.shape_cast %138 : vector<1x16xf32> to vector<16xf32>
    %208 = vector.shape_cast %207 : vector<16xf32> to vector<1x1x16xf32>
    %209 = vector.broadcast %208 : vector<1x1x16xf32> to vector<8x8x16xf32>
    %210 = arith.addf %206, %209 : vector<8x8x16xf32>
    %cst_27 = arith.constant 0.000000e+00 : f32
    %211 = vector.broadcast %cst_27 : f32 to vector<8x8x16xf32>
    %212 = arith.maximumf %210, %211 : vector<8x8x16xf32>
    %c0_28 = arith.constant 0 : index
    %c0_29 = arith.constant 0 : index
    %213 = vector.load %arg6[%c0_28, %c0_29] : memref<16x32xbf16, #tpu.memory_space<vmem>>, vector<16x32xbf16>
    %c0_30 = arith.constant 0 : index
    %c0_31 = arith.constant 0 : index
    %214 = vector.load %arg7[%c0_30, %c0_31] : memref<1x32xf32, #tpu.memory_space<vmem>>, vector<1x32xf32>
    %215 = vector.shape_cast %212 : vector<8x8x16xf32> to vector<64x16xf32>
    %216 = arith.truncf %215 : vector<64x16xf32> to vector<64x16xbf16>
    %cst_32 = arith.constant dense<0.000000e+00> : vector<64x32xf32>
    %217 = tpu.matmul %216, %213, %cst_32 {dimension_numbers = #tpu.dot_dimension_numbers<[1], [0], [0], [1], [0, 0, 1, 1], [], []>} : vector<64x16xbf16>, vector<16x32xbf16>, vector<64x32xf32> -> vector<64x32xf32>
    %218 = vector.broadcast %214 : vector<1x32xf32> to vector<64x32xf32>
    %219 = arith.addf %217, %218 : vector<64x32xf32>
    %cst_33 = arith.constant 0.000000e+00 : f32
    %220 = vector.broadcast %cst_33 : f32 to vector<64x32xf32>
    %221 = arith.maximumf %219, %220 : vector<64x32xf32>
    %222 = vector.shape_cast %221 : vector<64x32xf32> to vector<8x8x32xf32>
    %c0_34 = arith.constant 0 : index
    %c0_35 = arith.constant 0 : index
    %223 = vector.load %arg8[%c0_34, %c0_35] : memref<9x32xf32, #tpu.memory_space<vmem>>, vector<9x32xf32>
    %c0_36 = arith.constant 0 : index
    %c0_37 = arith.constant 0 : index
    %224 = vector.load %arg9[%c0_36, %c0_37] : memref<1x32xf32, #tpu.memory_space<vmem>>, vector<1x32xf32>
    %cst_38 = arith.constant 0.000000e+00 : f32
    %225 = vector.broadcast %cst_38 : f32 to vector<8x1x32xf32>
    %226 = tpu.concatenate %225, %222, %225 in 1 : vector<8x1x32xf32>, vector<8x8x32xf32>, vector<8x1x32xf32> -> vector<8x10x32xf32>
    %cst_39 = arith.constant 0.000000e+00 : f32
    %227 = vector.broadcast %cst_39 : f32 to vector<1x10x32xf32>
    %228 = tpu.concatenate %227, %226, %227 in 0 : vector<1x10x32xf32>, vector<8x10x32xf32>, vector<1x10x32xf32> -> vector<10x10x32xf32>
    %229 = vector.extract_strided_slice %228 {offsets = [0, 0, 0], sizes = [1, 10, 32], strides = [1, 1, 1]} : vector<10x10x32xf32> to vector<1x10x32xf32>
    %230 = vector.extract_strided_slice %228 {offsets = [2, 0, 0], sizes = [1, 10, 32], strides = [1, 1, 1]} : vector<10x10x32xf32> to vector<1x10x32xf32>
    %231 = vector.extract_strided_slice %228 {offsets = [4, 0, 0], sizes = [1, 10, 32], strides = [1, 1, 1]} : vector<10x10x32xf32> to vector<1x10x32xf32>
    %232 = vector.extract_strided_slice %228 {offsets = [6, 0, 0], sizes = [1, 10, 32], strides = [1, 1, 1]} : vector<10x10x32xf32> to vector<1x10x32xf32>
    %233 = vector.extract_strided_slice %228 {offsets = [8, 0, 0], sizes = [1, 10, 32], strides = [1, 1, 1]} : vector<10x10x32xf32> to vector<1x10x32xf32>
    %234 = tpu.concatenate %229, %230, %231, %232, %233 in 0 : vector<1x10x32xf32>, vector<1x10x32xf32>, vector<1x10x32xf32>, vector<1x10x32xf32>, vector<1x10x32xf32> -> vector<5x10x32xf32>
    %235 = vector.extract_strided_slice %234 {offsets = [0, 0, 0], sizes = [5, 1, 32], strides = [1, 1, 1]} : vector<5x10x32xf32> to vector<5x1x32xf32>
    %236 = vector.extract_strided_slice %234 {offsets = [0, 2, 0], sizes = [5, 1, 32], strides = [1, 1, 1]} : vector<5x10x32xf32> to vector<5x1x32xf32>
    %237 = vector.extract_strided_slice %234 {offsets = [0, 4, 0], sizes = [5, 1, 32], strides = [1, 1, 1]} : vector<5x10x32xf32> to vector<5x1x32xf32>
    %238 = vector.extract_strided_slice %234 {offsets = [0, 6, 0], sizes = [5, 1, 32], strides = [1, 1, 1]} : vector<5x10x32xf32> to vector<5x1x32xf32>
    %239 = vector.extract_strided_slice %234 {offsets = [0, 8, 0], sizes = [5, 1, 32], strides = [1, 1, 1]} : vector<5x10x32xf32> to vector<5x1x32xf32>
    %240 = tpu.concatenate %235, %236, %237, %238, %239 in 1 : vector<5x1x32xf32>, vector<5x1x32xf32>, vector<5x1x32xf32>, vector<5x1x32xf32>, vector<5x1x32xf32> -> vector<5x5x32xf32>
    %241 = vector.extract_strided_slice %234 {offsets = [0, 1, 0], sizes = [5, 1, 32], strides = [1, 1, 1]} : vector<5x10x32xf32> to vector<5x1x32xf32>
    %242 = vector.extract_strided_slice %234 {offsets = [0, 3, 0], sizes = [5, 1, 32], strides = [1, 1, 1]} : vector<5x10x32xf32> to vector<5x1x32xf32>
    %243 = vector.extract_strided_slice %234 {offsets = [0, 5, 0], sizes = [5, 1, 32], strides = [1, 1, 1]} : vector<5x10x32xf32> to vector<5x1x32xf32>
    %244 = vector.extract_strided_slice %234 {offsets = [0, 7, 0], sizes = [5, 1, 32], strides = [1, 1, 1]} : vector<5x10x32xf32> to vector<5x1x32xf32>
    %245 = vector.extract_strided_slice %234 {offsets = [0, 9, 0], sizes = [5, 1, 32], strides = [1, 1, 1]} : vector<5x10x32xf32> to vector<5x1x32xf32>
    %246 = tpu.concatenate %241, %242, %243, %244, %245 in 1 : vector<5x1x32xf32>, vector<5x1x32xf32>, vector<5x1x32xf32>, vector<5x1x32xf32>, vector<5x1x32xf32> -> vector<5x5x32xf32>
    %247 = vector.extract_strided_slice %228 {offsets = [1, 0, 0], sizes = [1, 10, 32], strides = [1, 1, 1]} : vector<10x10x32xf32> to vector<1x10x32xf32>
    %248 = vector.extract_strided_slice %228 {offsets = [3, 0, 0], sizes = [1, 10, 32], strides = [1, 1, 1]} : vector<10x10x32xf32> to vector<1x10x32xf32>
    %249 = vector.extract_strided_slice %228 {offsets = [5, 0, 0], sizes = [1, 10, 32], strides = [1, 1, 1]} : vector<10x10x32xf32> to vector<1x10x32xf32>
    %250 = vector.extract_strided_slice %228 {offsets = [7, 0, 0], sizes = [1, 10, 32], strides = [1, 1, 1]} : vector<10x10x32xf32> to vector<1x10x32xf32>
    %251 = vector.extract_strided_slice %228 {offsets = [9, 0, 0], sizes = [1, 10, 32], strides = [1, 1, 1]} : vector<10x10x32xf32> to vector<1x10x32xf32>
    %252 = tpu.concatenate %247, %248, %249, %250, %251 in 0 : vector<1x10x32xf32>, vector<1x10x32xf32>, vector<1x10x32xf32>, vector<1x10x32xf32>, vector<1x10x32xf32> -> vector<5x10x32xf32>
    %253 = vector.extract_strided_slice %252 {offsets = [0, 0, 0], sizes = [5, 1, 32], strides = [1, 1, 1]} : vector<5x10x32xf32> to vector<5x1x32xf32>
    %254 = vector.extract_strided_slice %252 {offsets = [0, 2, 0], sizes = [5, 1, 32], strides = [1, 1, 1]} : vector<5x10x32xf32> to vector<5x1x32xf32>
    %255 = vector.extract_strided_slice %252 {offsets = [0, 4, 0], sizes = [5, 1, 32], strides = [1, 1, 1]} : vector<5x10x32xf32> to vector<5x1x32xf32>
    %256 = vector.extract_strided_slice %252 {offsets = [0, 6, 0], sizes = [5, 1, 32], strides = [1, 1, 1]} : vector<5x10x32xf32> to vector<5x1x32xf32>
    %257 = vector.extract_strided_slice %252 {offsets = [0, 8, 0], sizes = [5, 1, 32], strides = [1, 1, 1]} : vector<5x10x32xf32> to vector<5x1x32xf32>
    %258 = tpu.concatenate %253, %254, %255, %256, %257 in 1 : vector<5x1x32xf32>, vector<5x1x32xf32>, vector<5x1x32xf32>, vector<5x1x32xf32>, vector<5x1x32xf32> -> vector<5x5x32xf32>
    %259 = vector.extract_strided_slice %252 {offsets = [0, 1, 0], sizes = [5, 1, 32], strides = [1, 1, 1]} : vector<5x10x32xf32> to vector<5x1x32xf32>
    %260 = vector.extract_strided_slice %252 {offsets = [0, 3, 0], sizes = [5, 1, 32], strides = [1, 1, 1]} : vector<5x10x32xf32> to vector<5x1x32xf32>
    %261 = vector.extract_strided_slice %252 {offsets = [0, 5, 0], sizes = [5, 1, 32], strides = [1, 1, 1]} : vector<5x10x32xf32> to vector<5x1x32xf32>
    %262 = vector.extract_strided_slice %252 {offsets = [0, 7, 0], sizes = [5, 1, 32], strides = [1, 1, 1]} : vector<5x10x32xf32> to vector<5x1x32xf32>
    %263 = vector.extract_strided_slice %252 {offsets = [0, 9, 0], sizes = [5, 1, 32], strides = [1, 1, 1]} : vector<5x10x32xf32> to vector<5x1x32xf32>
    %264 = tpu.concatenate %259, %260, %261, %262, %263 in 1 : vector<5x1x32xf32>, vector<5x1x32xf32>, vector<5x1x32xf32>, vector<5x1x32xf32>, vector<5x1x32xf32> -> vector<5x5x32xf32>
    %265 = vector.extract_strided_slice %240 {offsets = [0, 0, 0], sizes = [4, 4, 32], strides = [1, 1, 1]} : vector<5x5x32xf32> to vector<4x4x32xf32>
    %266 = vector.extract_strided_slice %246 {offsets = [0, 0, 0], sizes = [4, 4, 32], strides = [1, 1, 1]} : vector<5x5x32xf32> to vector<4x4x32xf32>
    %267 = vector.extract_strided_slice %240 {offsets = [0, 1, 0], sizes = [4, 4, 32], strides = [1, 1, 1]} : vector<5x5x32xf32> to vector<4x4x32xf32>
    %268 = vector.extract_strided_slice %258 {offsets = [0, 0, 0], sizes = [4, 4, 32], strides = [1, 1, 1]} : vector<5x5x32xf32> to vector<4x4x32xf32>
    %269 = vector.extract_strided_slice %264 {offsets = [0, 0, 0], sizes = [4, 4, 32], strides = [1, 1, 1]} : vector<5x5x32xf32> to vector<4x4x32xf32>
    %270 = vector.extract_strided_slice %258 {offsets = [0, 1, 0], sizes = [4, 4, 32], strides = [1, 1, 1]} : vector<5x5x32xf32> to vector<4x4x32xf32>
    %271 = vector.extract_strided_slice %240 {offsets = [1, 0, 0], sizes = [4, 4, 32], strides = [1, 1, 1]} : vector<5x5x32xf32> to vector<4x4x32xf32>
    %272 = vector.extract_strided_slice %246 {offsets = [1, 0, 0], sizes = [4, 4, 32], strides = [1, 1, 1]} : vector<5x5x32xf32> to vector<4x4x32xf32>
    %273 = vector.extract_strided_slice %240 {offsets = [1, 1, 0], sizes = [4, 4, 32], strides = [1, 1, 1]} : vector<5x5x32xf32> to vector<4x4x32xf32>
    %cst_40 = arith.constant 0.000000e+00 : f32
    %274 = vector.broadcast %cst_40 : f32 to vector<4x4x32xf32>
    %275 = vector.extract_strided_slice %223 {offsets = [0, 0], sizes = [1, 32], strides = [1, 1]} : vector<9x32xf32> to vector<1x32xf32>
    %276 = vector.shape_cast %275 : vector<1x32xf32> to vector<32xf32>
    %277 = vector.shape_cast %276 : vector<32xf32> to vector<1x1x32xf32>
    %278 = vector.broadcast %277 : vector<1x1x32xf32> to vector<4x4x32xf32>
    %279 = arith.mulf %265, %278 : vector<4x4x32xf32>
    %280 = arith.addf %274, %279 : vector<4x4x32xf32>
    %281 = vector.extract_strided_slice %223 {offsets = [1, 0], sizes = [1, 32], strides = [1, 1]} : vector<9x32xf32> to vector<1x32xf32>
    %282 = vector.shape_cast %281 : vector<1x32xf32> to vector<32xf32>
    %283 = vector.shape_cast %282 : vector<32xf32> to vector<1x1x32xf32>
    %284 = vector.broadcast %283 : vector<1x1x32xf32> to vector<4x4x32xf32>
    %285 = arith.mulf %266, %284 : vector<4x4x32xf32>
    %286 = arith.addf %280, %285 : vector<4x4x32xf32>
    %287 = vector.extract_strided_slice %223 {offsets = [2, 0], sizes = [1, 32], strides = [1, 1]} : vector<9x32xf32> to vector<1x32xf32>
    %288 = vector.shape_cast %287 : vector<1x32xf32> to vector<32xf32>
    %289 = vector.shape_cast %288 : vector<32xf32> to vector<1x1x32xf32>
    %290 = vector.broadcast %289 : vector<1x1x32xf32> to vector<4x4x32xf32>
    %291 = arith.mulf %267, %290 : vector<4x4x32xf32>
    %292 = arith.addf %286, %291 : vector<4x4x32xf32>
    %293 = vector.extract_strided_slice %223 {offsets = [3, 0], sizes = [1, 32], strides = [1, 1]} : vector<9x32xf32> to vector<1x32xf32>
    %294 = vector.shape_cast %293 : vector<1x32xf32> to vector<32xf32>
    %295 = vector.shape_cast %294 : vector<32xf32> to vector<1x1x32xf32>
    %296 = vector.broadcast %295 : vector<1x1x32xf32> to vector<4x4x32xf32>
    %297 = arith.mulf %268, %296 : vector<4x4x32xf32>
    %298 = arith.addf %292, %297 : vector<4x4x32xf32>
    %299 = vector.extract_strided_slice %223 {offsets = [4, 0], sizes = [1, 32], strides = [1, 1]} : vector<9x32xf32> to vector<1x32xf32>
    %300 = vector.shape_cast %299 : vector<1x32xf32> to vector<32xf32>
    %301 = vector.shape_cast %300 : vector<32xf32> to vector<1x1x32xf32>
    %302 = vector.broadcast %301 : vector<1x1x32xf32> to vector<4x4x32xf32>
    %303 = arith.mulf %269, %302 : vector<4x4x32xf32>
    %304 = arith.addf %298, %303 : vector<4x4x32xf32>
    %305 = vector.extract_strided_slice %223 {offsets = [5, 0], sizes = [1, 32], strides = [1, 1]} : vector<9x32xf32> to vector<1x32xf32>
    %306 = vector.shape_cast %305 : vector<1x32xf32> to vector<32xf32>
    %307 = vector.shape_cast %306 : vector<32xf32> to vector<1x1x32xf32>
    %308 = vector.broadcast %307 : vector<1x1x32xf32> to vector<4x4x32xf32>
    %309 = arith.mulf %270, %308 : vector<4x4x32xf32>
    %310 = arith.addf %304, %309 : vector<4x4x32xf32>
    %311 = vector.extract_strided_slice %223 {offsets = [6, 0], sizes = [1, 32], strides = [1, 1]} : vector<9x32xf32> to vector<1x32xf32>
    %312 = vector.shape_cast %311 : vector<1x32xf32> to vector<32xf32>
    %313 = vector.shape_cast %312 : vector<32xf32> to vector<1x1x32xf32>
    %314 = vector.broadcast %313 : vector<1x1x32xf32> to vector<4x4x32xf32>
    %315 = arith.mulf %271, %314 : vector<4x4x32xf32>
    %316 = arith.addf %310, %315 : vector<4x4x32xf32>
    %317 = vector.extract_strided_slice %223 {offsets = [7, 0], sizes = [1, 32], strides = [1, 1]} : vector<9x32xf32> to vector<1x32xf32>
    %318 = vector.shape_cast %317 : vector<1x32xf32> to vector<32xf32>
    %319 = vector.shape_cast %318 : vector<32xf32> to vector<1x1x32xf32>
    %320 = vector.broadcast %319 : vector<1x1x32xf32> to vector<4x4x32xf32>
    %321 = arith.mulf %272, %320 : vector<4x4x32xf32>
    %322 = arith.addf %316, %321 : vector<4x4x32xf32>
    %323 = vector.extract_strided_slice %223 {offsets = [8, 0], sizes = [1, 32], strides = [1, 1]} : vector<9x32xf32> to vector<1x32xf32>
    %324 = vector.shape_cast %323 : vector<1x32xf32> to vector<32xf32>
    %325 = vector.shape_cast %324 : vector<32xf32> to vector<1x1x32xf32>
    %326 = vector.broadcast %325 : vector<1x1x32xf32> to vector<4x4x32xf32>
    %327 = arith.mulf %273, %326 : vector<4x4x32xf32>
    %328 = arith.addf %322, %327 : vector<4x4x32xf32>
    %329 = vector.shape_cast %224 : vector<1x32xf32> to vector<32xf32>
    %330 = vector.shape_cast %329 : vector<32xf32> to vector<1x1x32xf32>
    %331 = vector.broadcast %330 : vector<1x1x32xf32> to vector<4x4x32xf32>
    %332 = arith.addf %328, %331 : vector<4x4x32xf32>
    %cst_41 = arith.constant 0.000000e+00 : f32
    %333 = vector.broadcast %cst_41 : f32 to vector<4x4x32xf32>
    %334 = arith.maximumf %332, %333 : vector<4x4x32xf32>
    %c0_42 = arith.constant 0 : index
    %c0_43 = arith.constant 0 : index
    %335 = vector.load %arg10[%c0_42, %c0_43] : memref<32x64xbf16, #tpu.memory_space<vmem>>, vector<32x64xbf16>
    %c0_44 = arith.constant 0 : index
    %c0_45 = arith.constant 0 : index
    %336 = vector.load %arg11[%c0_44, %c0_45] : memref<1x64xf32, #tpu.memory_space<vmem>>, vector<1x64xf32>
    %337 = vector.shape_cast %334 : vector<4x4x32xf32> to vector<16x32xf32>
    %338 = arith.truncf %337 : vector<16x32xf32> to vector<16x32xbf16>
    %cst_46 = arith.constant dense<0.000000e+00> : vector<16x64xf32>
    %339 = tpu.matmul %338, %335, %cst_46 {dimension_numbers = #tpu.dot_dimension_numbers<[1], [0], [0], [1], [0, 0, 1, 1], [], []>} : vector<16x32xbf16>, vector<32x64xbf16>, vector<16x64xf32> -> vector<16x64xf32>
    %340 = vector.broadcast %336 : vector<1x64xf32> to vector<16x64xf32>
    %341 = arith.addf %339, %340 : vector<16x64xf32>
    %cst_47 = arith.constant 0.000000e+00 : f32
    %342 = vector.broadcast %cst_47 : f32 to vector<16x64xf32>
    %343 = arith.maximumf %341, %342 : vector<16x64xf32>
    %344 = vector.shape_cast %343 : vector<16x64xf32> to vector<4x4x64xf32>
    %c0_48 = arith.constant 0 : index
    %c0_49 = arith.constant 0 : index
    %345 = vector.load %arg12[%c0_48, %c0_49] : memref<9x64xf32, #tpu.memory_space<vmem>>, vector<9x64xf32>
    %c0_50 = arith.constant 0 : index
    %c0_51 = arith.constant 0 : index
    %346 = vector.load %arg13[%c0_50, %c0_51] : memref<1x64xf32, #tpu.memory_space<vmem>>, vector<1x64xf32>
    %cst_52 = arith.constant 0.000000e+00 : f32
    %347 = vector.broadcast %cst_52 : f32 to vector<4x1x64xf32>
    %348 = tpu.concatenate %347, %344, %347 in 1 : vector<4x1x64xf32>, vector<4x4x64xf32>, vector<4x1x64xf32> -> vector<4x6x64xf32>
    %cst_53 = arith.constant 0.000000e+00 : f32
    %349 = vector.broadcast %cst_53 : f32 to vector<1x6x64xf32>
    %350 = tpu.concatenate %349, %348, %349 in 0 : vector<1x6x64xf32>, vector<4x6x64xf32>, vector<1x6x64xf32> -> vector<6x6x64xf32>
    %351 = vector.extract_strided_slice %350 {offsets = [0, 0, 0], sizes = [4, 4, 64], strides = [1, 1, 1]} : vector<6x6x64xf32> to vector<4x4x64xf32>
    %352 = vector.extract_strided_slice %350 {offsets = [0, 1, 0], sizes = [4, 4, 64], strides = [1, 1, 1]} : vector<6x6x64xf32> to vector<4x4x64xf32>
    %353 = vector.extract_strided_slice %350 {offsets = [0, 2, 0], sizes = [4, 4, 64], strides = [1, 1, 1]} : vector<6x6x64xf32> to vector<4x4x64xf32>
    %354 = vector.extract_strided_slice %350 {offsets = [1, 0, 0], sizes = [4, 4, 64], strides = [1, 1, 1]} : vector<6x6x64xf32> to vector<4x4x64xf32>
    %355 = vector.extract_strided_slice %350 {offsets = [1, 1, 0], sizes = [4, 4, 64], strides = [1, 1, 1]} : vector<6x6x64xf32> to vector<4x4x64xf32>
    %356 = vector.extract_strided_slice %350 {offsets = [1, 2, 0], sizes = [4, 4, 64], strides = [1, 1, 1]} : vector<6x6x64xf32> to vector<4x4x64xf32>
    %357 = vector.extract_strided_slice %350 {offsets = [2, 0, 0], sizes = [4, 4, 64], strides = [1, 1, 1]} : vector<6x6x64xf32> to vector<4x4x64xf32>
    %358 = vector.extract_strided_slice %350 {offsets = [2, 1, 0], sizes = [4, 4, 64], strides = [1, 1, 1]} : vector<6x6x64xf32> to vector<4x4x64xf32>
    %359 = vector.extract_strided_slice %350 {offsets = [2, 2, 0], sizes = [4, 4, 64], strides = [1, 1, 1]} : vector<6x6x64xf32> to vector<4x4x64xf32>
    %cst_54 = arith.constant 0.000000e+00 : f32
    %360 = vector.broadcast %cst_54 : f32 to vector<4x4x64xf32>
    %361 = vector.extract_strided_slice %345 {offsets = [0, 0], sizes = [1, 64], strides = [1, 1]} : vector<9x64xf32> to vector<1x64xf32>
    %362 = vector.shape_cast %361 : vector<1x64xf32> to vector<64xf32>
    %363 = vector.shape_cast %362 : vector<64xf32> to vector<1x1x64xf32>
    %364 = vector.broadcast %363 : vector<1x1x64xf32> to vector<4x4x64xf32>
    %365 = arith.mulf %351, %364 : vector<4x4x64xf32>
    %366 = arith.addf %360, %365 : vector<4x4x64xf32>
    %367 = vector.extract_strided_slice %345 {offsets = [1, 0], sizes = [1, 64], strides = [1, 1]} : vector<9x64xf32> to vector<1x64xf32>
    %368 = vector.shape_cast %367 : vector<1x64xf32> to vector<64xf32>
    %369 = vector.shape_cast %368 : vector<64xf32> to vector<1x1x64xf32>
    %370 = vector.broadcast %369 : vector<1x1x64xf32> to vector<4x4x64xf32>
    %371 = arith.mulf %352, %370 : vector<4x4x64xf32>
    %372 = arith.addf %366, %371 : vector<4x4x64xf32>
    %373 = vector.extract_strided_slice %345 {offsets = [2, 0], sizes = [1, 64], strides = [1, 1]} : vector<9x64xf32> to vector<1x64xf32>
    %374 = vector.shape_cast %373 : vector<1x64xf32> to vector<64xf32>
    %375 = vector.shape_cast %374 : vector<64xf32> to vector<1x1x64xf32>
    %376 = vector.broadcast %375 : vector<1x1x64xf32> to vector<4x4x64xf32>
    %377 = arith.mulf %353, %376 : vector<4x4x64xf32>
    %378 = arith.addf %372, %377 : vector<4x4x64xf32>
    %379 = vector.extract_strided_slice %345 {offsets = [3, 0], sizes = [1, 64], strides = [1, 1]} : vector<9x64xf32> to vector<1x64xf32>
    %380 = vector.shape_cast %379 : vector<1x64xf32> to vector<64xf32>
    %381 = vector.shape_cast %380 : vector<64xf32> to vector<1x1x64xf32>
    %382 = vector.broadcast %381 : vector<1x1x64xf32> to vector<4x4x64xf32>
    %383 = arith.mulf %354, %382 : vector<4x4x64xf32>
    %384 = arith.addf %378, %383 : vector<4x4x64xf32>
    %385 = vector.extract_strided_slice %345 {offsets = [4, 0], sizes = [1, 64], strides = [1, 1]} : vector<9x64xf32> to vector<1x64xf32>
    %386 = vector.shape_cast %385 : vector<1x64xf32> to vector<64xf32>
    %387 = vector.shape_cast %386 : vector<64xf32> to vector<1x1x64xf32>
    %388 = vector.broadcast %387 : vector<1x1x64xf32> to vector<4x4x64xf32>
    %389 = arith.mulf %355, %388 : vector<4x4x64xf32>
    %390 = arith.addf %384, %389 : vector<4x4x64xf32>
    %391 = vector.extract_strided_slice %345 {offsets = [5, 0], sizes = [1, 64], strides = [1, 1]} : vector<9x64xf32> to vector<1x64xf32>
    %392 = vector.shape_cast %391 : vector<1x64xf32> to vector<64xf32>
    %393 = vector.shape_cast %392 : vector<64xf32> to vector<1x1x64xf32>
    %394 = vector.broadcast %393 : vector<1x1x64xf32> to vector<4x4x64xf32>
    %395 = arith.mulf %356, %394 : vector<4x4x64xf32>
    %396 = arith.addf %390, %395 : vector<4x4x64xf32>
    %397 = vector.extract_strided_slice %345 {offsets = [6, 0], sizes = [1, 64], strides = [1, 1]} : vector<9x64xf32> to vector<1x64xf32>
    %398 = vector.shape_cast %397 : vector<1x64xf32> to vector<64xf32>
    %399 = vector.shape_cast %398 : vector<64xf32> to vector<1x1x64xf32>
    %400 = vector.broadcast %399 : vector<1x1x64xf32> to vector<4x4x64xf32>
    %401 = arith.mulf %357, %400 : vector<4x4x64xf32>
    %402 = arith.addf %396, %401 : vector<4x4x64xf32>
    %403 = vector.extract_strided_slice %345 {offsets = [7, 0], sizes = [1, 64], strides = [1, 1]} : vector<9x64xf32> to vector<1x64xf32>
    %404 = vector.shape_cast %403 : vector<1x64xf32> to vector<64xf32>
    %405 = vector.shape_cast %404 : vector<64xf32> to vector<1x1x64xf32>
    %406 = vector.broadcast %405 : vector<1x1x64xf32> to vector<4x4x64xf32>
    %407 = arith.mulf %358, %406 : vector<4x4x64xf32>
    %408 = arith.addf %402, %407 : vector<4x4x64xf32>
    %409 = vector.extract_strided_slice %345 {offsets = [8, 0], sizes = [1, 64], strides = [1, 1]} : vector<9x64xf32> to vector<1x64xf32>
    %410 = vector.shape_cast %409 : vector<1x64xf32> to vector<64xf32>
    %411 = vector.shape_cast %410 : vector<64xf32> to vector<1x1x64xf32>
    %412 = vector.broadcast %411 : vector<1x1x64xf32> to vector<4x4x64xf32>
    %413 = arith.mulf %359, %412 : vector<4x4x64xf32>
    %414 = arith.addf %408, %413 : vector<4x4x64xf32>
    %415 = vector.shape_cast %346 : vector<1x64xf32> to vector<64xf32>
    %416 = vector.shape_cast %415 : vector<64xf32> to vector<1x1x64xf32>
    %417 = vector.broadcast %416 : vector<1x1x64xf32> to vector<4x4x64xf32>
    %418 = arith.addf %414, %417 : vector<4x4x64xf32>
    %cst_55 = arith.constant 0.000000e+00 : f32
    %419 = vector.broadcast %cst_55 : f32 to vector<4x4x64xf32>
    %420 = arith.maximumf %418, %419 : vector<4x4x64xf32>
    %c0_56 = arith.constant 0 : index
    %c0_57 = arith.constant 0 : index
    %421 = vector.load %arg14[%c0_56, %c0_57] : memref<64x64xbf16, #tpu.memory_space<vmem>>, vector<64x64xbf16>
    %c0_58 = arith.constant 0 : index
    %c0_59 = arith.constant 0 : index
    %422 = vector.load %arg15[%c0_58, %c0_59] : memref<1x64xf32, #tpu.memory_space<vmem>>, vector<1x64xf32>
    %423 = vector.shape_cast %420 : vector<4x4x64xf32> to vector<16x64xf32>
    %424 = arith.truncf %423 : vector<16x64xf32> to vector<16x64xbf16>
    %cst_60 = arith.constant dense<0.000000e+00> : vector<16x64xf32>
    %425 = tpu.matmul %424, %421, %cst_60 {dimension_numbers = #tpu.dot_dimension_numbers<[1], [0], [0], [1], [0, 0, 1, 1], [], []>} : vector<16x64xbf16>, vector<64x64xbf16>, vector<16x64xf32> -> vector<16x64xf32>
    %426 = vector.broadcast %422 : vector<1x64xf32> to vector<16x64xf32>
    %427 = arith.addf %425, %426 : vector<16x64xf32>
    %cst_61 = arith.constant 0.000000e+00 : f32
    %428 = vector.broadcast %cst_61 : f32 to vector<16x64xf32>
    %429 = arith.maximumf %427, %428 : vector<16x64xf32>
    %430 = vector.shape_cast %429 : vector<16x64xf32> to vector<4x4x64xf32>
    %c0_62 = arith.constant 0 : index
    %c0_63 = arith.constant 0 : index
    %431 = vector.load %arg16[%c0_62, %c0_63] : memref<9x64xf32, #tpu.memory_space<vmem>>, vector<9x64xf32>
    %c0_64 = arith.constant 0 : index
    %c0_65 = arith.constant 0 : index
    %432 = vector.load %arg17[%c0_64, %c0_65] : memref<1x64xf32, #tpu.memory_space<vmem>>, vector<1x64xf32>
    %cst_66 = arith.constant 0.000000e+00 : f32
    %433 = vector.broadcast %cst_66 : f32 to vector<4x1x64xf32>
    %434 = tpu.concatenate %433, %430, %433 in 1 : vector<4x1x64xf32>, vector<4x4x64xf32>, vector<4x1x64xf32> -> vector<4x6x64xf32>
    %cst_67 = arith.constant 0.000000e+00 : f32
    %435 = vector.broadcast %cst_67 : f32 to vector<1x6x64xf32>
    %436 = tpu.concatenate %435, %434, %435 in 0 : vector<1x6x64xf32>, vector<4x6x64xf32>, vector<1x6x64xf32> -> vector<6x6x64xf32>
    %437 = vector.extract_strided_slice %436 {offsets = [0, 0, 0], sizes = [1, 6, 64], strides = [1, 1, 1]} : vector<6x6x64xf32> to vector<1x6x64xf32>
    %438 = vector.extract_strided_slice %436 {offsets = [2, 0, 0], sizes = [1, 6, 64], strides = [1, 1, 1]} : vector<6x6x64xf32> to vector<1x6x64xf32>
    %439 = vector.extract_strided_slice %436 {offsets = [4, 0, 0], sizes = [1, 6, 64], strides = [1, 1, 1]} : vector<6x6x64xf32> to vector<1x6x64xf32>
    %440 = tpu.concatenate %437, %438, %439 in 0 : vector<1x6x64xf32>, vector<1x6x64xf32>, vector<1x6x64xf32> -> vector<3x6x64xf32>
    %441 = vector.extract_strided_slice %440 {offsets = [0, 0, 0], sizes = [3, 1, 64], strides = [1, 1, 1]} : vector<3x6x64xf32> to vector<3x1x64xf32>
    %442 = vector.extract_strided_slice %440 {offsets = [0, 2, 0], sizes = [3, 1, 64], strides = [1, 1, 1]} : vector<3x6x64xf32> to vector<3x1x64xf32>
    %443 = vector.extract_strided_slice %440 {offsets = [0, 4, 0], sizes = [3, 1, 64], strides = [1, 1, 1]} : vector<3x6x64xf32> to vector<3x1x64xf32>
    %444 = tpu.concatenate %441, %442, %443 in 1 : vector<3x1x64xf32>, vector<3x1x64xf32>, vector<3x1x64xf32> -> vector<3x3x64xf32>
    %445 = vector.extract_strided_slice %440 {offsets = [0, 1, 0], sizes = [3, 1, 64], strides = [1, 1, 1]} : vector<3x6x64xf32> to vector<3x1x64xf32>
    %446 = vector.extract_strided_slice %440 {offsets = [0, 3, 0], sizes = [3, 1, 64], strides = [1, 1, 1]} : vector<3x6x64xf32> to vector<3x1x64xf32>
    %447 = vector.extract_strided_slice %440 {offsets = [0, 5, 0], sizes = [3, 1, 64], strides = [1, 1, 1]} : vector<3x6x64xf32> to vector<3x1x64xf32>
    %448 = tpu.concatenate %445, %446, %447 in 1 : vector<3x1x64xf32>, vector<3x1x64xf32>, vector<3x1x64xf32> -> vector<3x3x64xf32>
    %449 = vector.extract_strided_slice %436 {offsets = [1, 0, 0], sizes = [1, 6, 64], strides = [1, 1, 1]} : vector<6x6x64xf32> to vector<1x6x64xf32>
    %450 = vector.extract_strided_slice %436 {offsets = [3, 0, 0], sizes = [1, 6, 64], strides = [1, 1, 1]} : vector<6x6x64xf32> to vector<1x6x64xf32>
    %451 = vector.extract_strided_slice %436 {offsets = [5, 0, 0], sizes = [1, 6, 64], strides = [1, 1, 1]} : vector<6x6x64xf32> to vector<1x6x64xf32>
    %452 = tpu.concatenate %449, %450, %451 in 0 : vector<1x6x64xf32>, vector<1x6x64xf32>, vector<1x6x64xf32> -> vector<3x6x64xf32>
    %453 = vector.extract_strided_slice %452 {offsets = [0, 0, 0], sizes = [3, 1, 64], strides = [1, 1, 1]} : vector<3x6x64xf32> to vector<3x1x64xf32>
    %454 = vector.extract_strided_slice %452 {offsets = [0, 2, 0], sizes = [3, 1, 64], strides = [1, 1, 1]} : vector<3x6x64xf32> to vector<3x1x64xf32>
    %455 = vector.extract_strided_slice %452 {offsets = [0, 4, 0], sizes = [3, 1, 64], strides = [1, 1, 1]} : vector<3x6x64xf32> to vector<3x1x64xf32>
    %456 = tpu.concatenate %453, %454, %455 in 1 : vector<3x1x64xf32>, vector<3x1x64xf32>, vector<3x1x64xf32> -> vector<3x3x64xf32>
    %457 = vector.extract_strided_slice %452 {offsets = [0, 1, 0], sizes = [3, 1, 64], strides = [1, 1, 1]} : vector<3x6x64xf32> to vector<3x1x64xf32>
    %458 = vector.extract_strided_slice %452 {offsets = [0, 3, 0], sizes = [3, 1, 64], strides = [1, 1, 1]} : vector<3x6x64xf32> to vector<3x1x64xf32>
    %459 = vector.extract_strided_slice %452 {offsets = [0, 5, 0], sizes = [3, 1, 64], strides = [1, 1, 1]} : vector<3x6x64xf32> to vector<3x1x64xf32>
    %460 = tpu.concatenate %457, %458, %459 in 1 : vector<3x1x64xf32>, vector<3x1x64xf32>, vector<3x1x64xf32> -> vector<3x3x64xf32>
    %461 = vector.extract_strided_slice %444 {offsets = [0, 0, 0], sizes = [2, 2, 64], strides = [1, 1, 1]} : vector<3x3x64xf32> to vector<2x2x64xf32>
    %462 = vector.extract_strided_slice %448 {offsets = [0, 0, 0], sizes = [2, 2, 64], strides = [1, 1, 1]} : vector<3x3x64xf32> to vector<2x2x64xf32>
    %463 = vector.extract_strided_slice %444 {offsets = [0, 1, 0], sizes = [2, 2, 64], strides = [1, 1, 1]} : vector<3x3x64xf32> to vector<2x2x64xf32>
    %464 = vector.extract_strided_slice %456 {offsets = [0, 0, 0], sizes = [2, 2, 64], strides = [1, 1, 1]} : vector<3x3x64xf32> to vector<2x2x64xf32>
    %465 = vector.extract_strided_slice %460 {offsets = [0, 0, 0], sizes = [2, 2, 64], strides = [1, 1, 1]} : vector<3x3x64xf32> to vector<2x2x64xf32>
    %466 = vector.extract_strided_slice %456 {offsets = [0, 1, 0], sizes = [2, 2, 64], strides = [1, 1, 1]} : vector<3x3x64xf32> to vector<2x2x64xf32>
    %467 = vector.extract_strided_slice %444 {offsets = [1, 0, 0], sizes = [2, 2, 64], strides = [1, 1, 1]} : vector<3x3x64xf32> to vector<2x2x64xf32>
    %468 = vector.extract_strided_slice %448 {offsets = [1, 0, 0], sizes = [2, 2, 64], strides = [1, 1, 1]} : vector<3x3x64xf32> to vector<2x2x64xf32>
    %469 = vector.extract_strided_slice %444 {offsets = [1, 1, 0], sizes = [2, 2, 64], strides = [1, 1, 1]} : vector<3x3x64xf32> to vector<2x2x64xf32>
    %cst_68 = arith.constant 0.000000e+00 : f32
    %470 = vector.broadcast %cst_68 : f32 to vector<2x2x64xf32>
    %471 = vector.extract_strided_slice %431 {offsets = [0, 0], sizes = [1, 64], strides = [1, 1]} : vector<9x64xf32> to vector<1x64xf32>
    %472 = vector.shape_cast %471 : vector<1x64xf32> to vector<64xf32>
    %473 = vector.shape_cast %472 : vector<64xf32> to vector<1x1x64xf32>
    %474 = vector.broadcast %473 : vector<1x1x64xf32> to vector<2x2x64xf32>
    %475 = arith.mulf %461, %474 : vector<2x2x64xf32>
    %476 = arith.addf %470, %475 : vector<2x2x64xf32>
    %477 = vector.extract_strided_slice %431 {offsets = [1, 0], sizes = [1, 64], strides = [1, 1]} : vector<9x64xf32> to vector<1x64xf32>
    %478 = vector.shape_cast %477 : vector<1x64xf32> to vector<64xf32>
    %479 = vector.shape_cast %478 : vector<64xf32> to vector<1x1x64xf32>
    %480 = vector.broadcast %479 : vector<1x1x64xf32> to vector<2x2x64xf32>
    %481 = arith.mulf %462, %480 : vector<2x2x64xf32>
    %482 = arith.addf %476, %481 : vector<2x2x64xf32>
    %483 = vector.extract_strided_slice %431 {offsets = [2, 0], sizes = [1, 64], strides = [1, 1]} : vector<9x64xf32> to vector<1x64xf32>
    %484 = vector.shape_cast %483 : vector<1x64xf32> to vector<64xf32>
    %485 = vector.shape_cast %484 : vector<64xf32> to vector<1x1x64xf32>
    %486 = vector.broadcast %485 : vector<1x1x64xf32> to vector<2x2x64xf32>
    %487 = arith.mulf %463, %486 : vector<2x2x64xf32>
    %488 = arith.addf %482, %487 : vector<2x2x64xf32>
    %489 = vector.extract_strided_slice %431 {offsets = [3, 0], sizes = [1, 64], strides = [1, 1]} : vector<9x64xf32> to vector<1x64xf32>
    %490 = vector.shape_cast %489 : vector<1x64xf32> to vector<64xf32>
    %491 = vector.shape_cast %490 : vector<64xf32> to vector<1x1x64xf32>
    %492 = vector.broadcast %491 : vector<1x1x64xf32> to vector<2x2x64xf32>
    %493 = arith.mulf %464, %492 : vector<2x2x64xf32>
    %494 = arith.addf %488, %493 : vector<2x2x64xf32>
    %495 = vector.extract_strided_slice %431 {offsets = [4, 0], sizes = [1, 64], strides = [1, 1]} : vector<9x64xf32> to vector<1x64xf32>
    %496 = vector.shape_cast %495 : vector<1x64xf32> to vector<64xf32>
    %497 = vector.shape_cast %496 : vector<64xf32> to vector<1x1x64xf32>
    %498 = vector.broadcast %497 : vector<1x1x64xf32> to vector<2x2x64xf32>
    %499 = arith.mulf %465, %498 : vector<2x2x64xf32>
    %500 = arith.addf %494, %499 : vector<2x2x64xf32>
    %501 = vector.extract_strided_slice %431 {offsets = [5, 0], sizes = [1, 64], strides = [1, 1]} : vector<9x64xf32> to vector<1x64xf32>
    %502 = vector.shape_cast %501 : vector<1x64xf32> to vector<64xf32>
    %503 = vector.shape_cast %502 : vector<64xf32> to vector<1x1x64xf32>
    %504 = vector.broadcast %503 : vector<1x1x64xf32> to vector<2x2x64xf32>
    %505 = arith.mulf %466, %504 : vector<2x2x64xf32>
    %506 = arith.addf %500, %505 : vector<2x2x64xf32>
    %507 = vector.extract_strided_slice %431 {offsets = [6, 0], sizes = [1, 64], strides = [1, 1]} : vector<9x64xf32> to vector<1x64xf32>
    %508 = vector.shape_cast %507 : vector<1x64xf32> to vector<64xf32>
    %509 = vector.shape_cast %508 : vector<64xf32> to vector<1x1x64xf32>
    %510 = vector.broadcast %509 : vector<1x1x64xf32> to vector<2x2x64xf32>
    %511 = arith.mulf %467, %510 : vector<2x2x64xf32>
    %512 = arith.addf %506, %511 : vector<2x2x64xf32>
    %513 = vector.extract_strided_slice %431 {offsets = [7, 0], sizes = [1, 64], strides = [1, 1]} : vector<9x64xf32> to vector<1x64xf32>
    %514 = vector.shape_cast %513 : vector<1x64xf32> to vector<64xf32>
    %515 = vector.shape_cast %514 : vector<64xf32> to vector<1x1x64xf32>
    %516 = vector.broadcast %515 : vector<1x1x64xf32> to vector<2x2x64xf32>
    %517 = arith.mulf %468, %516 : vector<2x2x64xf32>
    %518 = arith.addf %512, %517 : vector<2x2x64xf32>
    %519 = vector.extract_strided_slice %431 {offsets = [8, 0], sizes = [1, 64], strides = [1, 1]} : vector<9x64xf32> to vector<1x64xf32>
    %520 = vector.shape_cast %519 : vector<1x64xf32> to vector<64xf32>
    %521 = vector.shape_cast %520 : vector<64xf32> to vector<1x1x64xf32>
    %522 = vector.broadcast %521 : vector<1x1x64xf32> to vector<2x2x64xf32>
    %523 = arith.mulf %469, %522 : vector<2x2x64xf32>
    %524 = arith.addf %518, %523 : vector<2x2x64xf32>
    %525 = vector.shape_cast %432 : vector<1x64xf32> to vector<64xf32>
    %526 = vector.shape_cast %525 : vector<64xf32> to vector<1x1x64xf32>
    %527 = vector.broadcast %526 : vector<1x1x64xf32> to vector<2x2x64xf32>
    %528 = arith.addf %524, %527 : vector<2x2x64xf32>
    %cst_69 = arith.constant 0.000000e+00 : f32
    %529 = vector.broadcast %cst_69 : f32 to vector<2x2x64xf32>
    %530 = arith.maximumf %528, %529 : vector<2x2x64xf32>
    %c0_70 = arith.constant 0 : index
    %c0_71 = arith.constant 0 : index
    %531 = vector.load %arg18[%c0_70, %c0_71] : memref<64x128xbf16, #tpu.memory_space<vmem>>, vector<64x128xbf16>
    %c0_72 = arith.constant 0 : index
    %c0_73 = arith.constant 0 : index
    %532 = vector.load %arg19[%c0_72, %c0_73] : memref<1x128xf32, #tpu.memory_space<vmem>>, vector<1x128xf32>
    %533 = vector.shape_cast %530 : vector<2x2x64xf32> to vector<4x64xf32>
    %534 = arith.truncf %533 : vector<4x64xf32> to vector<4x64xbf16>
    %cst_74 = arith.constant dense<0.000000e+00> : vector<4x128xf32>
    %535 = tpu.matmul %534, %531, %cst_74 {dimension_numbers = #tpu.dot_dimension_numbers<[1], [0], [0], [1], [0, 0, 1, 1], [], []>} : vector<4x64xbf16>, vector<64x128xbf16>, vector<4x128xf32> -> vector<4x128xf32>
    %536 = vector.broadcast %532 : vector<1x128xf32> to vector<4x128xf32>
    %537 = arith.addf %535, %536 : vector<4x128xf32>
    %cst_75 = arith.constant 0.000000e+00 : f32
    %538 = vector.broadcast %cst_75 : f32 to vector<4x128xf32>
    %539 = arith.maximumf %537, %538 : vector<4x128xf32>
    %540 = vector.shape_cast %539 : vector<4x128xf32> to vector<2x2x128xf32>
    %c0_76 = arith.constant 0 : index
    %c0_77 = arith.constant 0 : index
    %541 = vector.load %arg20[%c0_76, %c0_77] : memref<9x128xf32, #tpu.memory_space<vmem>>, vector<9x128xf32>
    %c0_78 = arith.constant 0 : index
    %c0_79 = arith.constant 0 : index
    %542 = vector.load %arg21[%c0_78, %c0_79] : memref<1x128xf32, #tpu.memory_space<vmem>>, vector<1x128xf32>
    %cst_80 = arith.constant 0.000000e+00 : f32
    %543 = vector.broadcast %cst_80 : f32 to vector<2x1x128xf32>
    %544 = tpu.concatenate %543, %540, %543 in 1 : vector<2x1x128xf32>, vector<2x2x128xf32>, vector<2x1x128xf32> -> vector<2x4x128xf32>
    %cst_81 = arith.constant 0.000000e+00 : f32
    %545 = vector.broadcast %cst_81 : f32 to vector<1x4x128xf32>
    %546 = tpu.concatenate %545, %544, %545 in 0 : vector<1x4x128xf32>, vector<2x4x128xf32>, vector<1x4x128xf32> -> vector<4x4x128xf32>
    %547 = vector.extract_strided_slice %546 {offsets = [0, 0, 0], sizes = [2, 2, 128], strides = [1, 1, 1]} : vector<4x4x128xf32> to vector<2x2x128xf32>
    %548 = vector.extract_strided_slice %546 {offsets = [0, 1, 0], sizes = [2, 2, 128], strides = [1, 1, 1]} : vector<4x4x128xf32> to vector<2x2x128xf32>
    %549 = vector.extract_strided_slice %546 {offsets = [0, 2, 0], sizes = [2, 2, 128], strides = [1, 1, 1]} : vector<4x4x128xf32> to vector<2x2x128xf32>
    %550 = vector.extract_strided_slice %546 {offsets = [1, 0, 0], sizes = [2, 2, 128], strides = [1, 1, 1]} : vector<4x4x128xf32> to vector<2x2x128xf32>
    %551 = vector.extract_strided_slice %546 {offsets = [1, 1, 0], sizes = [2, 2, 128], strides = [1, 1, 1]} : vector<4x4x128xf32> to vector<2x2x128xf32>
    %552 = vector.extract_strided_slice %546 {offsets = [1, 2, 0], sizes = [2, 2, 128], strides = [1, 1, 1]} : vector<4x4x128xf32> to vector<2x2x128xf32>
    %553 = vector.extract_strided_slice %546 {offsets = [2, 0, 0], sizes = [2, 2, 128], strides = [1, 1, 1]} : vector<4x4x128xf32> to vector<2x2x128xf32>
    %554 = vector.extract_strided_slice %546 {offsets = [2, 1, 0], sizes = [2, 2, 128], strides = [1, 1, 1]} : vector<4x4x128xf32> to vector<2x2x128xf32>
    %555 = vector.extract_strided_slice %546 {offsets = [2, 2, 0], sizes = [2, 2, 128], strides = [1, 1, 1]} : vector<4x4x128xf32> to vector<2x2x128xf32>
    %cst_82 = arith.constant 0.000000e+00 : f32
    %556 = vector.broadcast %cst_82 : f32 to vector<2x2x128xf32>
    %557 = vector.extract_strided_slice %541 {offsets = [0, 0], sizes = [1, 128], strides = [1, 1]} : vector<9x128xf32> to vector<1x128xf32>
    %558 = vector.shape_cast %557 : vector<1x128xf32> to vector<128xf32>
    %559 = vector.shape_cast %558 : vector<128xf32> to vector<1x1x128xf32>
    %560 = vector.broadcast %559 : vector<1x1x128xf32> to vector<2x2x128xf32>
    %561 = arith.mulf %547, %560 : vector<2x2x128xf32>
    %562 = arith.addf %556, %561 : vector<2x2x128xf32>
    %563 = vector.extract_strided_slice %541 {offsets = [1, 0], sizes = [1, 128], strides = [1, 1]} : vector<9x128xf32> to vector<1x128xf32>
    %564 = vector.shape_cast %563 : vector<1x128xf32> to vector<128xf32>
    %565 = vector.shape_cast %564 : vector<128xf32> to vector<1x1x128xf32>
    %566 = vector.broadcast %565 : vector<1x1x128xf32> to vector<2x2x128xf32>
    %567 = arith.mulf %548, %566 : vector<2x2x128xf32>
    %568 = arith.addf %562, %567 : vector<2x2x128xf32>
    %569 = vector.extract_strided_slice %541 {offsets = [2, 0], sizes = [1, 128], strides = [1, 1]} : vector<9x128xf32> to vector<1x128xf32>
    %570 = vector.shape_cast %569 : vector<1x128xf32> to vector<128xf32>
    %571 = vector.shape_cast %570 : vector<128xf32> to vector<1x1x128xf32>
    %572 = vector.broadcast %571 : vector<1x1x128xf32> to vector<2x2x128xf32>
    %573 = arith.mulf %549, %572 : vector<2x2x128xf32>
    %574 = arith.addf %568, %573 : vector<2x2x128xf32>
    %575 = vector.extract_strided_slice %541 {offsets = [3, 0], sizes = [1, 128], strides = [1, 1]} : vector<9x128xf32> to vector<1x128xf32>
    %576 = vector.shape_cast %575 : vector<1x128xf32> to vector<128xf32>
    %577 = vector.shape_cast %576 : vector<128xf32> to vector<1x1x128xf32>
    %578 = vector.broadcast %577 : vector<1x1x128xf32> to vector<2x2x128xf32>
    %579 = arith.mulf %550, %578 : vector<2x2x128xf32>
    %580 = arith.addf %574, %579 : vector<2x2x128xf32>
    %581 = vector.extract_strided_slice %541 {offsets = [4, 0], sizes = [1, 128], strides = [1, 1]} : vector<9x128xf32> to vector<1x128xf32>
    %582 = vector.shape_cast %581 : vector<1x128xf32> to vector<128xf32>
    %583 = vector.shape_cast %582 : vector<128xf32> to vector<1x1x128xf32>
    %584 = vector.broadcast %583 : vector<1x1x128xf32> to vector<2x2x128xf32>
    %585 = arith.mulf %551, %584 : vector<2x2x128xf32>
    %586 = arith.addf %580, %585 : vector<2x2x128xf32>
    %587 = vector.extract_strided_slice %541 {offsets = [5, 0], sizes = [1, 128], strides = [1, 1]} : vector<9x128xf32> to vector<1x128xf32>
    %588 = vector.shape_cast %587 : vector<1x128xf32> to vector<128xf32>
    %589 = vector.shape_cast %588 : vector<128xf32> to vector<1x1x128xf32>
    %590 = vector.broadcast %589 : vector<1x1x128xf32> to vector<2x2x128xf32>
    %591 = arith.mulf %552, %590 : vector<2x2x128xf32>
    %592 = arith.addf %586, %591 : vector<2x2x128xf32>
    %593 = vector.extract_strided_slice %541 {offsets = [6, 0], sizes = [1, 128], strides = [1, 1]} : vector<9x128xf32> to vector<1x128xf32>
    %594 = vector.shape_cast %593 : vector<1x128xf32> to vector<128xf32>
    %595 = vector.shape_cast %594 : vector<128xf32> to vector<1x1x128xf32>
    %596 = vector.broadcast %595 : vector<1x1x128xf32> to vector<2x2x128xf32>
    %597 = arith.mulf %553, %596 : vector<2x2x128xf32>
    %598 = arith.addf %592, %597 : vector<2x2x128xf32>
    %599 = vector.extract_strided_slice %541 {offsets = [7, 0], sizes = [1, 128], strides = [1, 1]} : vector<9x128xf32> to vector<1x128xf32>
    %600 = vector.shape_cast %599 : vector<1x128xf32> to vector<128xf32>
    %601 = vector.shape_cast %600 : vector<128xf32> to vector<1x1x128xf32>
    %602 = vector.broadcast %601 : vector<1x1x128xf32> to vector<2x2x128xf32>
    %603 = arith.mulf %554, %602 : vector<2x2x128xf32>
    %604 = arith.addf %598, %603 : vector<2x2x128xf32>
    %605 = vector.extract_strided_slice %541 {offsets = [8, 0], sizes = [1, 128], strides = [1, 1]} : vector<9x128xf32> to vector<1x128xf32>
    %606 = vector.shape_cast %605 : vector<1x128xf32> to vector<128xf32>
    %607 = vector.shape_cast %606 : vector<128xf32> to vector<1x1x128xf32>
    %608 = vector.broadcast %607 : vector<1x1x128xf32> to vector<2x2x128xf32>
    %609 = arith.mulf %555, %608 : vector<2x2x128xf32>
    %610 = arith.addf %604, %609 : vector<2x2x128xf32>
    %611 = vector.shape_cast %542 : vector<1x128xf32> to vector<128xf32>
    %612 = vector.shape_cast %611 : vector<128xf32> to vector<1x1x128xf32>
    %613 = vector.broadcast %612 : vector<1x1x128xf32> to vector<2x2x128xf32>
    %614 = arith.addf %610, %613 : vector<2x2x128xf32>
    %cst_83 = arith.constant 0.000000e+00 : f32
    %615 = vector.broadcast %cst_83 : f32 to vector<2x2x128xf32>
    %616 = arith.maximumf %614, %615 : vector<2x2x128xf32>
    %c0_84 = arith.constant 0 : index
    %c0_85 = arith.constant 0 : index
    %617 = vector.load %arg22[%c0_84, %c0_85] : memref<128x128xbf16, #tpu.memory_space<vmem>>, vector<128x128xbf16>
    %c0_86 = arith.constant 0 : index
    %c0_87 = arith.constant 0 : index
    %618 = vector.load %arg23[%c0_86, %c0_87] : memref<1x128xf32, #tpu.memory_space<vmem>>, vector<1x128xf32>
    %619 = vector.shape_cast %616 : vector<2x2x128xf32> to vector<4x128xf32>
    %620 = arith.truncf %619 : vector<4x128xf32> to vector<4x128xbf16>
    %cst_88 = arith.constant dense<0.000000e+00> : vector<4x128xf32>
    %621 = tpu.matmul %620, %617, %cst_88 {dimension_numbers = #tpu.dot_dimension_numbers<[1], [0], [0], [1], [0, 0, 1, 1], [], []>} : vector<4x128xbf16>, vector<128x128xbf16>, vector<4x128xf32> -> vector<4x128xf32>
    %622 = vector.broadcast %618 : vector<1x128xf32> to vector<4x128xf32>
    %623 = arith.addf %621, %622 : vector<4x128xf32>
    %cst_89 = arith.constant 0.000000e+00 : f32
    %624 = vector.broadcast %cst_89 : f32 to vector<4x128xf32>
    %625 = arith.maximumf %623, %624 : vector<4x128xf32>
    %626 = vector.shape_cast %625 : vector<4x128xf32> to vector<2x2x128xf32>
    %c0_90 = arith.constant 0 : index
    %c0_91 = arith.constant 0 : index
    %627 = vector.load %arg24[%c0_90, %c0_91] : memref<1152x128xbf16, #tpu.memory_space<vmem>>, vector<1152x128xbf16>
    %c0_92 = arith.constant 0 : index
    %c0_93 = arith.constant 0 : index
    %628 = vector.load %arg25[%c0_92, %c0_93] : memref<1x128xf32, #tpu.memory_space<vmem>>, vector<1x128xf32>
    %cst_94 = arith.constant 0.000000e+00 : f32
    %629 = vector.broadcast %cst_94 : f32 to vector<2x1x128xf32>
    %630 = tpu.concatenate %629, %626, %629 in 1 : vector<2x1x128xf32>, vector<2x2x128xf32>, vector<2x1x128xf32> -> vector<2x4x128xf32>
    %cst_95 = arith.constant 0.000000e+00 : f32
    %631 = vector.broadcast %cst_95 : f32 to vector<1x4x128xf32>
    %632 = tpu.concatenate %631, %630, %631 in 0 : vector<1x4x128xf32>, vector<2x4x128xf32>, vector<1x4x128xf32> -> vector<4x4x128xf32>
    %633 = vector.extract_strided_slice %632 {offsets = [0, 0, 0], sizes = [2, 2, 128], strides = [1, 1, 1]} : vector<4x4x128xf32> to vector<2x2x128xf32>
    %634 = vector.extract_strided_slice %632 {offsets = [0, 1, 0], sizes = [2, 2, 128], strides = [1, 1, 1]} : vector<4x4x128xf32> to vector<2x2x128xf32>
    %635 = vector.extract_strided_slice %632 {offsets = [0, 2, 0], sizes = [2, 2, 128], strides = [1, 1, 1]} : vector<4x4x128xf32> to vector<2x2x128xf32>
    %636 = vector.extract_strided_slice %632 {offsets = [1, 0, 0], sizes = [2, 2, 128], strides = [1, 1, 1]} : vector<4x4x128xf32> to vector<2x2x128xf32>
    %637 = vector.extract_strided_slice %632 {offsets = [1, 1, 0], sizes = [2, 2, 128], strides = [1, 1, 1]} : vector<4x4x128xf32> to vector<2x2x128xf32>
    %638 = vector.extract_strided_slice %632 {offsets = [1, 2, 0], sizes = [2, 2, 128], strides = [1, 1, 1]} : vector<4x4x128xf32> to vector<2x2x128xf32>
    %639 = vector.extract_strided_slice %632 {offsets = [2, 0, 0], sizes = [2, 2, 128], strides = [1, 1, 1]} : vector<4x4x128xf32> to vector<2x2x128xf32>
    %640 = vector.extract_strided_slice %632 {offsets = [2, 1, 0], sizes = [2, 2, 128], strides = [1, 1, 1]} : vector<4x4x128xf32> to vector<2x2x128xf32>
    %641 = vector.extract_strided_slice %632 {offsets = [2, 2, 0], sizes = [2, 2, 128], strides = [1, 1, 1]} : vector<4x4x128xf32> to vector<2x2x128xf32>
    %642 = vector.shape_cast %633 : vector<2x2x128xf32> to vector<4x128xf32>
    %643 = vector.shape_cast %634 : vector<2x2x128xf32> to vector<4x128xf32>
    %644 = vector.shape_cast %635 : vector<2x2x128xf32> to vector<4x128xf32>
    %645 = vector.shape_cast %636 : vector<2x2x128xf32> to vector<4x128xf32>
    %646 = vector.shape_cast %637 : vector<2x2x128xf32> to vector<4x128xf32>
    %647 = vector.shape_cast %638 : vector<2x2x128xf32> to vector<4x128xf32>
    %648 = vector.shape_cast %639 : vector<2x2x128xf32> to vector<4x128xf32>
    %649 = vector.shape_cast %640 : vector<2x2x128xf32> to vector<4x128xf32>
    %650 = vector.shape_cast %641 : vector<2x2x128xf32> to vector<4x128xf32>
    %651 = tpu.concatenate %642, %643, %644, %645, %646, %647, %648, %649, %650 in 1 : vector<4x128xf32>, vector<4x128xf32>, vector<4x128xf32>, vector<4x128xf32>, vector<4x128xf32>, vector<4x128xf32>, vector<4x128xf32>, vector<4x128xf32>, vector<4x128xf32> -> vector<4x1152xf32>
    %652 = arith.truncf %651 : vector<4x1152xf32> to vector<4x1152xbf16>
    %cst_96 = arith.constant dense<0.000000e+00> : vector<4x128xf32>
    %653 = tpu.matmul %652, %627, %cst_96 {dimension_numbers = #tpu.dot_dimension_numbers<[1], [0], [0], [1], [0, 0, 1, 1], [], []>} : vector<4x1152xbf16>, vector<1152x128xbf16>, vector<4x128xf32> -> vector<4x128xf32>
    %654 = vector.broadcast %628 : vector<1x128xf32> to vector<4x128xf32>
    %655 = arith.addf %653, %654 : vector<4x128xf32>
    %656 = vector.shape_cast %655 : vector<4x128xf32> to vector<2x2x128xf32>
    %657 = vector.shape_cast %656 : vector<2x2x128xf32> to vector<4x128xf32>
    %c0_97 = arith.constant 0 : index
    %c0_98 = arith.constant 0 : index
    %c0_99 = arith.constant 0 : index
    %658 = vector.load %arg26[%c0_97, %c0_98, %c0_99] : memref<1x4x128xf32, #tpu.memory_space<vmem>>, vector<1x4x128xf32>
    %659 = vector.shape_cast %658 : vector<1x4x128xf32> to vector<4x128xf32>
    %660 = vector.shape_cast %657 : vector<4x128xf32> to vector<1x4x128xf32>
    tpu.vector_store %arg26[%c0_97, %c0_98, %c0_99], %660 {strides = array<i32>} : memref<1x4x128xf32, #tpu.memory_space<vmem>>, vector<1x4x128xf32>,
    return
  }
  func.func @transform_0(%arg0: i32) -> (i32, i32, i32, i32) {
    %c0_i32 = arith.constant 0 : i32
    %c0_i32_0 = arith.constant 0 : i32
    %c0_i32_1 = arith.constant 0 : i32
    %c0_i32_2 = arith.constant 0 : i32
    return %arg0, %c0_i32, %c0_i32_0, %c0_i32_1 : i32, i32, i32, i32
  }
  func.func @transform_1(%arg0: i32) -> (i32, i32, i32) {
    %c0_i32 = arith.constant 0 : i32
    %c0_i32_0 = arith.constant 0 : i32
    %c0_i32_1 = arith.constant 0 : i32
    %c0_i32_2 = arith.constant 0 : i32
    return %c0_i32, %c0_i32_0, %c0_i32_1 : i32, i32, i32
  }
  func.func @transform_2(%arg0: i32) -> (i32, i32) {
    %c0_i32 = arith.constant 0 : i32
    %c0_i32_0 = arith.constant 0 : i32
    %c0_i32_1 = arith.constant 0 : i32
    return %c0_i32, %c0_i32_0 : i32, i32
  }
  func.func @transform_3(%arg0: i32) -> (i32, i32) {
    %c0_i32 = arith.constant 0 : i32
    %c0_i32_0 = arith.constant 0 : i32
    %c0_i32_1 = arith.constant 0 : i32
    return %c0_i32, %c0_i32_0 : i32, i32
  }
  func.func @transform_4(%arg0: i32) -> (i32, i32) {
    %c0_i32 = arith.constant 0 : i32
    %c0_i32_0 = arith.constant 0 : i32
    %c0_i32_1 = arith.constant 0 : i32
    return %c0_i32, %c0_i32_0 : i32, i32
  }
  func.func @transform_5(%arg0: i32) -> (i32, i32) {
    %c0_i32 = arith.constant 0 : i32
    %c0_i32_0 = arith.constant 0 : i32
    %c0_i32_1 = arith.constant 0 : i32
    return %c0_i32, %c0_i32_0 : i32, i32
  }
  func.func @transform_6(%arg0: i32) -> (i32, i32) {
    %c0_i32 = arith.constant 0 : i32
    %c0_i32_0 = arith.constant 0 : i32
    %c0_i32_1 = arith.constant 0 : i32
    return %c0_i32, %c0_i32_0 : i32, i32
  }
  func.func @transform_7(%arg0: i32) -> (i32, i32) {
    %c0_i32 = arith.constant 0 : i32
    %c0_i32_0 = arith.constant 0 : i32
    %c0_i32_1 = arith.constant 0 : i32
    return %c0_i32, %c0_i32_0 : i32, i32
  }
  func.func @transform_8(%arg0: i32) -> (i32, i32) {
    %c0_i32 = arith.constant 0 : i32
    %c0_i32_0 = arith.constant 0 : i32
    %c0_i32_1 = arith.constant 0 : i32
    return %c0_i32, %c0_i32_0 : i32, i32
  }
  func.func @transform_9(%arg0: i32) -> (i32, i32) {
    %c0_i32 = arith.constant 0 : i32
    %c0_i32_0 = arith.constant 0 : i32
    %c0_i32_1 = arith.constant 0 : i32
    return %c0_i32, %c0_i32_0 : i32, i32
  }
  func.func @transform_10(%arg0: i32) -> (i32, i32) {
    %c0_i32 = arith.constant 0 : i32
    %c0_i32_0 = arith.constant 0 : i32
    %c0_i32_1 = arith.constant 0 : i32
    return %c0_i32, %c0_i32_0 : i32, i32
  }
  func.func @transform_11(%arg0: i32) -> (i32, i32) {
    %c0_i32 = arith.constant 0 : i32
    %c0_i32_0 = arith.constant 0 : i32
    %c0_i32_1 = arith.constant 0 : i32
    return %c0_i32, %c0_i32_0 : i32, i32
  }
  func.func @transform_12(%arg0: i32) -> (i32, i32) {
    %c0_i32 = arith.constant 0 : i32
    %c0_i32_0 = arith.constant 0 : i32
    %c0_i32_1 = arith.constant 0 : i32
    return %c0_i32, %c0_i32_0 : i32, i32
  }
  func.func @transform_13(%arg0: i32) -> (i32, i32) {
    %c0_i32 = arith.constant 0 : i32
    %c0_i32_0 = arith.constant 0 : i32
    %c0_i32_1 = arith.constant 0 : i32
    return %c0_i32, %c0_i32_0 : i32, i32
  }
  func.func @transform_14(%arg0: i32) -> (i32, i32) {
    %c0_i32 = arith.constant 0 : i32
    %c0_i32_0 = arith.constant 0 : i32
    %c0_i32_1 = arith.constant 0 : i32
    return %c0_i32, %c0_i32_0 : i32, i32
  }
  func.func @transform_15(%arg0: i32) -> (i32, i32) {
    %c0_i32 = arith.constant 0 : i32
    %c0_i32_0 = arith.constant 0 : i32
    %c0_i32_1 = arith.constant 0 : i32
    return %c0_i32, %c0_i32_0 : i32, i32
  }
  func.func @transform_16(%arg0: i32) -> (i32, i32) {
    %c0_i32 = arith.constant 0 : i32
    %c0_i32_0 = arith.constant 0 : i32
    %c0_i32_1 = arith.constant 0 : i32
    return %c0_i32, %c0_i32_0 : i32, i32
  }
  func.func @transform_17(%arg0: i32) -> (i32, i32) {
    %c0_i32 = arith.constant 0 : i32
    %c0_i32_0 = arith.constant 0 : i32
    %c0_i32_1 = arith.constant 0 : i32
    return %c0_i32, %c0_i32_0 : i32, i32
  }
  func.func @transform_18(%arg0: i32) -> (i32, i32) {
    %c0_i32 = arith.constant 0 : i32
    %c0_i32_0 = arith.constant 0 : i32
    %c0_i32_1 = arith.constant 0 : i32
    return %c0_i32, %c0_i32_0 : i32, i32
  }
  func.func @transform_19(%arg0: i32) -> (i32, i32) {
    %c0_i32 = arith.constant 0 : i32
    %c0_i32_0 = arith.constant 0 : i32
    %c0_i32_1 = arith.constant 0 : i32
    return %c0_i32, %c0_i32_0 : i32, i32
  }
  func.func @transform_20(%arg0: i32) -> (i32, i32) {
    %c0_i32 = arith.constant 0 : i32
    %c0_i32_0 = arith.constant 0 : i32
    %c0_i32_1 = arith.constant 0 : i32
    return %c0_i32, %c0_i32_0 : i32, i32
  }
  func.func @transform_21(%arg0: i32) -> (i32, i32) {
    %c0_i32 = arith.constant 0 : i32
    %c0_i32_0 = arith.constant 0 : i32
    %c0_i32_1 = arith.constant 0 : i32
    return %c0_i32, %c0_i32_0 : i32, i32
  }
  func.func @transform_22(%arg0: i32) -> (i32, i32) {
    %c0_i32 = arith.constant 0 : i32
    %c0_i32_0 = arith.constant 0 : i32
    %c0_i32_1 = arith.constant 0 : i32
    return %c0_i32, %c0_i32_0 : i32, i32
  }
  func.func @transform_23(%arg0: i32) -> (i32, i32) {
    %c0_i32 = arith.constant 0 : i32
    %c0_i32_0 = arith.constant 0 : i32
    %c0_i32_1 = arith.constant 0 : i32
    return %c0_i32, %c0_i32_0 : i32, i32
  }
  func.func @transform_24(%arg0: i32) -> (i32, i32) {
    %c0_i32 = arith.constant 0 : i32
    %c0_i32_0 = arith.constant 0 : i32
    %c0_i32_1 = arith.constant 0 : i32
    return %c0_i32, %c0_i32_0 : i32, i32
  }
  func.func @transform_25(%arg0: i32) -> (i32, i32, i32) {
    %c0_i32 = arith.constant 0 : i32
    %c0_i32_0 = arith.constant 0 : i32
    %c0_i32_1 = arith.constant 0 : i32
    return %arg0, %c0_i32, %c0_i32_0 : i32, i32, i32
  }
}

</mosaic_0001>

<bundles_post_ra>
// kernel: object_detection_cell_forward.1
= control target key start
LH: loop header
LB: loop body
LE: loop exit
PB: predicated region body
PF: predicated region fallthrough
CT: control target
= control target key end

     0   :  { %s6174_s29 = smov 0   ;;  %s8487_s0 = inlined_call_operand.vmem [shape: f32[2,16,16,3], index: 0, kind: input, shape index: {}]   ;;  %s8488_s1 = inlined_call_operand.vmem [shape: bf16[9,3,16], index: 1, kind: input, shape index: {}]   ;;  %s8489_s2 = inlined_call_operand.vmem [shape: f32[1,16], index: 2, kind: input, shape index: {}]   ;;  %s8490_s3 = inlined_call_operand.vmem [shape: f32[9,16], index: 3, kind: input, shape index: {}]   ;;  %s8491_s4 = inlined_call_operand.vmem [shape: f32[1,16], index: 4, kind: input, shape index: {}]   ;;  %s8492_s5 = inlined_call_operand.vmem [shape: bf16[16,32], index: 5, kind: input, shape index: {}]   ;;  %s8493_s6 = inlined_call_operand.vmem [shape: f32[1,32], index: 6, kind: input, shape index: {}]   ;;  %s8494_s7 = inlined_call_operand.vmem [shape: f32[9,32], index: 7, kind: input, shape index: {}]   ;;  %s8495_s8 = inlined_call_operand.vmem [shape: f32[1,32], index: 8, kind: input, shape index: {}]   ;;  %s8496_s9 = inlined_call_operand.vmem [shape: bf16[32,64], index: 9, kind: input, shape index: {}]   ;;  %s8497_s10 = inlined_call_operand.vmem [shape: f32[1,64], index: 10, kind: input, shape index: {}]   ;;  %s8498_s11 = inlined_call_operand.vmem [shape: f32[9,64], index: 11, kind: input, shape index: {}]   ;;  %s8499_s12 = inlined_call_operand.vmem [shape: f32[1,64], index: 12, kind: input, shape index: {}]   ;;  %s8500_s13 = inlined_call_operand.vmem [shape: bf16[64,64], index: 13, kind: input, shape index: {}]   ;;  %s8501_s14 = inlined_call_operand.vmem [shape: f32[1,64], index: 14, kind: input, shape index: {}]   ;;  %s8502_s15 = inlined_call_operand.vmem [shape: f32[9,64], index: 15, kind: input, shape index: {}]   ;;  %s8503_s16 = inlined_call_operand.vmem [shape: f32[1,64], index: 16, kind: input, shape index: {}]   ;;  %s8504_s17 = inlined_call_operand.vmem [shape: bf16[64,128], index: 17, kind: input, shape index: {}]   ;;  %s8505_s18 = inlined_call_operand.vmem [shape: f32[1,128], index: 18, kind: input, shape index: {}]   ;;  %s8506_s19 = inlined_call_operand.vmem [shape: f32[9,128], index: 19, kind: input, shape index: {}]   ;;  %s8507_s20 = inlined_call_operand.vmem [shape: f32[1,128], index: 20, kind: input, shape index: {}]   ;;  %s8508_s21 = inlined_call_operand.vmem [shape: bf16[128,128], index: 21, kind: input, shape index: {}]   ;;  %s8509_s22 = inlined_call_operand.vmem [shape: f32[1,128], index: 22, kind: input, shape index: {}]   ;;  %s8510_s23 = inlined_call_operand.vmem [shape: bf16[1152,128], index: 23, kind: input, shape index: {}]   ;;  %s8511_s24 = inlined_call_operand.vmem [shape: f32[1,128], index: 24, kind: input, shape index: {}]   ;;  %s8512_s25 = inlined_call_operand.vmem [shape: f32[2,4,128], index: 25, kind: output, shape index: {}]  }
   0x1   :  { %8585 = sst [smem:[#allocation20_spill]] %s8487_s0 }
   0x2   :  { %8586 = sst [smem:[#allocation21_spill]] %s8488_s1 }
   0x3   :  { %8587 = sst [smem:[#allocation22_spill]] %s8489_s2 }
   0x4   :  { %8588 = sst [smem:[#allocation23_spill]] %s8490_s3 }
   0x5   :  { %8589 = sst [smem:[#allocation24_spill]] %s8491_s4 }
   0x6   :  { %8590 = sst [smem:[#allocation25_spill]] %s8492_s5 }
   0x7   :  { %8591 = sst [smem:[#allocation26_spill]] %s8493_s6 }
   0x8   :  { %8592 = sst [smem:[#allocation27_spill]] %s8494_s7 }
   0x9   :  { %8593 = sst [smem:[#allocation28_spill]] %s8495_s8 }
   0xa   :  { %8594 = sst [smem:[#allocation29_spill]] %s8496_s9 }
   0xb LB: > { %s5417_s2 = sadd.s32 4294967295, %s6038_s29   ;;  %p5421_p0 = scmp.ge.s32.totalorder %s6038_s29, 1  ;;  %s6038_s29 = sphi %s6174_s29, %s35_s29  }
   0xc   : > { %p687_p1 = scmp.lt.s32.totalorder %s6038_s29, 3 }
   0xe   : > { %p688_p2 = pnand %p5421_p0, %p687_p1 }
  0x10   : > { %691 = sbr.rel (%p688_p2) target bundleno = 1932 (0x78c), region = 120 }
  0x15   : > { %s8595_s7 = sld [smem:[#allocation21_spill]]  ;;  %vm838_vm0 = vcmask 1040384   ;;  %p754_p3 = scmp.lt.s32.totalorder %s5417_s2, 1  ;;  %vm1111_vm1 = vcmask 1041408   ;;  %v6040_v1 = vmov 65535   ;;  %v8517_v4 = vmov 0.0  }
  0x16   : > { %v1619_v2 = vsel %vm838_vm0, 4294967295, %v6040_v1  ;;  %v6192_v5 = vrot.slane %v8517_v4, 1  ;;  %v994_v6 = vrot.slane %v8517_v4, 2  ;;  %v1012_v7 = vrot.slane %v8517_v4, 3  ;;  %s8596_s4 = sld [smem:[#allocation20_spill]] }
  0x17   : > { %v6187_v3 = vsel %vm1111_vm1, %v1619_v2, 0  ;;  %s8753_s2 = smov (!%p754_p3, %s5417_s2), 1  ;;  %vm1121_vm2 = vcmask 1042432   ;;  %v2478_v11 = vlaneseq  ;;  %v1030_v12 = vrot.slane %v8517_v4, 4  ;;  %s8602_s0 = sld [smem:[#allocation27_spill]] }
  0x18   : > { %s5584_s1 = sshll.u32 %s8753_s2, 8  ;;  %v1102_v10 = vsel %vm838_vm0, 0.0, %v6192_v5  ;;  %vm1131_vm3 = vcmask 1043456   ;;  %v1187_v14 = vsel %vm838_vm0, %v6192_v5, %v994_v6  ;;  %v6220_v18 = vrot.slane %v8517_v4, 5  ;;  %s8703_s8 = sld [smem:[#allocation25_spill]] }
  0x19   : > { %v6210_v13 = vsel %vm1111_vm1, %v1102_v10, %v994_v6  ;;  %v6223_v19 = vrot.slane %v8517_v4, 6  ;;  %v6226_v20 = vsel %vm1111_vm1, %v1187_v14, %v1012_v7  ;;  %v6236_v28 = vrot.slane %v8517_v4, 7  ;;  %s8704_s9 = sld [smem:[#allocation23_spill]] }
  0x1a   : > { %8597 = vst [vmem:[#allocation2_spill] sm:$0xff] %v6210_v13  ;;  %8598 = vst [vmem:[#allocation3_spill] sm:$0xff] %v6226_v20  ;;  %v1122_v26 = vsel %vm1121_vm2, %v6210_v13, %v1012_v7  ;;  %vm1141_vm4 = vcmask 1044480   ;;  %vm1151_vm5 = vcmask 1045504   ;;  %v1205_v31 = vsel %vm1121_vm2, %v6226_v20, %v1030_v12  ;;  %s8713_s30 = sld [smem:[#allocation22_spill]] }
  0x1b   : > { %v797_v0 = vld [vmem:[%s8595_s7 + $0x2] sm:$0x3]  ;;  %v796_v9 = vld [vmem:[%s8595_s7] sm:$0x3]  ;;  %v6247_v32 = vshrl.u32 %v2478_v11, 7  ;;  %v6258_v35 = vsel %vm1131_vm3, %v1122_v26, %v1030_v12  ;;  %vm1161_vm6 = vcmask 1046528   ;;  %v1214_v42 = vsel %vm1131_vm3, %v1205_v31, %v6220_v18 }
  0x1c   : > { %v1622_v8 = vand.u32 %v6187_v3, %v797_v0  ;;  %s6206_s28 = scalar_lea.vmem %s8596_s4, %s5584_s1  ;;  %v6229_v21 = vand.u32 %v6187_v3, %v796_v9  ;;  %vm1606_vm7 = vcmask 23552   ;;  %v1223_v55 = vsel %vm1141_vm4, %v1214_v42, %v6223_v19  ;;  %s8731_s5 = sld [smem:[#allocation29_spill]] }
  0x1d   : > { %v766_v15 = vld [vmem:[%s6206_s28 + $0x10] sm:$0xff]  ;;  %v6216_v16 = vld [vmem:[%s6206_s28 + $0x18] sm:$0xff]  ;;  %8599 = vst [vmem:[#allocation4_spill] sm:$0xff] %v6247_v32  ;;  %v6269_v43 = vsub.s32 0, %v6247_v32  ;;  %v6277_v47 = vsub.s32 1, %v6247_v32  ;;  %v3109_v56 = vld [vmem:[%s8602_s0] sm:$0xff]  ;;  %v1232_v60 = vsel %vm1151_vm5, %v1223_v55, %v6236_v28 }
  0x1e   : > { %5926 = vmatprep.subr.bf16.mxu1 %v1622_v8  ;;  %5754 = vmatprep.subr.bf16.mxu0 %v1622_v8  ;;  %v770_v17 = vld [vmem:[%s6206_s28 + $0x30] sm:$0xff]  ;;  %v771_v22 = vld [vmem:[%s6206_s28 + $0x38] sm:$0xff]  ;;  %v842_v23 = vrot.slane %v766_v15, 7  ;;  %v8531_v24 = vrot.slane %v6216_v16, 7  ;;  %v6310_v0 = vsub.s32 2, %v6247_v32  ;;  %v1241_v12 = vsel %vm1161_vm6, %v1232_v60, 0.0 }
  0x1f   : > { %5927 = vmatpush3.bf16.msra.mxu1 %v1622_v8  ;;  %5755 = vmatpush3.bf16.msra.mxu0 %v1622_v8  ;;  %v848_v25 = vrot.slane %v770_v17, 7  ;;  %v849_v27 = vrot.slane %v771_v22, 7  ;;  %8600 = vst [vmem:[#allocation5_spill] sm:$0xff] %v6269_v43  ;;  %8601 = vst [vmem:[#allocation6_spill] sm:$0xff] %v6277_v47  ;;  %v6319_v6 = vrot.slane %v3109_v56, %v6269_v43  ;;  %v774_v8 = vld [vmem:[%s6206_s28 + $0x50] sm:$0xff]  ;;  %v775_v9 = vld [vmem:[%s6206_s28 + $0x58] sm:$0xff] }
  0x20   : > { %5764 = vmatprep.subr.bf16.mxu1 %v6229_v21  ;;  %v6240_v29 = vsel %vm838_vm0, 0.0, %v842_v23  ;;  %v6252_v33 = vsel %vm838_vm0, %v842_v23, %v8531_v24  ;;  %8603 = vst [vmem:[#allocation7_spill] sm:$0xff] %v6310_v0  ;;  %v6322_v7 = vrot.slane %v3109_v56, %v6277_v47  ;;  %v6334_v14 = vrot.slane %v3109_v56, %v6310_v0  ;;  %v778_v15 = vld [vmem:[%s6206_s28 + $0x70] sm:$0xff]  ;;  %v6338_v17 = vld [vmem:[%s6206_s28 + $0x78] sm:$0xff]  ;;  %s8743_s3 = sld [smem:[#allocation28_spill]]  ;;  %s5424_s1 = sshll.u32 %s8753_s2, 2 }
  0x21   : > { %v6243_v30 = vsel %vm838_vm0, 0.0, %v848_v25  ;;  %v6255_v34 = vsel %vm838_vm0, %v848_v25, %v849_v27  ;;  %v977_v36 = vrot.slane %v6240_v29, 1  ;;  %v8533_v38 = vrot.slane %v6240_v29, 2  ;;  %8604 = vst [vmem:[#allocation8_spill] sm:$0xff] %v6319_v6  ;;  %v782_v22 = vld [vmem:[%s6206_s28 + $0x90] sm:$0xff]  ;;  %v6351_v31 = vld [vmem:[%s6206_s28 + $0x98] sm:$0xff]  ;;  %s762_s4 = scalar_lea.vmem %s8512_s25, %s5424_s1 }
  0x22   : > { %v978_v37 = vrot.slane %v6243_v30, 1  ;;  %v8530_v39 = vrot.slane %v6243_v30, 2  ;;  %v8532_v40 = vrot.slane %v6240_v29, 3  ;;  %v8528_v41 = vrot.slane %v6243_v30, 3  ;;  %8605 = vst [vmem:[#allocation9_spill] sm:$0xff] %v6322_v7  ;;  %8606 = vst [vmem:[#allocation10_spill] sm:$0xff] %v6334_v14 }
  0x23   : > { %v6272_v44 = vsel %vm838_vm0, %v849_v27, 0.0  ;;  %v8529_v45 = vrot.slane %v6252_v33, 5  ;;  %v8525_v46 = vrot.slane %v6255_v34, 5  ;;  %v8527_v48 = vrot.slane %v6252_v33, 6  ;;  %v6365_v55 = vld [vmem:[%s6206_s28 + $0xb8] sm:$0xff]  ;;  %v790_v56 = vld [vmem:[%s6206_s28 + $0xd0] sm:$0xff] }
  0x24   : > { %v8524_v49 = vrot.slane %v6255_v34, 6  ;;  %v1171_v50 = vrot.slane %v6240_v29, 4  ;;  %v1172_v51 = vrot.slane %v6243_v30, 4  ;;  %v8526_v52 = vrot.slane %v6252_v33, 7 }
  0x25   : > { %v1188_v53 = vsel %vm838_vm0, %v977_v36, %v8533_v38  ;;  %v1189_v54 = vsel %vm838_vm0, %v978_v37, %v8530_v39  ;;  %v8522_v57 = vrot.slane %v6255_v34, 7  ;;  %v3332_v26 = vmul.f32 %v6319_v6, %v6258_v35 }
  0x26   : > { %v1197_v58 = vsel %vm1111_vm1, %v1188_v53, %v8532_v40  ;;  %v1198_v59 = vsel %vm1111_vm1, %v1189_v54, %v8528_v41  ;;  %v3344_v27 = vmul.f32 %v6322_v7, %v1214_v42  ;;  %v3356_v54 = vmul.f32 %v6334_v14, %v6258_v35 }
  0x27   : > { %v1206_v62 = vsel %vm1121_vm2, %v1197_v58, %v1171_v50  ;;  %v1207_v63 = vsel %vm1121_vm2, %v1198_v59, %v1172_v51  ;;  %v786_v50 = vld [vmem:[%s6206_s28 + $0xb0] sm:$0xff]  ;;  %vm3023_vm8 = vcmask 130048   ;;  %vm6042_vm9 = vmmov 0  }
  0x28   : > { %v1215_v1 = vsel %vm1131_vm3, %v1206_v62, %v8529_v45  ;;  %v1216_v2 = vsel %vm1131_vm3, %v1207_v63, %v8525_v46  ;;  %v3348_v59 = vadd.f32 %v3344_v27, %v3332_v26  ;;  %v3364_v62 = vrot.slane %v3356_v54, 1 }
  0x29   : > { %v1224_v10 = vsel %vm1141_vm4, %v1215_v1, %v8527_v48  ;;  %v1225_v11 = vsel %vm1141_vm4, %v1216_v2, %v8524_v49  ;;  %v854_v63 = vrot.slane %v774_v8, 7  ;;  %v855_v1 = vrot.slane %v775_v9, 7 }
  0x2a   : > { %v1233_v23 = vsel %vm1151_vm5, %v1224_v10, %v8526_v52  ;;  %v1234_v25 = vsel %vm1151_vm5, %v1225_v11, %v8522_v57  ;;  %v6374_v2 = vsel %vm838_vm0, %v6240_v29, %v977_v36  ;;  %v6378_v10 = vld [vmem:[%s6206_s28 + $0xd8] sm:$0xff]  ;;  %v860_v11 = vrot.slane %v778_v15, 7 }
  0x2b   : > { %v6356_v51 = vsel %vm1161_vm6, %v1233_v23, %v6252_v33  ;;  %v6360_v53 = vsel %vm1161_vm6, %v1234_v25, %v6255_v34  ;;  %v866_v23 = vrot.slane %v782_v22, 7  ;;  %v6385_v25 = vsel %vm838_vm0, %v6243_v30, %v978_v37 }
  0x2c   : > { %v1602_v42 = vpack.c.bf16 %v6356_v51, %v1241_v12  ;;  %v8521_v12 = vrot.slane %v6338_v17, 7  ;;  %v6387_v8 = vadd.f32 %v3364_v62, %v3348_v59  ;;  %v8520_v9 = vrot.slane %v6351_v31, 7 }
  0x2d   : > { %v872_v36 = vrot.slane %v786_v50, 7  ;;  %v6391_v26 = vsel %vm838_vm0, %v854_v63, %v855_v1  ;;  %v8519_v22 = vrot.slane %v6365_v55, 7  ;;  %v878_v27 = vrot.slane %v790_v56, 7 }
  0x2e   : > { %5756 = vmatprep.mubr.msk.bf16.mxu0 %vm1606_vm7, %v1602_v42  ;;  %8607 = vst [vmem:[#allocation11_spill] sm:$0xff] %v6387_v8  ;;  %v6396_v15 = vsel %vm838_vm0, %v860_v11, %v8521_v12  ;;  %v6402_v37 = vsel %vm838_vm0, %v866_v23, %v8520_v9  ;;  %v8523_v54 = vrot.slane %v6378_v10, 7  ;;  %v6406_v50 = vsel %vm838_vm0, 0.0, %v854_v63 }
  0x2f   : > { %v6409_v42 = vsel %vm838_vm0, 0.0, %v860_v11  ;;  %v6414_v59 = vsel %vm838_vm0, %v872_v36, %v8519_v22  ;;  %v6417_v56 = vsel %vm838_vm0, 0.0, %v866_v23  ;;  %v6420_v62 = vsel %vm838_vm0, 0.0, %v872_v36 }
  0x30   : > { %v6423_v58 = vsel %vm838_vm0, 0.0, %v878_v27  ;;  %v6428_v63 = vsel %vm838_vm0, %v878_v27, %v8523_v54  ;;  %v6431_v11 = vsel %vm838_vm0, %v855_v1, 0.0  ;;  %v979_v4 = vrot.slane %v6406_v50, 1 }
  0x31   : > { %v980_v22 = vrot.slane %v6409_v42, 1  ;;  %v981_v23 = vrot.slane %v6417_v56, 1  ;;  %v8539_v36 = vrot.slane %v6420_v62, 1  ;;  %v8543_v9 = vrot.slane %v6423_v58, 1 }
  0x32   : > { %v8534_v12 = vrot.slane %v6406_v50, 2  ;;  %v8535_v57 = vrot.slane %v6409_v42, 2  ;;  %v8536_v27 = vrot.slane %v6417_v56, 2  ;;  %v8538_v54 = vrot.slane %v6420_v62, 2 }
  0x33   : > { %v8542_v1 = vrot.slane %v6423_v58, 2  ;;  %v6470_v41 = vsel %vm838_vm0, %v6406_v50, %v979_v4  ;;  %v6474_v39 = vsel %vm838_vm0, %v6409_v42, %v980_v22  ;;  %v6478_v24 = vsel %vm838_vm0, %v6417_v56, %v981_v23 }
  0x34   : > { %v1173_v38 = vrot.slane %v6406_v50, 4  ;;  %v1174_v52 = vrot.slane %v6409_v42, 4  ;;  %v1175_v60 = vrot.slane %v6417_v56, 4  ;;  %v1176_v48 = vrot.slane %v6420_v62, 4 }
  0x35   : > { %v1177_v40 = vrot.slane %v6423_v58, 4  ;;  %v1190_v61 = vsel %vm838_vm0, %v979_v4, %v8534_v12  ;;  %v1191_v45 = vsel %vm838_vm0, %v980_v22, %v8535_v57  ;;  %v1192_v46 = vsel %vm838_vm0, %v981_v23, %v8536_v27 }
  0x36   : > { %v1193_v49 = vsel %vm838_vm0, %v8539_v36, %v8538_v54  ;;  %v1194_v4 = vsel %vm838_vm0, %v8543_v9, %v8542_v1  ;;  %v8608_v12 = vrot.slane %v6406_v50, 3  ;;  %v8609_v57 = vrot.slane %v6409_v42, 3 }
  0x37   : > { %v8610_v27 = vrot.slane %v6417_v56, 3  ;;  %v8611_v54 = vrot.slane %v6420_v62, 3  ;;  %v8612_v13 = vrot.slane %v6423_v58, 3  ;;  %vm3518_vm10 = vcmask 261120  }
  0x38   : > { %v1199_v22 = vsel %vm1111_vm1, %v1190_v61, %v8608_v12  ;;  %v1200_v23 = vsel %vm1111_vm1, %v1191_v45, %v8609_v57  ;;  %vm3830_vm11 = vcmask 523264   ;;  %vm4608_vm12 = vcmask 1042434  }
  0x39   : > { %v1201_v20 = vsel %vm1111_vm1, %v1192_v46, %v8610_v27  ;;  %v1202_v36 = vsel %vm1111_vm1, %v1193_v49, %v8611_v54  ;;  %v1203_v1 = vsel %vm1111_vm1, %v1194_v4, %v8612_v13  ;;  %v1208_v9 = vsel %vm1121_vm2, %v1199_v22, %v1173_v38  ;;  %vm4609_vm13 = vmor %vm838_vm0, %vm4608_vm12 }
  0x3a   : > { %v1209_v61 = vsel %vm1121_vm2, %v1200_v23, %v1174_v52  ;;  %v1210_v12 = vsel %vm1121_vm2, %v1201_v20, %v1175_v60  ;;  %v1211_v45 = vsel %vm1121_vm2, %v1202_v36, %v1176_v48  ;;  %v1212_v57 = vsel %vm1121_vm2, %v1203_v1, %v1177_v40  ;;  %v798_v23 = vld [vmem:[%s8595_s7 + $0x4] sm:$0x3] }
  0x3b   : > { %v8613_v46 = vrot.slane %v6391_v26, 5  ;;  %v8614_v49 = vrot.slane %v6396_v15, 5  ;;  %v8615_v13 = vrot.slane %v6402_v37, 5  ;;  %v8616_v52 = vrot.slane %v6414_v59, 5 }
  0x3c   : > { %v8617_v48 = vrot.slane %v6428_v63, 5  ;;  %v8618_v60 = vrot.slane %v6391_v26, 6  ;;  %v8619_v36 = vrot.slane %v6396_v15, 6  ;;  %v8620_v4 = vrot.slane %v6402_v37, 6 }
  0x3d   : > { %v1217_v27 = vsel %vm1131_vm3, %v1208_v9, %v8613_v46  ;;  %v1218_v54 = vsel %vm1131_vm3, %v1209_v61, %v8614_v49  ;;  %v1219_v38 = vsel %vm1131_vm3, %v1210_v12, %v8615_v13  ;;  %v1220_v20 = vsel %vm1131_vm3, %v1211_v45, %v8616_v52  ;;  %v799_v13 = vld [vmem:[%s8595_s7 + $0x6] sm:$0x3] }
  0x3e   : > { %v1221_v40 = vsel %vm1131_vm3, %v1212_v57, %v8617_v48  ;;  %v1226_v9 = vsel %vm1141_vm4, %v1217_v27, %v8618_v60  ;;  %v1227_v1 = vsel %vm1141_vm4, %v1218_v54, %v8619_v36  ;;  %v1228_v22 = vsel %vm1141_vm4, %v1219_v38, %v8620_v4 }
  0x3f   : > { %v8621_v61 = vrot.slane %v6414_v59, 6  ;;  %v8622_v45 = vrot.slane %v6428_v63, 6  ;;  %v8623_v46 = vrot.slane %v6391_v26, 7  ;;  %v8624_v49 = vrot.slane %v6396_v15, 7 }
  0x40   : > { %v8625_v38 = vrot.slane %v6402_v37, 7  ;;  %vm4610_vm14 = vcmask 1044484  }
  0x41   : > { %v1229_v12 = vsel %vm1141_vm4, %v1220_v20, %v8621_v61  ;;  %v1230_v57 = vsel %vm1141_vm4, %v1221_v40, %v8622_v45  ;;  %v1235_v27 = vsel %vm1151_vm5, %v1226_v9, %v8623_v46  ;;  %v1236_v54 = vsel %vm1151_vm5, %v1227_v1, %v8624_v49  ;;  %vm4611_vm15 = vmor %vm4609_vm13, %vm4610_vm14 }
  0x42   : > { %v1237_v52 = vsel %vm1151_vm5, %v1228_v22, %v8625_v38  ;;  %v8626_v20 = vrot.slane %v6414_v59, 7  ;;  %v8627_v40 = vrot.slane %v6428_v63, 7  ;;  %v6577_v9 = vsel %vm1161_vm6, %v1235_v27, %v6391_v26 }
  0x43   : > { %v6581_v36 = vsel %vm1161_vm6, %v1236_v54, %v6396_v15  ;;  %v6585_v1 = vsel %vm1161_vm6, %v1237_v52, %v6402_v37  ;;  %v1603_v61 = vpack.c.bf16 %v6577_v9, %v6360_v53  ;;  %v1786_v27 = vand.u32 %v6187_v3, %v798_v23 }
  0x44   : > { %v1238_v48 = vsel %vm1151_vm5, %v1229_v12, %v8626_v20  ;;  %v1239_v60 = vsel %vm1151_vm5, %v1230_v57, %v8627_v40  ;;  %v1604_v12 = vpack.c.bf16 %v6585_v1, %v6581_v36  ;;  %v8629_v49 = vrot.slane %v6240_v29, 2 }
  0x45   : > { %v6589_v4 = vsel %vm1161_vm6, %v1238_v48, %v6414_v59  ;;  %v6593_v22 = vsel %vm1161_vm6, %v1239_v60, %v6428_v63  ;;  %v1142_v38 = vsel %vm1141_vm4, %v6258_v35, %v6220_v18  ;;  %5757 = vmatmul.mubr.msk.bf16.vlgmr.msra.gmra.mxu0 %vm1606_vm7, %v1603_v61  ;;  %v8630_v52 = vrot.slane %v6240_v29, 3  ;;  %5774 = vmatprep.subr.bf16.mxu0 %v1786_v27 }
  0x46   : > { %8628 = vst [vmem:[#allocation12_spill] sm:$0xff] %v6593_v22  ;;  %v1605_v45 = vpack.c.bf16 %v6593_v22, %v6589_v4  ;;  %v1113_v54 = vsel %vm1111_vm1, %v6374_v2, %v8629_v49  ;;  %5760 = vmatprep.mubr.msk.bf16.mxu1 %vm1606_vm7, %v1604_v12  ;;  %v1152_v23 = vsel %vm1151_vm5, %v1142_v38, %v6223_v19  ;;  %v8631_v48 = vrot.slane %v6216_v16, 7  ;;  %v800_v19 = vld [vmem:[%s8595_s7 + $0x8] sm:$0x3] }
  0x47   : > { %v1123_v20 = vsel %vm1121_vm2, %v1113_v54, %v8630_v52  ;;  %v1878_v2 = vand.u32 %v6187_v3, %v799_v13  ;;  %v8632_v18 = vrot.slane %v6252_v33, 4  ;;  %v1162_v29 = vsel %vm1161_vm6, %v1152_v23, %v6236_v28  ;;  %5775 = vmatpush3.bf16.msra.mxu0 %v1786_v27 }
  0x48   : > { %v952_v40 = vsel %vm838_vm0, %v8631_v48, 0.0  ;;  %5761 = vmatmul.mubr.msk.bf16.vlgmr.msra.gmra.mxu1 %vm1606_vm7, %v1605_v45  ;;  %v8633_v61 = vrot.slane %v6243_v30, 2  ;;  %v8634_v13 = vrot.slane %v6252_v33, 5  ;;  %v1513_v45 = vrot.slane %v1162_v29, 1 }
  0x49   : > { %v1133_v35 = vsel %vm1131_vm3, %v1123_v20, %v8632_v18  ;;  %v1516_v60 = vrot.slane %v952_v40, 1  ;;  %5765 = vmatpush3.bf16.msra.mxu1 %v6229_v21  ;;  %v8635_v28 = vrot.slane %v6406_v50, 2  ;;  %v8636_v54 = vrot.slane %v6243_v30, 3 }
  0x4a   : > { %v1114_v16 = vsel %vm1111_vm1, %v6385_v25, %v8633_v61  ;;  %v1143_v12 = vsel %vm1141_vm4, %v1133_v35, %v8634_v13  ;;  %v8637_v38 = vrot.slane %v6252_v33, 6  ;;  %5784 = vmatprep.subr.bf16.mxu1 %v1878_v2  ;;  %v8638_v21 = vrot.slane %v6406_v50, 3 }
  0x4b   : > { %v1115_v49 = vsel %vm1111_vm1, %v6470_v41, %v8635_v28  ;;  %v1124_v25 = vsel %vm1121_vm2, %v1114_v16, %v8636_v54  ;;  %v8639_v20 = vrot.slane %v6255_v34, 4  ;;  %v1519_v48 = vrot.slane %v6272_v44, 1 }
  0x4c   : > { %v1153_v52 = vsel %vm1151_vm5, %v1143_v12, %v8637_v38  ;;  %v1125_v27 = vsel %vm1121_vm2, %v1115_v49, %v8638_v21  ;;  %v8640_v41 = vrot.slane %v6252_v33, 7  ;;  %v1514_v40 = vsel %vm1161_vm6, %v1513_v45, %v6192_v5 }
  0x4d   : > { %v1134_v23 = vsel %vm1131_vm3, %v1124_v25, %v8639_v20  ;;  %v8641_v18 = vrot.slane %v6391_v26, 4  ;;  %v8642_v35 = vrot.slane %v6255_v34, 5  ;;  %v8643_v33 = vrot.slane %v6391_v26, 5 }
  0x4e   : > { %v6661_v30 = vsel %vm1161_vm6, %v1153_v52, %v8640_v41  ;;  %v8644_v12 = vrot.slane %v6255_v34, 6  ;;  %v8645_v45 = vrot.slane %v6391_v26, 6  ;;  %v8646_v49 = vrot.slane %v6255_v34, 7 }
  0x4f   : > { %v1135_v50 = vsel %vm1131_vm3, %v1125_v27, %v8641_v18  ;;  %v1144_v61 = vsel %vm1141_vm4, %v1134_v23, %v8642_v35  ;;  %v1515_v16 = vrot.slane %v6661_v30, 1  ;;  %v1598_v44 = vpack.c.bf16 %v6661_v30, %v1162_v29 }
  0x50   : > { %v1145_v13 = vsel %vm1141_vm4, %v1135_v50, %v8643_v33  ;;  %v1154_v5 = vsel %vm1151_vm5, %v1144_v61, %v8644_v12  ;;  %v1522_v25 = vrot.slane %v6431_v11, 1  ;;  %v1970_v29 = vand.u32 %v6187_v3, %v800_v19 }
  0x51   : > { %v1155_v28 = vsel %vm1151_vm5, %v1145_v13, %v8645_v45  ;;  %v6685_v54 = vsel %vm1161_vm6, %v1154_v5, %v8646_v49  ;;  %5766 = vmatprep.mubr.msk.bf16.mxu1 %vm1606_vm7, %v1598_v44  ;;  %v6691_v38 = vsel %vm1161_vm6, %v1515_v16, %v1516_v60  ;;  %v8647_v52 = vmov %v8623_v46 }
  0x52   : > { %v6696_v21 = vsel %vm1161_vm6, %v1155_v28, %v8647_v52  ;;  %v1518_v27 = vrot.slane %v6685_v54, 1  ;;  %v8648_v34 = vrot.slane %v6409_v42, 2  ;;  %v1769_v11 = vpack.c.bf16 %v6691_v38, %v1514_v40  ;;  %5794 = vmatprep.subr.bf16.mxu0 %v1970_v29 }
  0x53   : > { %v1521_v19 = vrot.slane %v6696_v21, 1  ;;  %v1599_v60 = vpack.c.bf16 %v6696_v21, %v6685_v54  ;;  %v8649_v26 = vrot.slane %v6417_v56, 2  ;;  %v8650_v18 = vrot.slane %v6409_v42, 3 }
  0x54   : > { %v1116_v20 = vsel %vm1111_vm1, %v6474_v39, %v8648_v34  ;;  %v6712_v41 = vsel %vm1161_vm6, %v1518_v27, %v1519_v48  ;;  %v8651_v40 = vrot.slane %v6417_v56, 3  ;;  %v8652_v35 = vrot.slane %v6338_v17, 7  ;;  %5776 = vmatprep.mubr.msk.bf16.mxu0 %vm1606_vm7, %v1769_v11 }
  0x55   : > { %v1117_v23 = vsel %vm1111_vm1, %v6478_v24, %v8649_v26  ;;  %v1126_v39 = vsel %vm1121_vm2, %v1116_v20, %v8650_v18  ;;  %5767 = vmatmul.mubr.msk.bf16.vlgmr.msra.gmra.mxu1 %vm1606_vm7, %v1599_v60  ;;  %v6726_v24 = vsel %vm1161_vm6, %v1521_v19, %v1522_v25  ;;  %v8654_v48 = vrot.slane %v6396_v15, 4 }
  0x56   : > { %v1127_v50 = vsel %vm1121_vm2, %v1117_v23, %v8651_v40  ;;  %v958_v61 = vsel %vm838_vm0, %v8652_v35, 0.0  ;;  %8653 = vst [vmem:[#allocation13_spill] sm:$0xff] %v6726_v24  ;;  %v8655_v16 = vrot.slane %v6402_v37, 4  ;;  %v8656_v44 = vrot.slane %v6351_v31, 7  ;;  %5785 = vmatpush3.bf16.msra.mxu1 %v1878_v2  ;;  %v764_v35 = vld [vmem:[%s6206_s28] sm:$0xff] }
  0x57   : > { %v1136_v42 = vsel %vm1131_vm3, %v1126_v39, %v8654_v48  ;;  %v1770_v33 = vpack.c.bf16 %v6726_v24, %v6712_v41  ;;  %v8657_v13 = vrot.slane %v6396_v15, 5  ;;  %v8658_v5 = vrot.slane %v6402_v37, 5 }
  0x58   : > { %v1137_v56 = vsel %vm1131_vm3, %v1127_v50, %v8655_v16  ;;  %v960_v17 = vsel %vm838_vm0, %v8656_v44, 0.0  ;;  %v1525_v28 = vrot.slane %v958_v61, 1  ;;  %v8659_v49 = vrot.slane %v6396_v15, 6  ;;  %v6781_v61 = vld [vmem:[%s6206_s28 + $0x8] sm:$0xff] }
  0x59   : > { %v1146_v12 = vsel %vm1141_vm4, %v1136_v42, %v8657_v13  ;;  %v1147_v45 = vsel %vm1141_vm4, %v1137_v56, %v8658_v5  ;;  %v8660_v25 = vrot.slane %v6402_v37, 6  ;;  %v1528_v2 = vrot.slane %v960_v17, 1  ;;  %5777 = vmatmul.mubr.msk.bf16.vlgmr.msra.gmra.mxu0 %vm1606_vm7, %v1770_v33  ;;  %v768_v13 = vld [vmem:[%s6206_s28 + $0x20] sm:$0xff] }
  0x5a   : > { %v1156_v31 = vsel %vm1151_vm5, %v1146_v12, %v8659_v49  ;;  %v8661_v27 = vrot.slane %v6420_v62, 1  ;;  %v8662_v20 = vrot.slane %v6396_v15, 7  ;;  %v8663_v19 = vrot.slane %v6402_v37, 7  ;;  %5795 = vmatpush3.bf16.msra.mxu0 %v1970_v29  ;;  %v6797_v12 = vld [vmem:[%s6206_s28 + $0x28] sm:$0xff] }
  0x5b   : > { %v1157_v52 = vsel %vm1151_vm5, %v1147_v45, %v8660_v25  ;;  %v8664_v26 = vrot.slane %v6423_v58, 1  ;;  %v8665_v18 = vrot.slane %v6420_v62, 2  ;;  %v8666_v48 = vrot.slane %v6423_v58, 2 }
  0x5c   : > { %v1108_v34 = vsel %vm838_vm0, %v6420_v62, %v8661_v27  ;;  %v6759_v11 = vsel %vm1161_vm6, %v1156_v31, %v8662_v20  ;;  %v6764_v60 = vsel %vm1161_vm6, %v1157_v52, %v8663_v19  ;;  %v8667_v16 = vrot.slane %v6420_v62, 3 }
  0x5d   : > { %v1109_v23 = vsel %vm838_vm0, %v6423_v58, %v8664_v26  ;;  %v1118_v39 = vsel %vm1111_vm1, %v1108_v34, %v8665_v18  ;;  %v1524_v15 = vrot.slane %v6759_v11, 1  ;;  %v1527_v40 = vrot.slane %v6764_v60, 1 }
  0x5e   : > { %v1600_v37 = vpack.c.bf16 %v6764_v60, %v6759_v11  ;;  %v1119_v42 = vsel %vm1111_vm1, %v1109_v23, %v8666_v48  ;;  %v1128_v29 = vsel %vm1121_vm2, %v1118_v39, %v8667_v16  ;;  %v8668_v56 = vrot.slane %v6365_v55, 7 }
  0x5f   : > { %v8669_v17 = vrot.slane %v6378_v10, 7  ;;  %v6801_v5 = vsel %vm1161_vm6, %v1524_v15, %v1525_v28  ;;  %v6804_v62 = vsel %vm1161_vm6, %v1527_v40, %v1528_v2  ;;  %v8670_v45 = vrot.slane %v6423_v58, 3 }
  0x60   : > { %v962_v44 = vsel %vm838_vm0, %v8668_v56, 0.0  ;;  %5770 = vmatprep.mubr.msk.bf16.mxu1 %vm1606_vm7, %v1600_v37  ;;  %v8671_v49 = vrot.slane %v6414_v59, 4  ;;  %v1771_v31 = vpack.c.bf16 %v6804_v62, %v6801_v5  ;;  %v8672_v28 = vrot.slane %v6428_v63, 4 }
  0x61   : > { %v964_v33 = vsel %vm838_vm0, %v8669_v17, 0.0  ;;  %v1129_v55 = vsel %vm1121_vm2, %v1119_v42, %v8670_v45  ;;  %v8673_v2 = vrot.slane %v6414_v59, 5  ;;  %v8674_v27 = vrot.slane %v6428_v63, 5 }
  0x62   : > { %v1138_v10 = vsel %vm1131_vm3, %v1128_v29, %v8671_v49  ;;  %v1139_v52 = vsel %vm1131_vm3, %v1129_v55, %v8672_v28  ;;  %v8675_v20 = vrot.slane %v6414_v59, 6  ;;  %v1531_v26 = vrot.slane %v962_v44, 1  ;;  %5780 = vmatprep.mubr.msk.bf16.mxu0 %vm1606_vm7, %v1771_v31 }
  0x63   : > { %v1148_v58 = vsel %vm1141_vm4, %v1138_v10, %v8673_v2  ;;  %v1149_v34 = vsel %vm1141_vm4, %v1139_v52, %v8674_v27  ;;  %v1534_v23 = vrot.slane %v964_v33, 1  ;;  %v8676_v18 = vrot.slane %v6428_v63, 6 }
  0x64   : > { %v1158_v19 = vsel %vm1151_vm5, %v1148_v58, %v8675_v20  ;;  %v8677_v15 = vrot.slane %v6414_v59, 7  ;;  %v839_v37 = vrot.slane %v764_v35, 7  ;;  %v8547_v48 = vrot.slane %v6781_v61, 7 }
  0x65   : > { %v1159_v39 = vsel %vm1151_vm5, %v1149_v34, %v8676_v18  ;;  %v8678_v42 = vrot.slane %v6428_v63, 7  ;;  %v845_v56 = vrot.slane %v768_v13, 7  ;;  %v8546_v44 = vrot.slane %v6797_v12, 7 }
  0x66   : > { %v6835_v40 = vsel %vm1161_vm6, %v1158_v19, %v8677_v15  ;;  %v841_v35 = vsel %vm838_vm0, %v839_v37, %v8547_v48  ;;  %v935_v33 = vsel %vm838_vm0, 0.0, %v839_v37 }
  0x67   : > { %v6841_v16 = vsel %vm1161_vm6, %v1159_v39, %v8678_v42  ;;  %v1530_v29 = vrot.slane %v6835_v40, 1  ;;  %v847_v13 = vsel %vm838_vm0, %v845_v56, %v8546_v44  ;;  %v937_v45 = vsel %vm838_vm0, 0.0, %v845_v56 }
  0x68   : > { %v1533_v17 = vrot.slane %v6841_v16, 1  ;;  %v1601_v59 = vpack.c.bf16 %v6841_v16, %v6835_v40  ;;  %v1258_v55 = vrot.slane %v935_v33, 1  ;;  %v1259_v10 = vrot.slane %v937_v45, 1 }
  0x69   : > { %v6853_v63 = vsel %vm1161_vm6, %v1530_v29, %v1531_v26  ;;  %v1274_v31 = vrot.slane %v935_v33, 2  ;;  %v1275_v28 = vrot.slane %v937_v45, 2  ;;  %v1290_v2 = vrot.slane %v935_v33, 3 }
  0x6a   : > { %5771 = vmatmul.mubr.msk.bf16.gmra.mxu1 %vm1606_vm7, %v1601_v59  ;;  %v6861_v49 = vsel %vm1161_vm6, %v1533_v17, %v1534_v23  ;;  %v1291_v58 = vrot.slane %v937_v45, 3  ;;  %v1306_v27 = vrot.slane %v841_v35, 4  ;;  %v1307_v34 = vrot.slane %v847_v13, 4 }
  0x6b   : > { %8679 = vst [vmem:[#allocation14_spill] sm:$0xff] %v6861_v49  ;;  %v1772_v52 = vpack.c.bf16 %v6861_v49, %v6853_v63  ;;  %v1322_v20 = vrot.slane %v841_v35, 5  ;;  %v1323_v19 = vrot.slane %v847_v13, 5  ;;  %v1338_v26 = vrot.slane %v841_v35, 6 }
  0x6c   : > { %v1339_v18 = vrot.slane %v847_v13, 6  ;;  %v1354_v39 = vrot.slane %v841_v35, 7  ;;  %v1355_v15 = vrot.slane %v847_v13, 7  ;;  %v1370_v23 = vsel %vm838_vm0, %v935_v33, %v1258_v55 }
  0x6d   : > { %5781 = vmatmul.mubr.msk.bf16.gmra.mxu0 %vm1606_vm7, %v1772_v52  ;;  %v1371_v37 = vsel %vm838_vm0, %v937_v45, %v1259_v10  ;;  %v1378_v42 = vsel %vm1111_vm1, %v1370_v23, %v1274_v31  ;;  %v1426_v29 = vrot.slane %v935_v33, 4  ;;  %v1427_v56 = vrot.slane %v937_v45, 4 }
  0x6e   : > { %v1379_v17 = vsel %vm1111_vm1, %v1371_v37, %v1275_v28  ;;  %v1386_v59 = vsel %vm1121_vm2, %v1378_v42, %v1290_v2  ;;  %v1442_v25 = vsel %vm838_vm0, %v1258_v55, %v1274_v31  ;;  %v1443_v52 = vsel %vm838_vm0, %v1259_v10, %v1275_v28  ;;  %v801_v10 = vld [vmem:[%s8595_s7 + $0xa] sm:$0x3]  ;;  %v772_v31 = vld [vmem:[%s6206_s28 + $0x40] sm:$0xff] }
  0x6f   : > { %v1387_v46 = vsel %vm1121_vm2, %v1379_v17, %v1291_v58  ;;  %v1394_v57 = vsel %vm1131_vm3, %v1386_v59, %v1306_v27  ;;  %v1450_v23 = vsel %vm1111_vm1, %v1442_v25, %v1290_v2  ;;  %v1451_v33 = vsel %vm1111_vm1, %v1443_v52, %v1291_v58  ;;  %v6886_v28 = vld [vmem:[%s6206_s28 + $0x48] sm:$0xff]  ;;  %v776_v58 = vld [vmem:[%s6206_s28 + $0x60] sm:$0xff] }
  0x70   : > { %v1395_v45 = vsel %vm1131_vm3, %v1387_v46, %v1307_v34  ;;  %v1402_v37 = vsel %vm1141_vm4, %v1394_v57, %v1322_v20  ;;  %v1458_v42 = vsel %vm1121_vm2, %v1450_v23, %v1426_v29  ;;  %v1459_v55 = vsel %vm1121_vm2, %v1451_v33, %v1427_v56  ;;  %v6894_v27 = vld [vmem:[%s6206_s28 + $0x68] sm:$0xff]  ;;  %v6900_v29 = vld [vmem:[%s6206_s28 + $0x80] sm:$0xff] }
  0x71   : > { %v1403_v25 = vsel %vm1141_vm4, %v1395_v45, %v1323_v19  ;;  %v1410_v2 = vsel %vm1151_vm5, %v1402_v37, %v1338_v26  ;;  %v1466_v46 = vsel %vm1131_vm3, %v1458_v42, %v1322_v20  ;;  %v1467_v57 = vsel %vm1131_vm3, %v1459_v55, %v1323_v19  ;;  %v802_v34 = vld [vmem:[%s8595_s7 + $0xc] sm:$0x3]  ;;  %v6922_v55 = vld [vmem:[%s6206_s28 + $0xa0] sm:$0xff] }
  0x72   : > { %v1411_v56 = vsel %vm1151_vm5, %v1403_v25, %v1339_v18  ;;  %v6904_v17 = vsel %vm1161_vm6, %v1410_v2, %v1354_v39  ;;  %v1474_v59 = vsel %vm1141_vm4, %v1466_v46, %v1338_v26  ;;  %v1475_v20 = vsel %vm1141_vm4, %v1467_v57, %v1339_v18  ;;  %v6914_v33 = vld [vmem:[%s6206_s28 + $0x88] sm:$0xff] }
  0x73   : > { %v6909_v19 = vsel %vm1161_vm6, %v1411_v56, %v1355_v15  ;;  %v1482_v52 = vsel %vm1151_vm5, %v1474_v59, %v1354_v39  ;;  %v1483_v23 = vsel %vm1151_vm5, %v1475_v20, %v1355_v15  ;;  %v6925_v25 = vand.u32 %v6187_v3, %v801_v10 }
  0x74   : > { %v1861_v37 = vpack.c.bf16 %v6909_v19, %v6904_v17  ;;  %v1490_v42 = vsel %vm1161_vm6, %v1482_v52, %v841_v35  ;;  %v1491_v26 = vsel %vm1161_vm6, %v1483_v23, %v847_v13  ;;  %v851_v39 = vrot.slane %v772_v31, 7 }
  0x75   : > { %v1953_v18 = vpack.c.bf16 %v1491_v26, %v1490_v42  ;;  %v8544_v15 = vrot.slane %v6886_v28, 7  ;;  %v857_v2 = vrot.slane %v776_v58, 7  ;;  %v8545_v46 = vrot.slane %v6894_v27, 7  ;;  %5804 = vmatprep.subr.bf16.mxu1 %v6925_v25 }
  0x76   : > { %5786 = vmatprep.mubr.msk.bf16.mxu1 %vm1606_vm7, %v1861_v37  ;;  %v6931_v57 = vand.u32 %v6187_v3, %v802_v34  ;;  %v863_v35 = vrot.slane %v6900_v29, 7  ;;  %v939_v10 = vsel %vm838_vm0, 0.0, %v851_v39  ;;  %v869_v58 = vrot.slane %v6922_v55, 7 }
  0x77   : > { %5796 = vmatprep.mubr.msk.bf16.mxu0 %vm1606_vm7, %v1953_v18  ;;  %v853_v13 = vsel %vm838_vm0, %v851_v39, %v8544_v15  ;;  %v859_v34 = vsel %vm838_vm0, %v857_v2, %v8545_v46  ;;  %v941_v29 = vsel %vm838_vm0, 0.0, %v857_v2  ;;  %v1260_v56 = vrot.slane %v939_v10, 1 }
  0x78   : > { %v1276_v59 = vrot.slane %v939_v10, 2  ;;  %5814 = vmatprep.subr.bf16.mxu0 %v6931_v57  ;;  %v1261_v20 = vrot.slane %v941_v29, 1  ;;  %v1277_v52 = vrot.slane %v941_v29, 2  ;;  %v1292_v23 = vrot.slane %v939_v10, 3 }
  0x79   : > { %v1293_v37 = vrot.slane %v941_v29, 3  ;;  %v1308_v42 = vrot.slane %v853_v13, 4  ;;  %v1309_v26 = vrot.slane %v859_v34, 4  ;;  %v1324_v18 = vrot.slane %v853_v13, 5 }
  0x7a   : > { %v1325_v39 = vrot.slane %v859_v34, 5  ;;  %v1340_v50 = vrot.slane %v853_v13, 6  ;;  %v1341_v55 = vrot.slane %v859_v34, 6  ;;  %v1356_v15 = vrot.slane %v853_v13, 7 }
  0x7b   : > { %v1357_v45 = vrot.slane %v859_v34, 7  ;;  %v1372_v46 = vsel %vm838_vm0, %v939_v10, %v1260_v56  ;;  %v1373_v2 = vsel %vm838_vm0, %v941_v29, %v1261_v20  ;;  %v1428_v44 = vrot.slane %v939_v10, 4 }
  0x7c   : > { %v1429_v48 = vrot.slane %v941_v29, 4  ;;  %v1380_v31 = vsel %vm1111_vm1, %v1372_v46, %v1276_v59  ;;  %v1381_v14 = vsel %vm1111_vm1, %v1373_v2, %v1277_v52  ;;  %v1444_v7 = vsel %vm838_vm0, %v1260_v56, %v1276_v59  ;;  %v6962_v2 = vld [vmem:[%s6206_s28 + $0xa8] sm:$0xff] }
  0x7d   : > { %v1445_v6 = vsel %vm838_vm0, %v1261_v20, %v1277_v52  ;;  %v1388_v8 = vsel %vm1121_vm2, %v1380_v31, %v1292_v23  ;;  %v1389_v32 = vsel %vm1121_vm2, %v1381_v14, %v1293_v37  ;;  %v1452_v0 = vsel %vm1111_vm1, %v1444_v7, %v1292_v23 }
  0x7e   : > { %v1453_v43 = vsel %vm1111_vm1, %v1445_v6, %v1293_v37  ;;  %v1396_v47 = vsel %vm1131_vm3, %v1388_v8, %v1308_v42  ;;  %v1397_v10 = vsel %vm1131_vm3, %v1389_v32, %v1309_v26  ;;  %v1460_v46 = vsel %vm1121_vm2, %v1452_v0, %v1428_v44 }
  0x7f   : > { %v1461_v29 = vsel %vm1121_vm2, %v1453_v43, %v1429_v48  ;;  %v1404_v56 = vsel %vm1141_vm4, %v1396_v47, %v1324_v18  ;;  %v1405_v31 = vsel %vm1141_vm4, %v1397_v10, %v1325_v39  ;;  %v1468_v14 = vsel %vm1131_vm3, %v1460_v46, %v1324_v18 }
  0x80   : > { %v1469_v7 = vsel %vm1131_vm3, %v1461_v29, %v1325_v39  ;;  %v1412_v6 = vsel %vm1151_vm5, %v1404_v56, %v1340_v50  ;;  %v1413_v8 = vsel %vm1151_vm5, %v1405_v31, %v1341_v55  ;;  %v1476_v32 = vsel %vm1141_vm4, %v1468_v14, %v1340_v50 }
  0x81   : > { %v1477_v0 = vsel %vm1141_vm4, %v1469_v7, %v1341_v55  ;;  %v6973_v43 = vsel %vm1161_vm6, %v1412_v6, %v1356_v15  ;;  %v6976_v48 = vsel %vm1161_vm6, %v1413_v8, %v1357_v45  ;;  %v1484_v47 = vsel %vm1151_vm5, %v1476_v32, %v1356_v15 }
  0x82   : > { %v1485_v44 = vsel %vm1151_vm5, %v1477_v0, %v1357_v45  ;;  %v1862_v52 = vpack.c.bf16 %v6976_v48, %v6973_v43  ;;  %v1492_v50 = vsel %vm1161_vm6, %v1484_v47, %v853_v13  ;;  %v8680_v37 = vrot.slane %v6914_v33, 7 }
  0x83   : > { %v1493_v23 = vsel %vm1161_vm6, %v1485_v44, %v859_v34  ;;  %v8564_v26 = vrot.slane %v6962_v2, 7  ;;  %v943_v15 = vsel %vm838_vm0, 0.0, %v863_v35  ;;  %v945_v18 = vsel %vm838_vm0, 0.0, %v869_v58 }
  0x84   : > { %v865_v42 = vsel %vm838_vm0, %v863_v35, %v8680_v37  ;;  %5787 = vmatmul.mubr.msk.bf16.vlgmr.msra.gmra.mxu1 %vm1606_vm7, %v1862_v52  ;;  %v1954_v45 = vpack.c.bf16 %v1493_v23, %v1492_v50  ;;  %v1262_v39 = vrot.slane %v943_v15, 1  ;;  %v1278_v55 = vrot.slane %v943_v15, 2 }
  0x85   : > { %5805 = vmatpush3.bf16.msra.mxu1 %v6925_v25  ;;  %v871_v13 = vsel %vm838_vm0, %v869_v58, %v8564_v26  ;;  %v1263_v34 = vrot.slane %v945_v18, 1  ;;  %v1279_v10 = vrot.slane %v945_v18, 2  ;;  %v1294_v46 = vrot.slane %v943_v15, 3 }
  0x86   : > { %5797 = vmatmul.mubr.msk.bf16.vlgmr.msra.gmra.mxu0 %vm1606_vm7, %v1954_v45  ;;  %v1295_v29 = vrot.slane %v945_v18, 3  ;;  %v1310_v35 = vrot.slane %v865_v42, 4  ;;  %v1311_v56 = vrot.slane %v871_v13, 4  ;;  %v1326_v31 = vrot.slane %v865_v42, 5 }
  0x87   : > { %5815 = vmatpush3.bf16.msra.mxu0 %v6931_v57  ;;  %v1327_v14 = vrot.slane %v871_v13, 5  ;;  %v1342_v7 = vrot.slane %v865_v42, 6  ;;  %v1343_v6 = vrot.slane %v871_v13, 6  ;;  %v1358_v8 = vrot.slane %v865_v42, 7 }
  0x88   : > { %v1359_v25 = vrot.slane %v871_v13, 7  ;;  %v1374_v32 = vsel %vm838_vm0, %v943_v15, %v1262_v39  ;;  %v1375_v58 = vsel %vm838_vm0, %v945_v18, %v1263_v34  ;;  %v1430_v0 = vrot.slane %v943_v15, 4 }
  0x89   : > { %v1382_v47 = vsel %vm1111_vm1, %v1374_v32, %v1278_v55  ;;  %v1383_v44 = vsel %vm1111_vm1, %v1375_v58, %v1279_v10  ;;  %v1431_v52 = vrot.slane %v945_v18, 4  ;;  %v1446_v50 = vsel %vm838_vm0, %v1262_v39, %v1278_v55 }
  0x8a   : > { %v1390_v23 = vsel %vm1121_vm2, %v1382_v47, %v1294_v46  ;;  %v1391_v57 = vsel %vm1121_vm2, %v1383_v44, %v1295_v29  ;;  %v1447_v37 = vsel %vm838_vm0, %v1263_v34, %v1279_v10  ;;  %v1454_v45 = vsel %vm1111_vm1, %v1446_v50, %v1294_v46  ;;  %v7022_v47 = vld [vmem:[%s6206_s28 + $0xc8] sm:$0xff] }
  0x8b   : > { %v1398_v20 = vsel %vm1131_vm3, %v1390_v23, %v1310_v35  ;;  %v1399_v15 = vsel %vm1131_vm3, %v1391_v57, %v1311_v56  ;;  %v1455_v32 = vsel %vm1111_vm1, %v1447_v37, %v1295_v29  ;;  %v1462_v18 = vsel %vm1121_vm2, %v1454_v45, %v1430_v0  ;;  %v788_v56 = vld [vmem:[%s6206_s28 + $0xc0] sm:$0xff]  ;;  %v7034_v50 = vld [vmem:[%s6206_s28 + $0xe8] sm:$0xff] }
  0x8c   : > { %v1406_v39 = vsel %vm1141_vm4, %v1398_v20, %v1326_v31  ;;  %v1407_v55 = vsel %vm1141_vm4, %v1399_v15, %v1327_v14  ;;  %v1463_v58 = vsel %vm1121_vm2, %v1455_v32, %v1431_v52  ;;  %v1470_v34 = vsel %vm1131_vm3, %v1462_v18, %v1326_v31  ;;  %v792_v52 = vld [vmem:[%s6206_s28 + $0xe0] sm:$0xff] }
  0x8d   : > { %v1414_v10 = vsel %vm1151_vm5, %v1406_v39, %v1342_v7  ;;  %v1415_v46 = vsel %vm1151_vm5, %v1407_v55, %v1343_v6  ;;  %v1471_v35 = vsel %vm1131_vm3, %v1463_v58, %v1327_v14  ;;  %v1478_v29 = vsel %vm1141_vm4, %v1470_v34, %v1342_v7 }
  0x8e   : > { %v7025_v0 = vsel %vm1161_vm6, %v1414_v10, %v1358_v8  ;;  %v7028_v20 = vsel %vm1161_vm6, %v1415_v46, %v1359_v25  ;;  %v1479_v44 = vsel %vm1141_vm4, %v1471_v35, %v1343_v6  ;;  %v1486_v31 = vsel %vm1151_vm5, %v1478_v29, %v1358_v8 }
  0x8f   : > { %v1863_v23 = vpack.c.bf16 %v7028_v20, %v7025_v0  ;;  %v1487_v57 = vsel %vm1151_vm5, %v1479_v44, %v1359_v25  ;;  %v1494_v37 = vsel %vm1161_vm6, %v1486_v31, %v865_v42  ;;  %v875_v15 = vrot.slane %v788_v56, 7 }
  0x90   : > { %v1495_v45 = vsel %vm1161_vm6, %v1487_v57, %v871_v13  ;;  %v8563_v6 = vrot.slane %v7022_v47, 7  ;;  %v881_v32 = vrot.slane %v792_v52, 7  ;;  %v8562_v18 = vrot.slane %v7034_v50, 7 }
  0x91   : > { %5790 = vmatprep.mubr.msk.bf16.mxu1 %vm1606_vm7, %v1863_v23  ;;  %v1955_v8 = vpack.c.bf16 %v1495_v45, %v1494_v37  ;;  %v8681_v39 = vrot.slane %v6781_v61, 7  ;;  %v947_v42 = vsel %vm838_vm0, 0.0, %v875_v15  ;;  %v8682_v13 = vrot.slane %v6797_v12, 7 }
  0x92   : > { %v877_v25 = vsel %vm838_vm0, %v875_v15, %v8563_v6  ;;  %v883_v61 = vsel %vm838_vm0, %v881_v32, %v8562_v18  ;;  %v949_v10 = vsel %vm838_vm0, 0.0, %v881_v32  ;;  %v1264_v46 = vrot.slane %v947_v42, 1 }
  0x93   : > { %v951_v55 = vsel %vm838_vm0, %v8681_v39, 0.0  ;;  %v7056_v58 = vsel %vm838_vm0, %v8682_v13, 0.0  ;;  %5800 = vmatprep.mubr.msk.bf16.mxu0 %vm1606_vm7, %v1955_v8  ;;  %v1280_v35 = vrot.slane %v947_v42, 2  ;;  %v1265_v29 = vrot.slane %v949_v10, 1 }
  0x94   : > { %v1561_v34 = vrot.slane %v951_v55, 1  ;;  %v1281_v56 = vrot.slane %v949_v10, 2  ;;  %v1296_v44 = vrot.slane %v947_v42, 3  ;;  %v1297_v31 = vrot.slane %v949_v10, 3 }
  0x95   : > { %v1312_v52 = vrot.slane %v877_v25, 4  ;;  %v1313_v12 = vrot.slane %v883_v61, 4  ;;  %v1328_v23 = vrot.slane %v877_v25, 5  ;;  %v1329_v57 = vrot.slane %v883_v61, 5 }
  0x96   : > { %v1344_v37 = vrot.slane %v877_v25, 6  ;;  %v1345_v45 = vrot.slane %v883_v61, 6  ;;  %v1360_v15 = vrot.slane %v877_v25, 7  ;;  %v1361_v8 = vrot.slane %v883_v61, 7 }
  0x97   : > { %v1376_v39 = vsel %vm838_vm0, %v947_v42, %v1264_v46  ;;  %v1377_v55 = vsel %vm838_vm0, %v949_v10, %v1265_v29  ;;  %v1432_v13 = vrot.slane %v947_v42, 4  ;;  %v1433_v32 = vrot.slane %v949_v10, 4 }
  0x98   : > { %v1384_v7 = vsel %vm1111_vm1, %v1376_v39, %v1280_v35  ;;  %v1385_v18 = vsel %vm1111_vm1, %v1377_v55, %v1281_v56  ;;  %v1448_v6 = vsel %vm838_vm0, %v1264_v46, %v1280_v35  ;;  %v1449_v14 = vsel %vm838_vm0, %v1265_v29, %v1281_v56  ;;  %v803_v56 = vld [vmem:[%s8595_s7 + $0xe] sm:$0x3] }
  0x99   : > { %v1392_v26 = vsel %vm1121_vm2, %v1384_v7, %v1296_v44  ;;  %v1393_v59 = vsel %vm1121_vm2, %v1385_v18, %v1297_v31  ;;  %v1456_v49 = vsel %vm1111_vm1, %v1448_v6, %v1296_v44  ;;  %v1457_v22 = vsel %vm1111_vm1, %v1449_v14, %v1297_v31 }
  0x9a   : > { %v1400_v24 = vsel %vm1131_vm3, %v1392_v26, %v1312_v52  ;;  %v1401_v42 = vsel %vm1131_vm3, %v1393_v59, %v1313_v12  ;;  %v1464_v10 = vsel %vm1121_vm2, %v1456_v49, %v1432_v13  ;;  %v1465_v39 = vsel %vm1121_vm2, %v1457_v22, %v1433_v32 }
  0x9b   : > { %v1408_v46 = vsel %vm1141_vm4, %v1400_v24, %v1328_v23  ;;  %v1409_v35 = vsel %vm1141_vm4, %v1401_v42, %v1329_v57  ;;  %v1472_v7 = vsel %vm1131_vm3, %v1464_v10, %v1328_v23  ;;  %v1473_v18 = vsel %vm1131_vm3, %v1465_v39, %v1329_v57  ;;  %v804_v23 = vld [vmem:[%s8595_s7 + $0x10] sm:$0x3] }
  0x9c   : > { %v1416_v6 = vsel %vm1151_vm5, %v1408_v46, %v1344_v37  ;;  %v1417_v14 = vsel %vm1151_vm5, %v1409_v35, %v1345_v45  ;;  %v1480_v26 = vsel %vm1141_vm4, %v1472_v7, %v1344_v37  ;;  %v1481_v59 = vsel %vm1141_vm4, %v1473_v18, %v1345_v45  ;;  %v794_v42 = vld [vmem:[%s6206_s28 + $0xf0] sm:$0xff] }
  0x9d   : > { %v1424_v49 = vsel %vm1161_vm6, %v1416_v6, %v1360_v15  ;;  %v1425_v22 = vsel %vm1161_vm6, %v1417_v14, %v1361_v8  ;;  %v1488_v24 = vsel %vm1151_vm5, %v1480_v26, %v1360_v15  ;;  %v1489_v29 = vsel %vm1151_vm5, %v1481_v59, %v1361_v8 }
  0x9e   : > { %v1575_v44 = vrot.slane %v7028_v20, 1  ;;  %v1578_v31 = vrot.slane %v1424_v49, 1  ;;  %v1864_v52 = vpack.c.bf16 %v1425_v22, %v1424_v49  ;;  %v1496_v12 = vsel %vm1161_vm6, %v1488_v24, %v877_v25 }
  0x9f   : > { %v1497_v57 = vsel %vm1161_vm6, %v1489_v29, %v883_v61  ;;  %v8683_v37 = vrot.slane %v6904_v17, 1  ;;  %v1564_v15 = vrot.slane %v7056_v58, 1  ;;  %v2137_v20 = vpack.c.bf16 %v6685_v54, %v6661_v30 }
  0xa0   : > { %5791 = vmatmul.mubr.msk.bf16.gmra.mxu1 %vm1606_vm7, %v1864_v52  ;;  %v1956_v8 = vpack.c.bf16 %v1497_v57, %v1496_v12  ;;  %v2246_v25 = vand.u32 %v6187_v3, %v803_v56  ;;  %v8684_v55 = vrot.slane %v6886_v28, 7  ;;  %v8685_v61 = vrot.slane %v6894_v27, 7 }
  0xa1   : > { %v1562_v45 = vsel %vm1161_vm6, %v8683_v37, %v1561_v34  ;;  %v8686_v34 = vrot.slane %v6909_v19, 1  ;;  %v2338_v54 = vand.u32 %v6187_v3, %v804_v23  ;;  %v1581_v10 = vrot.slane %v1425_v22, 1 }
  0xa2   : > { %v955_v13 = vsel %vm838_vm0, %v8684_v55, 0.0  ;;  %v957_v17 = vsel %vm838_vm0, %v8685_v61, 0.0  ;;  %5801 = vmatmul.mubr.msk.bf16.gmra.mxu0 %vm1606_vm7, %v1956_v8  ;;  %5824 = vmatprep.subr.bf16.mxu1 %v2246_v25  ;;  %v8687_v39 = vrot.slane %v6914_v33, 7  ;;  %v8688_v46 = vrot.slane %v6962_v2, 7  ;;  %v795_v33 = vld [vmem:[%s6206_s28 + $0xf8] sm:$0xff]  ;;  %s8733_s28 = sld [smem:[#allocation26_spill]] }
  0xa3   : > { %v1565_v58 = vsel %vm1161_vm6, %v8686_v34, %v1564_v15  ;;  %v1567_v32 = vrot.slane %v955_v13, 1  ;;  %v1570_v30 = vrot.slane %v957_v17, 1  ;;  %5816 = vmatprep.mubr.msk.bf16.mxu0 %vm1606_vm7, %v2137_v20  ;;  %v8689_v35 = vrot.slane %v6973_v43, 1  ;;  %5834 = vmatprep.subr.bf16.mxu0 %v2338_v54 }
  0xa4   : > { %v2045_v28 = vpack.c.bf16 %v1565_v58, %v1562_v45  ;;  %v959_v27 = vsel %vm838_vm0, %v8687_v39, 0.0  ;;  %v961_v19 = vsel %vm838_vm0, %v8688_v46, 0.0  ;;  %v8690_v7 = vrot.slane %v6976_v48, 1 }
  0xa5   : > { %v1568_v3 = vsel %vm1161_vm6, %v8689_v35, %v1567_v32  ;;  %v1573_v6 = vrot.slane %v959_v27, 1  ;;  %v1576_v14 = vrot.slane %v961_v19, 1  ;;  %v8691_v2 = vrot.slane %v7022_v47, 7 }
  0xa6   : > { %v1571_v18 = vsel %vm1161_vm6, %v8690_v7, %v1570_v30  ;;  %5806 = vmatprep.mubr.msk.bf16.mxu1 %vm1606_vm7, %v2045_v28  ;;  %v8692_v49 = vrot.slane %v7034_v50, 7  ;;  %v884_v22 = vrot.slane %v794_v42, 7  ;;  %v8693_v48 = vrot.slane %v7025_v0, 1  ;;  %v8699_v7 = vld [vmem:[#allocation13_spill] sm:$0xff] }
  0xa7   : > { %v2046_v26 = vpack.c.bf16 %v1571_v18, %v1568_v3  ;;  %v963_v59 = vsel %vm838_vm0, %v8691_v2, 0.0  ;;  %v1577_v29 = vsel %vm1161_vm6, %v1575_v44, %v1576_v14  ;;  %v885_v23 = vrot.slane %v795_v33, 7 }
  0xa8   : > { %v965_v43 = vsel %vm838_vm0, %v8692_v49, 0.0  ;;  %v1574_v24 = vsel %vm1161_vm6, %v8693_v48, %v1573_v6  ;;  %v1579_v56 = vrot.slane %v963_v59, 1  ;;  %v950_v57 = vsel %vm838_vm0, 0.0, %v884_v22 }
  0xa9   : > { %v1582_v52 = vrot.slane %v965_v43, 1  ;;  %v2047_v12 = vpack.c.bf16 %v1577_v29, %v1574_v24  ;;  %v2139_v47 = vpack.c.bf16 %v6835_v40, %v6764_v60  ;;  %v984_v37 = vrot.slane %v950_v57, 1  ;;  %5807 = vmatmul.mubr.msk.bf16.vlgmr.msra.gmra.mxu1 %vm1606_vm7, %v2046_v26 }
  0xaa   : > { %v1002_v50 = vrot.slane %v950_v57, 2  ;;  %v886_v45 = vsel %vm838_vm0, %v884_v22, %v885_v23  ;;  %v1020_v0 = vrot.slane %v950_v57, 3  ;;  %5825 = vmatpush3.bf16.msra.mxu1 %v2246_v25  ;;  %v1580_v44 = vsel %vm1161_vm6, %v1578_v31, %v1579_v56 }
  0xab   : > { %5810 = vmatprep.mubr.msk.bf16.mxu1 %vm1606_vm7, %v2047_v12  ;;  %v1583_v15 = vsel %vm1161_vm6, %v1581_v10, %v1582_v52  ;;  %v1038_v20 = vrot.slane %v886_v45, 4  ;;  %v8694_v8 = vpack.c.bf16 %v6759_v11, %v6696_v21  ;;  %v1056_v60 = vrot.slane %v886_v45, 5 }
  0xac   : > { %v1110_v40 = vsel %vm838_vm0, %v950_v57, %v984_v37  ;;  %v1178_v55 = vrot.slane %v950_v57, 4  ;;  %v1195_v13 = vsel %vm838_vm0, %v984_v37, %v1002_v50  ;;  %v1074_v25 = vrot.slane %v886_v45, 6 }
  0xad   : > { %5817 = vmatmul.mubr.msk.bf16.vlgmr.msra.gmra.mxu0 %vm1606_vm7, %v8694_v8  ;;  %v1120_v31 = vsel %vm1111_vm1, %v1110_v40, %v1002_v50  ;;  %v1204_v61 = vsel %vm1111_vm1, %v1195_v13, %v1020_v0  ;;  %v2048_v17 = vpack.c.bf16 %v1583_v15, %v1580_v44  ;;  %v1092_v34 = vrot.slane %v886_v45, 7 }
  0xae   : > { %5835 = vmatpush3.bf16.msra.mxu0 %v2338_v54  ;;  %5820 = vmatprep.mubr.msk.bf16.mxu0 %vm1606_vm7, %v2139_v47  ;;  %v1130_v21 = vsel %vm1121_vm2, %v1120_v31, %v1020_v0  ;;  %v8695_v11 = vmov 0.0   ;;  %v1213_v32 = vsel %vm1121_vm2, %v1204_v61, %v1178_v55  ;;  %v2321_v10 = vpack.c.bf16 %v6712_v41, %v6691_v38  ;;  %v5940_v0 = vld [vmem:[%s8703_s8] sm:$0xff]   ;;  %s8721_s8 = sld [smem:[#allocation24_spill]] }
  0xaf   : > { %5854 = vmatprep.subr.bf16.mxu0 %v8695_v11  ;;  %v1140_v58 = vsel %vm1131_vm3, %v1130_v21, %v1038_v20  ;;  %v1222_v28 = vsel %vm1131_vm3, %v1213_v32, %v1056_v60  ;;  %v8696_v27 = vpack.c.bf16 %v6360_v53, %v6356_v51  ;;  %v966_v19 = vsel %vm838_vm0, %v885_v23, 0.0  ;;  %5844 = vmatprep.subr.bf16.mxu1 %v5940_v0 }
  0xb0   : > { %v1150_v30 = vsel %vm1141_vm4, %v1140_v58, %v1056_v60  ;;  %v1231_v46 = vsel %vm1141_vm4, %v1222_v28, %v1074_v25  ;;  %v8697_v41 = vpack.c.bf16 %v6581_v36, %v6577_v9  ;;  %v2323_v51 = vpack.c.bf16 %v6853_v63, %v6804_v62  ;;  %v8701_v9 = vld [vmem:[#allocation12_spill] sm:$0xff]  ;;  %v8702_v62 = vld [vmem:[#allocation14_spill] sm:$0xff] }
  0xb1   : > { %v1160_v54 = vsel %vm1151_vm5, %v1150_v30, %v1074_v25  ;;  %5811 = vmatmul.mubr.msk.bf16.gmra.mxu1 %vm1606_vm7, %v2048_v17  ;;  %v1240_v35 = vsel %vm1151_vm5, %v1231_v46, %v1092_v34  ;;  %v1595_v53 = vrot.slane %v966_v19, 1  ;;  %v8700_v18 = vpack.c.bf16 %v6801_v5, %v8699_v7 }
  0xb2   : > { %v1170_v42 = vsel %vm1161_vm6, %v1160_v54, %v1092_v34  ;;  %5826 = vmatprep.mubr.msk.bf16.mxu1 %vm1606_vm7, %v8696_v27  ;;  %v1249_v3 = vsel %vm1161_vm6, %v1240_v35, %v886_v45  ;;  %v7245_v27 = vld [vmem:[%s8704_s9] sm:$0xff] }
  0xb3   : > { %v2140_v39 = vpack.c.bf16 %v1170_v42, %v6841_v16  ;;  %v1594_v38 = vrot.slane %v1170_v42, 1  ;;  %v8698_v16 = vpack.c.bf16 %v6589_v4, %v6585_v1  ;;  %v2232_v36 = vpack.c.bf16 %v1249_v3, %v8701_v9 }
  0xb5   : > { %5821 = vmatmul.mubr.msk.bf16.gmra.mxu0 %vm1606_vm7, %v2140_v39  ;;  %v1596_v6 = vsel %vm1161_vm6, %v1594_v38, %v1595_v53  ;;  %v8705_v53 = vld [vmem:[#allocation6_spill] sm:$0xff] }
  0xb6   : > { %5836 = vmatprep.mubr.msk.bf16.mxu0 %vm1606_vm7, %v2321_v10  ;;  %v2324_v63 = vpack.c.bf16 %v1596_v6, %v8702_v62  ;;  %v8706_v62 = vld [vmem:[#allocation5_spill] sm:$0xff] }
  0xb9   : > { %5827 = vmatmul.mubr.msk.bf16.vlgmr.msra.gmra.mxu1 %vm1606_vm7, %v8697_v41 }
  0xba   : > { %5830 = vmatprep.mubr.msk.bf16.mxu1 %vm1606_vm7, %v8698_v16  ;;  %5845 = vmatpush3.bf16.msra.mxu1 %v5940_v0  ;;  %v7249_v16 = vrot.slane %v7245_v27, %v8705_v53 }
  0xbb   : > { %5862 = vmatprep.subr.bf16.mxu1 %v8695_v11 }
  0xbd   : > { %5837 = vmatmul.mubr.msk.bf16.vlgmr.msra.gmra.mxu0 %vm1606_vm7, %v8700_v18 }
  0xbe   : > { %5840 = vmatprep.mubr.msk.bf16.mxu0 %vm1606_vm7, %v2323_v51 }
  0xc1   : > { %5831 = vmatmul.mubr.msk.bf16.gmra.mxu1 %vm1606_vm7, %v2232_v36 }
  0xc5   : > { %5841 = vmatmul.mubr.msk.bf16.gmra.mxu0 %vm1606_vm7, %v2324_v63  ;;  %v7259_v63 = vrot.slane %v7245_v27, %v8706_v62 }
 0x105   : > { %v5758_v4 = vpop.f32.mrf.mxu0 }
 0x107   : > { %v1658_v5 = vpop.f32.mrf.mxu0 }
 0x108   : > { %v7202_v1 = vpop.f32.mrf.mxu1 }
 0x109   : > { %v5759_v26 = vpop.f32.mrf.mxu0 }
 0x10a   : > { %v7204_v14 = vpop.f32.mrf.mxu1 }
 0x10b   : > { %v1661_v59 = vpop.f32.mrf.mxu0 }
 0x10c   : > { %v7206_v33 = vpop.f32.mrf.mxu1 }
 0x10e   : > { %v7208_v2 = vpop.f32.mrf.mxu1 }
 0x115   : > { %v5768_v49 = vpop.f32.mrf.mxu1 }
 0x116   : > { %v1747_v30 = vadd.f32 %v5768_v49, %v5758_v4 }
 0x117   : > { %v1738_v22 = vpop.f32.mrf.mxu1 }
 0x118   : > { %v1739_v10 = vadd.f32 %v1738_v22, %v1658_v5 }
 0x119   : > { %v5778_v43 = vpop.f32.mrf.mxu0  ;;  %v5769_v24 = vpop.f32.mrf.mxu1 }
 0x11a   : > { %v1855_v46 = vadd.f32 %v5778_v43, %v1747_v30  ;;  %v1750_v19 = vadd.f32 %v5769_v24, %v5759_v26  ;;  %v8707_v26 = vld [vmem:[#allocation7_spill] sm:$0xff]  ;;  %v2502_v24 = vmul.f32 0.0, %v7249_v16 }
 0x11b   : > { %v1822_v48 = vpop.f32.mrf.mxu0  ;;  %v1741_v56 = vpop.f32.mrf.mxu1  ;;  %v7263_v49 = vrot.slane %v7245_v27, %v8707_v26 }
 0x11c   : > { %v1853_v41 = vadd.f32 %v1822_v48, %v1739_v10  ;;  %v1742_v43 = vadd.f32 %v1741_v56, %v1661_v59 }
 0x11d   : > { %v5779_v29 = vpop.f32.mrf.mxu0 }
 0x11e   : > { %v1856_v18 = vadd.f32 %v5779_v29, %v1750_v19  ;;  %v2575_v19 = vmul.f32 0.0, %v7263_v49 }
 0x11f   : > { %v7210_v52 = vpop.f32.mrf.mxu0 }
 0x12a   : > { %v5772_v12 = vpop.f32.mrf.mxu1 }
 0x12b   : > { %v1763_v22 = vadd.f32 %v5772_v12, %v7202_v1 }
 0x12c   : > { %v1754_v57 = vpop.f32.mrf.mxu1 }
 0x12d   : > { %v7212_v23 = vpop.f32.mrf.mxu0  ;;  %v1755_v29 = vadd.f32 %v1754_v57, %v7204_v14  ;;  %v2482_v14 = vmul.f32 0.0, %v7259_v63  ;;  %v1854_v57 = vadd.f32 %v7210_v52, %v1742_v43 }
 0x12e   : > { %v7216_v37 = vpop.f32.mrf.mxu1 }
 0x12f   : > { %v7214_v47 = vpop.f32.mrf.mxu0 }
 0x130   : > { %v7220_v45 = vpop.f32.mrf.mxu1 }
 0x131   : > { %v7218_v50 = vpop.f32.mrf.mxu0 }
 0x133   : > { %v7225_v44 = vpop.f32.mrf.mxu0 }
 0x144   : > { %v5788_v15 = vpop.f32.mrf.mxu1 }
 0x145   : > { %v1947_v51 = vadd.f32 %v5788_v15, %v1855_v46  ;;  %v2532_v46 = vrot.slane %v2502_v24, 1 }
 0x146   : > { %v5798_v20 = vpop.f32.mrf.mxu0  ;;  %v1914_v8 = vpop.f32.mrf.mxu1 }
 0x147   : > { %v1945_v9 = vadd.f32 %v1914_v8, %v1853_v41  ;;  %v2039_v4 = vadd.f32 %v5798_v20, %v1947_v51  ;;  %v8708_v20 = vld [vmem:[#allocation4_spill] sm:$0xff]  ;;  %v1857_v41 = vadd.f32 %v7214_v47, %v1755_v29 }
 0x148   : > { %v2006_v60 = vpop.f32.mrf.mxu0  ;;  %v5789_v40 = vpop.f32.mrf.mxu1  ;;  %v7276_v10 = vsub.s32 5, %v8708_v20  ;;  %v7281_v12 = vsub.s32 7, %v8708_v20 }
 0x149   : > { %v1948_v5 = vadd.f32 %v5789_v40, %v1856_v18  ;;  %v2037_v0 = vadd.f32 %v2006_v60, %v1945_v9  ;;  %v7273_v40 = vsub.s32 4, %v8708_v20  ;;  %v1859_v60 = vadd.f32 %v7212_v23, %v1763_v22 }
 0x14a   : > { %v5799_v55 = vpop.f32.mrf.mxu0  ;;  %v1917_v13 = vpop.f32.mrf.mxu1  ;;  %8710 = vst [vmem:[#allocation12_spill] sm:$0xff] %v7276_v10  ;;  %8711 = vst [vmem:[#allocation14_spill] sm:$0xff] %v7281_v12  ;;  %v1758_v9 = vadd.f32 %v7220_v45, %v7208_v2  ;;  %v2563_v45 = vadd.f32 %v2532_v46, %v2482_v14 }
 0x14b   : > { %8709 = vst [vmem:[#allocation13_spill] sm:$0xff] %v7273_v40  ;;  %v2040_v59 = vadd.f32 %v5799_v55, %v1948_v5  ;;  %v1766_v55 = vadd.f32 %v7216_v37, %v7206_v33  ;;  %v1946_v52 = vadd.f32 %v1917_v13, %v1854_v57  ;;  %v7298_v5 = vrot.slane %v7245_v27, %v7273_v40 }
 0x14c   : > { %v7228_v25 = vpop.f32.mrf.mxu0  ;;  %v7304_v33 = vrot.slane %v7245_v27, %v7276_v10  ;;  %v7308_v37 = vrot.slane %v7245_v27, %v7281_v12  ;;  %v2605_v13 = vrot.slane %v2575_v19, 2 }
 0x14e   : > { %v7328_v19 = vmul.f32 0.0, %v7308_v37 }
 0x150   : > { %8715 = vst [vmem:[#allocation17_spill] sm:$0xff] %v7328_v19 }
 0x160   : > { %v5792_v31 = vpop.f32.mrf.mxu1 }
 0x162   : > { %v7230_v61 = vpop.f32.mrf.mxu0  ;;  %v1930_v17 = vpop.f32.mrf.mxu1 }
 0x163   : > { %v1949_v43 = vadd.f32 %v1930_v17, %v1857_v41  ;;  %v1860_v17 = vadd.f32 %v7218_v50, %v1766_v55 }
 0x164   : > { %v7232_v34 = vpop.f32.mrf.mxu0  ;;  %v7234_v21 = vpop.f32.mrf.mxu1 }
 0x165   : > { %v2041_v50 = vadd.f32 %v7232_v34, %v1949_v43 }
 0x166   : > { %v7236_v58 = vpop.f32.mrf.mxu0  ;;  %v7238_v32 = vpop.f32.mrf.mxu1 }
 0x168   : > { %v7240_v54 = vpop.f32.mrf.mxu0 }
 0x169   : > { %v5808_v42 = vpop.f32.mrf.mxu1 }
 0x16a   : > { %v2131_v15 = vadd.f32 %v5808_v42, %v2039_v4  ;;  %v1951_v4 = vadd.f32 %v5792_v31, %v1859_v60  ;;  %v7311_v31 = vsub.s32 3, %v8708_v20 }
 0x16b   : > { %v2098_v39 = vpop.f32.mrf.mxu1 }
 0x16c   : > { %v2129_v56 = vadd.f32 %v2098_v39, %v2037_v0  ;;  %8712 = vst [vmem:[#allocation15_spill] sm:$0xff] %v7311_v31  ;;  %v7320_v0 = vsub.s32 6, %v8708_v20 }
 0x16d   : > { %v5818_v28 = vpop.f32.mrf.mxu0  ;;  %v5809_v38 = vpop.f32.mrf.mxu1 }
 0x16e   : > { %v2223_v39 = vadd.f32 %v5818_v28, %v2131_v15  ;;  %v2132_v51 = vadd.f32 %v5809_v38, %v2040_v59  ;;  %8714 = vst [vmem:[#allocation16_spill] sm:$0xff] %v7320_v0  ;;  %v1858_v15 = vadd.f32 %v7225_v44, %v1758_v9  ;;  %v2038_v59 = vadd.f32 %v7228_v25, %v1946_v52  ;;  %v7336_v25 = vld [vmem:[%s8704_s9 + $0x8] ss:$0 sm:$0xff] }
 0x16f   : > { %v2190_v35 = vpop.f32.mrf.mxu0  ;;  %v7251_v7 = vpop.f32.mrf.mxu1  ;;  %v7347_v52 = vadd.f32 %v2605_v13, %v2563_v45 }
 0x170   : > { %v2221_v22 = vadd.f32 %v2190_v35, %v2129_v56  ;;  %v7317_v35 = vld [vmem:[%s8713_s30] ss:$0 sm:$0xff]  ;;  %v2043_v56 = vadd.f32 %v7230_v61, %v1951_v4  ;;  %v1950_v41 = vadd.f32 %v7238_v32, %v1858_v15  ;;  %v2130_v55 = vadd.f32 %v7251_v7, %v2038_v59 }
 0x171   : > { %v5819_v3 = vpop.f32.mrf.mxu0  ;;  %v7255_v6 = vpop.f32.mrf.mxu1  ;;  %v7344_v32 = vmul.f32 0.0, %v7336_v25  ;;  %v7351_v4 = vrot.slane %v7245_v27, %v7311_v31 }
 0x172   : > { %v2224_v28 = vadd.f32 %v5819_v3, %v2132_v51  ;;  %v1952_v3 = vadd.f32 %v7234_v21, %v1860_v17  ;;  %v2135_v21 = vadd.f32 %v7255_v6, %v2043_v56  ;;  %v7341_v51 = vrot.slane %v7245_v27, %v7320_v0 }
 0x173   : > { %v7253_v36 = vpop.f32.mrf.mxu0  ;;  %v2114_v48 = vpop.f32.mrf.mxu1  ;;  %8716 = vst [vmem:[#allocation18_spill] sm:$0xff] %v7344_v32 }
 0x174   : > { %v2044_v6 = vadd.f32 %v7236_v58, %v1952_v3  ;;  %v7355_v43 = vmul.f32 0.0, %v7341_v51 }
 0x175   : > { %v7268_v8 = vpop.f32.mrf.mxu0  ;;  %v7270_v30 = vpop.f32.mrf.mxu1 }
 0x177   : > { %v7278_v1 = vpop.f32.mrf.mxu0  ;;  %v7286_v42 = vpop.f32.mrf.mxu1 }
 0x179   : > { %v7292_v18 = vpop.f32.mrf.mxu0  ;;  %v5828_v23 = vpop.f32.mrf.mxu1 }
 0x17a   : > { %v2315_v24 = vadd.f32 %v5828_v23, %v2223_v39  ;;  %v2133_v39 = vadd.f32 %v2114_v48, %v2041_v50 }
 0x17b   : > { %v7300_v47 = vpop.f32.mrf.mxu0  ;;  %v2282_v2 = vpop.f32.mrf.mxu1 }
 0x17c   : > { %v2313_v29 = vadd.f32 %v2282_v2, %v2221_v22  ;;  %v2222_v2 = vadd.f32 %v7253_v36, %v2130_v55  ;;  %v2225_v27 = vadd.f32 %v7278_v1, %v2133_v39 }
 0x17d   : > { %v5838_v38 = vpop.f32.mrf.mxu0  ;;  %v5829_v57 = vpop.f32.mrf.mxu1 }
 0x17e   : > { %v2407_v14 = vadd.f32 %v5838_v38, %v2315_v24  ;;  %v2316_v46 = vadd.f32 %v5829_v57, %v2224_v28  ;;  %v2042_v24 = vadd.f32 %v7240_v54, %v1950_v41  ;;  %v2227_v28 = vadd.f32 %v7268_v8, %v2135_v21 }
 0x17f   : > { %v2374_v60 = vpop.f32.mrf.mxu0  ;;  %v2285_v34 = vpop.f32.mrf.mxu1  ;;  %v2136_v38 = vadd.f32 %v7270_v30, %v2044_v6 }
 0x180   : > { %v2421_v44 = vadd.f32 %v7317_v35, %v2407_v14  ;;  %v2405_v61 = vadd.f32 %v2374_v60, %v2313_v29  ;;  %v2134_v29 = vadd.f32 %v7286_v42, %v2042_v24  ;;  %v2314_v59 = vadd.f32 %v2285_v34, %v2222_v2 }
 0x181   : > { %v5839_v23 = vpop.f32.mrf.mxu0  ;;  %v5832_v13 = vpop.f32.mrf.mxu1 }
 0x182   : > { %v2429_v7 = vmax.f32 %v2421_v44, 0.0  ;;  %v2419_v9 = vadd.f32 %v7317_v35, %v2405_v61  ;;  %v2408_v48 = vadd.f32 %v5839_v23, %v2316_v46  ;;  %v7383_v44 = vadd.f32 %v7292_v18, %v2136_v38 }
 0x183   : > { %v2298_v50 = vpop.f32.mrf.mxu1  ;;  %v2377_v55 = vpop.f32.mrf.mxu0  ;;  %v7386_v61 = vadd.f32 %v7300_v47, %v2134_v29  ;;  %v2319_v21 = vadd.f32 %v5832_v13, %v2227_v28 }
 0x184   : > { %v2448_v17 = vrot.slane %v2429_v7, 7  ;;  %v2427_v45 = vmax.f32 %v2419_v9, 0.0  ;;  %v2422_v30 = vadd.f32 %v7317_v35, %v2408_v48  ;;  %v2406_v34 = vadd.f32 %v2377_v55, %v2314_v59 }
 0x185   : > { %v7390_v23 = vadd.f32 %v2298_v50, %v2225_v27 }
 0x186   : > { %v7366_v15 = vsel %vm838_vm0, 0.0, %v2448_v17  ;;  %v2472_v54 = vsel %vm838_vm0, %v2448_v17, 0.0  ;;  %v2446_v57 = vrot.slane %v2427_v45, 7  ;;  %v2430_v9 = vmax.f32 %v2422_v30, 0.0 }
 0x187   : > { %v2507_v36 = vmul.f32 %v7249_v16, %v7366_v15  ;;  %v2508_v56 = vmul.f32 %v7249_v16, %v2472_v54  ;;  %v2580_v8 = vmul.f32 %v7263_v49, %v7366_v15  ;;  %v2581_v1 = vmul.f32 %v7263_v49, %v2472_v54 }
 0x188   : > { %v2672_v42 = vmul.f32 %v7298_v5, %v7366_v15  ;;  %v2673_v14 = vmul.f32 %v7298_v5, %v2472_v54  ;;  %v2748_v46 = vmul.f32 %v7304_v33, %v7366_v15  ;;  %v2749_v41 = vmul.f32 %v7304_v33, %v2472_v54 }
 0x189   : > { %v2540_v3 = vrot.slane %v2507_v36, 1  ;;  %v2541_v60 = vrot.slane %v2508_v56, 1  ;;  %v2485_v39 = vmul.f32 %v7259_v63, %v7366_v15  ;;  %v2613_v7 = vrot.slane %v2580_v8, 2 }
 0x18a   : > { %v2614_v48 = vrot.slane %v2581_v1, 2  ;;  %v2706_v24 = vrot.slane %v2672_v42, 1  ;;  %v2462_v2 = vsel %vm838_vm0, 0.0, %v2446_v57  ;;  %v2707_v18 = vrot.slane %v2673_v14, 1 }
 0x18b   : > { %v2542_v6 = vsel %vm1161_vm6, %v2540_v3, %v2541_v60  ;;  %v2782_v17 = vrot.slane %v2748_v46, 2  ;;  %v2783_v45 = vrot.slane %v2749_v41, 2  ;;  %v2470_v47 = vsel %vm838_vm0, %v2446_v57, 0.0 }
 0x18c   : > { %v7396_v13 = vmul.f32 %v7308_v37, %v2472_v54  ;;  %v7399_v28 = vmul.f32 %v7336_v25, %v2472_v54  ;;  %v2503_v27 = vmul.f32 %v7249_v16, %v2462_v2  ;;  %v2504_v38 = vmul.f32 %v7249_v16, %v2470_v47 }
 0x18d   : > { %v2566_v29 = vadd.f32 %v2542_v6, %v2485_v39  ;;  %v2576_v59 = vmul.f32 %v7263_v49, %v2462_v2  ;;  %v2577_v36 = vmul.f32 %v7263_v49, %v2470_v47  ;;  %v2668_v56 = vmul.f32 %v7298_v5, %v2462_v2 }
 0x18e   : > { %v2534_v8 = vrot.slane %v2503_v27, 1  ;;  %v2535_v30 = vrot.slane %v2504_v38, 1  ;;  %v2648_v1 = vmul.f32 %v7351_v4, %v2462_v2  ;;  %v2669_v42 = vmul.f32 %v7298_v5, %v2470_v47 }
 0x18f   : > { %v2615_v54 = vsel %vm1151_vm5, %v2613_v7, %v2614_v48  ;;  %v7410_v14 = vsel %vm1161_vm6, %v2706_v24, %v2707_v18  ;;  %v7413_v57 = vsel %vm1151_vm5, %v2782_v17, %v2783_v45  ;;  %v2744_v50 = vmul.f32 %v7304_v33, %v2462_v2 }
 0x190   : > { %v2700_v60 = vrot.slane %v2668_v56, 1  ;;  %v2701_v46 = vrot.slane %v2669_v42, 1  ;;  %v2745_v41 = vmul.f32 %v7304_v33, %v2470_v47  ;;  %v2536_v55 = vsel %vm1161_vm6, %v2534_v8, %v2535_v30 }
 0x191   : > { %v2607_v39 = vrot.slane %v2576_v59, 2  ;;  %v2608_v6 = vrot.slane %v2577_v36, 2  ;;  %v2449_v27 = vrot.slane %v2430_v9, 7  ;;  %v2639_v7 = vadd.f32 %v2615_v54, %v2566_v29 }
 0x192   : > { %v2483_v24 = vmul.f32 %v7259_v63, %v2462_v2  ;;  %v2656_v18 = vadd.f32 %v2648_v1, %v7347_v52  ;;  %v2776_v17 = vrot.slane %v2744_v50, 2  ;;  %v2777_v45 = vrot.slane %v2745_v41, 2  ;;  %v5842_v50 = vpop.f32.mrf.mxu0 }
 0x193   : > { %v2465_v38 = vsel %vm838_vm0, 0.0, %v2449_v27  ;;  %v2473_v56 = vsel %vm838_vm0, %v2449_v27, 0.0  ;;  %v2702_v47 = vsel %vm1161_vm6, %v2700_v60, %v2701_v46  ;;  %v2609_v29 = vsel %vm1151_vm5, %v2607_v39, %v2608_v6 }
 0x194   : > { %v2564_v42 = vadd.f32 %v2536_v55, %v2483_v24  ;;  %v2509_v59 = vmul.f32 %v7249_v16, %v2465_v38  ;;  %v2510_v9 = vmul.f32 %v7249_v16, %v2473_v56  ;;  %v2582_v36 = vmul.f32 %v7263_v49, %v2465_v38 }
 0x195   : > { %v2583_v2 = vmul.f32 %v7263_v49, %v2473_v56  ;;  %v2420_v52 = vadd.f32 %v7317_v35, %v2406_v34  ;;  %v2674_v1 = vmul.f32 %v7298_v5, %v2465_v38  ;;  %v2675_v54 = vmul.f32 %v7298_v5, %v2473_v56 }
 0x196   : > { %v2543_v8 = vrot.slane %v2509_v59, 1  ;;  %v2544_v30 = vrot.slane %v2510_v9, 1  ;;  %v2732_v60 = vadd.f32 %v2702_v47, %v2656_v18  ;;  %v2778_v46 = vsel %vm1151_vm5, %v2776_v17, %v2777_v45 }
 0x197   : > { %v2750_v41 = vmul.f32 %v7304_v33, %v2465_v38  ;;  %v2411_v55 = vadd.f32 %v5842_v50, %v2319_v21  ;;  %v2486_v39 = vmul.f32 %v7259_v63, %v2465_v38  ;;  %v2651_v27 = vmul.f32 %v7351_v4, %v2465_v38 }
 0x198   : > { %v2545_v6 = vsel %vm1161_vm6, %v2543_v8, %v2544_v30  ;;  %v2751_v34 = vmul.f32 %v7304_v33, %v2473_v56  ;;  %v2616_v24 = vrot.slane %v2582_v36, 2  ;;  %v2617_v59 = vrot.slane %v2583_v2, 2 }
 0x199   : > { %v2709_v9 = vrot.slane %v2674_v1, 1  ;;  %v2710_v58 = vrot.slane %v2675_v54, 1  ;;  %v2567_v22 = vadd.f32 %v2545_v6, %v2486_v39  ;;  %v2659_v48 = vadd.f32 %v2651_v27, %v2639_v7  ;;  %v5833_v39 = vpop.f32.mrf.mxu1 }
 0x19a   : > { %v2844_v18 = vmul.f32 %v7308_v37, %v2465_v38  ;;  %v2845_v17 = vmul.f32 %v7308_v37, %v2473_v56  ;;  %v2785_v45 = vrot.slane %v2750_v41, 2  ;;  %v2786_v21 = vrot.slane %v2751_v34, 2  ;;  %v2390_v34 = vpop.f32.mrf.mxu0 }
 0x19b   : > { %v2917_v47 = vmul.f32 %v7336_v25, %v2465_v38  ;;  %v2918_v8 = vmul.f32 %v7336_v25, %v2473_v56  ;;  %v7443_v30 = vadd.f32 %v2609_v29, %v2564_v42  ;;  %v7445_v50 = vadd.f32 %v2778_v46, %v2732_v60 }
 0x19c   : > { %v2428_v36 = vmax.f32 %v2420_v52, 0.0  ;;  %v2650_v2 = vmul.f32 %v7351_v4, %v7366_v15  ;;  %v2618_v7 = vsel %vm1151_vm5, %v2616_v24, %v2617_v59  ;;  %v2711_v1 = vsel %vm1161_vm6, %v2709_v9, %v2710_v58 }
 0x19d   : > { %v7452_v54 = vmul.f32 %v7341_v51, %v2465_v38  ;;  %v2425_v41 = vadd.f32 %v7317_v35, %v2411_v55  ;;  %v2735_v6 = vadd.f32 %v2711_v1, %v2659_v48  ;;  %v2876_v56 = vrot.slane %v2844_v18, 1 }
 0x19e   : > { %v2877_v42 = vrot.slane %v2845_v17, 1  ;;  %v2447_v29 = vrot.slane %v2428_v36, 7  ;;  %v7455_v60 = vadd.f32 %v2618_v7, %v2567_v22  ;;  %v2787_v52 = vsel %vm1151_vm5, %v2785_v45, %v2786_v21 }
 0x19f   : > { %v2949_v46 = vrot.slane %v2917_v47, 2  ;;  %v2950_v27 = vrot.slane %v2918_v8, 2  ;;  %v2409_v38 = vadd.f32 %v2390_v34, %v7390_v23  ;;  %v2320_v55 = vadd.f32 %v5833_v39, %v7383_v44  ;;  %v2301_v44 = vpop.f32.mrf.mxu1 }
 0x1a0   : > { %v7459_v24 = vsel %vm838_vm0, 0.0, %v2447_v29  ;;  %v2471_v58 = vsel %vm838_vm0, %v2447_v29, 0.0  ;;  %v2433_v9 = vmax.f32 %v2425_v41, 0.0  ;;  %v7469_v18 = vadd.f32 %v2787_v52, %v2735_v6  ;;  %v5843_v6 = vpop.f32.mrf.mxu0 }
 0x1a1   : > { %v2505_v48 = vmul.f32 %v7249_v16, %v7459_v24  ;;  %v2506_v22 = vmul.f32 %v7249_v16, %v2471_v58  ;;  %v2578_v59 = vmul.f32 %v7263_v49, %v7459_v24  ;;  %v7472_v17 = vsel %vm1161_vm6, %v2876_v56, %v2877_v42 }
 0x1a2   : > { %v2579_v45 = vmul.f32 %v7263_v49, %v2471_v58  ;;  %v2670_v23 = vmul.f32 %v7298_v5, %v7459_v24  ;;  %v2671_v36 = vmul.f32 %v7298_v5, %v2471_v58  ;;  %v7479_v7 = vsel %vm1151_vm5, %v2949_v46, %v2950_v27 }
 0x1a3   : > { %v2537_v21 = vrot.slane %v2505_v48, 1  ;;  %v2538_v47 = vrot.slane %v2506_v22, 1  ;;  %v2610_v8 = vrot.slane %v2578_v59, 2  ;;  %v2484_v1 = vmul.f32 %v7259_v63, %v7459_v24 }
 0x1a4   : > { %v2611_v41 = vrot.slane %v2579_v45, 2  ;;  %v2423_v39 = vadd.f32 %v7317_v35, %v2409_v38  ;;  %v2452_v42 = vrot.slane %v2433_v9, 7  ;;  %v2412_v29 = vadd.f32 %v5843_v6, %v2320_v55 }
 0x1a5   : > { %v2539_v56 = vsel %vm1161_vm6, %v2537_v21, %v2538_v47  ;;  %v7486_v52 = vadd.f32 %v2301_v44, %v7386_v61  ;;  %v2703_v48 = vrot.slane %v2670_v23, 1  ;;  %v7489_v22 = vmul.f32 %v7304_v33, %v2471_v58 }
 0x1a6   : > { %v2565_v34 = vadd.f32 %v2539_v56, %v2484_v1  ;;  %v7492_v46 = vmul.f32 %v7308_v37, %v2471_v58  ;;  %v2612_v27 = vsel %vm1151_vm5, %v2610_v8, %v2611_v41  ;;  %v2704_v59 = vrot.slane %v2671_v36, 1 }
 0x1a7   : > { %v7496_v38 = vsel %vm838_vm0, 0.0, %v2452_v42  ;;  %v2476_v9 = vsel %vm838_vm0, %v2452_v42, 0.0  ;;  %v2431_v23 = vmax.f32 %v2423_v39, 0.0  ;;  %v7503_v44 = vmul.f32 %v7336_v25, %v2471_v58 }
 0x1a8   : > { %v2638_v55 = vadd.f32 %v2612_v27, %v2565_v34  ;;  %v2515_v61 = vmul.f32 %v7249_v16, %v7496_v38  ;;  %v2516_v45 = vmul.f32 %v7249_v16, %v2476_v9  ;;  %v7506_v21 = vmul.f32 %v7263_v49, %v2476_v9 }
 0x1a9   : > { %v2680_v47 = vmul.f32 %v7298_v5, %v7496_v38  ;;  %v2681_v8 = vmul.f32 %v7298_v5, %v2476_v9  ;;  %v7512_v1 = vmul.f32 %v7304_v33, %v2476_v9  ;;  %v7515_v41 = vmul.f32 %v7308_v37, %v2476_v9 }
 0x1aa   : > { %v2658_v36 = vadd.f32 %v2650_v2, %v2638_v55  ;;  %v7519_v39 = vmul.f32 %v7341_v51, %v7366_v15  ;;  %v2552_v56 = vrot.slane %v2515_v61, 1  ;;  %v2553_v42 = vrot.slane %v2516_v45, 1 }
 0x1ab   : > { %8717 = vst [vmem:[#allocation19_spill] sm:$0xff] %v7512_v1  ;;  %v7524_v34 = vsel %vm1161_vm6, %v2703_v48, %v2704_v59  ;;  %v2718_v2 = vrot.slane %v2680_v47, 1  ;;  %v2719_v27 = vrot.slane %v2681_v8, 1  ;;  %v2450_v55 = vrot.slane %v2431_v23, 7 }
 0x1ac   : > { %v2734_v3 = vadd.f32 %v7410_v14, %v2658_v36  ;;  %v2626_v26 = vrot.slane %v7506_v21, 2  ;;  %v2426_v62 = vadd.f32 %v7317_v35, %v2412_v29  ;;  %v2554_v59 = vsel %vm1161_vm6, %v2552_v56, %v2553_v42 }
 0x1ad   : > { %v7533_v61 = vsel %vm838_vm0, 0.0, %v2450_v55  ;;  %v2474_v48 = vsel %vm838_vm0, %v2450_v55, 0.0  ;;  %v7543_v29 = vsel %vm1161_vm6, %v2718_v2, %v2719_v27  ;;  %v7546_v21 = vmul.f32 %v7336_v25, %v2476_v9 }
 0x1ae   : > { %v2511_v14 = vmul.f32 %v7249_v16, %v7533_v61  ;;  %v2512_v45 = vmul.f32 %v7249_v16, %v2474_v48  ;;  %v2584_v23 = vmul.f32 %v7263_v49, %v7533_v61  ;;  %v2585_v47 = vmul.f32 %v7263_v49, %v2474_v48 }
 0x1af   : > { %v2676_v8 = vmul.f32 %v7298_v5, %v7533_v61  ;;  %v7552_v36 = vadd.f32 %v7413_v57, %v2734_v3  ;;  %v2434_v56 = vmax.f32 %v2426_v62, 0.0  ;;  %v2489_v42 = vmul.f32 %v7259_v63, %v7496_v38 }
 0x1b0   : > { %v2588_v55 = vmul.f32 %v7263_v49, %v7496_v38  ;;  %v2487_v2 = vmul.f32 %v7259_v63, %v7533_v61  ;;  %v2546_v9 = vrot.slane %v2511_v14, 1  ;;  %v2677_v27 = vmul.f32 %v7298_v5, %v2474_v48 }
 0x1b1   : > { %v7562_v58 = vmul.f32 %v7304_v33, %v2474_v48  ;;  %v2547_v6 = vrot.slane %v2512_v45, 1  ;;  %v2619_v20 = vrot.slane %v2584_v23, 2  ;;  %v2846_v62 = vmul.f32 %v7308_v37, %v7533_v61 }
 0x1b2   : > { %v2847_v57 = vmul.f32 %v7308_v37, %v2474_v48  ;;  %v2620_v3 = vrot.slane %v2585_v47, 2  ;;  %v2712_v53 = vrot.slane %v2676_v8, 1  ;;  %v2823_v12 = vmul.f32 %v7341_v51, %v7533_v61 }
 0x1b3   : > { %v2919_v14 = vmul.f32 %v7336_v25, %v7533_v61  ;;  %v2879_v0 = vrot.slane %v2846_v62, 1  ;;  %v2920_v40 = vmul.f32 %v7336_v25, %v2474_v48  ;;  %v2453_v31 = vrot.slane %v2434_v56, 7 }
 0x1b4   : > { %v2880_v10 = vrot.slane %v2847_v57, 1  ;;  %v2713_v45 = vrot.slane %v2677_v27, 1  ;;  %v2831_v23 = vadd.f32 %v2823_v12, %v7469_v18  ;;  %v2570_v11 = vadd.f32 %v2554_v59, %v2489_v42 }
 0x1b5   : > { %v2625_v32 = vrot.slane %v2588_v55, 2  ;;  %v2548_v1 = vsel %vm1161_vm6, %v2546_v9, %v2547_v6  ;;  %v2952_v47 = vrot.slane %v2919_v14, 2  ;;  %v7575_v8 = vsel %vm838_vm0, 0.0, %v2453_v31 }
 0x1b6   : > { %v7578_v19 = vsel %vm838_vm0, %v2453_v31, 0.0  ;;  %v2881_v62 = vsel %vm1161_vm6, %v2879_v0, %v2880_v10  ;;  %v2953_v57 = vrot.slane %v2920_v40, 2  ;;  %v2682_v56 = vmul.f32 %v7298_v5, %v7575_v8 }
 0x1b7   : > { %v2627_v48 = vsel %vm1151_vm5, %v2625_v32, %v2626_v26  ;;  %v2655_v18 = vmul.f32 %v7351_v4, %v7575_v8  ;;  %v2683_v6 = vmul.f32 %v7298_v5, %v7578_v19  ;;  %v2758_v59 = vmul.f32 %v7304_v33, %v7575_v8 }
 0x1b8   : > { %v2643_v12 = vadd.f32 %v2627_v48, %v2570_v11  ;;  %v2568_v31 = vadd.f32 %v2548_v1, %v2487_v2  ;;  %v2904_v42 = vadd.f32 %v2881_v62, %v2831_v23  ;;  %v2721_v55 = vrot.slane %v2682_v56, 1  ;;  %v2393_v48 = vpop.f32.mrf.mxu0 }
 0x1b9   : > { %v2759_v40 = vmul.f32 %v7304_v33, %v7578_v19  ;;  %v2959_v26 = vrot.slane %v7546_v21, 2  ;;  %v2722_v0 = vrot.slane %v2683_v6, 1  ;;  %v2797_v11 = vrot.slane %v2758_v59, 2 }
 0x1ba   : > { %v2663_v10 = vadd.f32 %v2655_v18, %v2643_v12  ;;  %v2621_v32 = vsel %vm1151_vm5, %v2619_v20, %v2620_v3  ;;  %v7595_v9 = vsel %vm1161_vm6, %v2712_v53, %v2713_v45  ;;  %v2789_v27 = vrot.slane %v7562_v58, 2 }
 0x1bb   : > { %v2798_v14 = vrot.slane %v2759_v40, 2  ;;  %v2954_v1 = vsel %vm1151_vm5, %v2952_v47, %v2953_v57  ;;  %v2723_v2 = vsel %vm1161_vm6, %v2721_v55, %v2722_v0  ;;  %v2410_v23 = vadd.f32 %v2393_v48, %v7486_v52 }
 0x1bc   : > { %v2649_v62 = vmul.f32 %v7351_v4, %v7459_v24  ;;  %v7603_v56 = vadd.f32 %v2621_v32, %v2568_v31  ;;  %v7605_v12 = vadd.f32 %v2954_v1, %v2904_v42  ;;  %v2739_v20 = vadd.f32 %v2723_v2, %v2663_v10 }
 0x1bd   : > { %v7609_v53 = vmul.f32 %v7308_v37, %v7575_v8  ;;  %v2799_v3 = vsel %vm1151_vm5, %v2797_v11, %v2798_v14  ;;  %v2424_v45 = vadd.f32 %v7317_v35, %v2410_v23  ;;  %v2746_v52 = vmul.f32 %v7304_v33, %v7459_v24 }
 0x1be   : > { %v2657_v47 = vadd.f32 %v2649_v62, %v7443_v30  ;;  %v7616_v57 = vadd.f32 %v2799_v3, %v2739_v20  ;;  %v7620_v18 = vmul.f32 %v7308_v37, %v7578_v19  ;;  %v2820_v6 = vmul.f32 %v7341_v51, %v7459_v24 }
 0x1bf   : > { %v2840_v59 = vmul.f32 %v7308_v37, %v7459_v24  ;;  %v2432_v31 = vmax.f32 %v2424_v45, 0.0  ;;  %v2779_v42 = vrot.slane %v2746_v52, 2  ;;  %v2842_v30 = vmul.f32 %v7308_v37, %v7366_v15 }
 0x1c0   : > { %v2733_v35 = vadd.f32 %v7524_v34, %v2657_v47  ;;  %v2828_v55 = vadd.f32 %v2820_v6, %v7445_v50  ;;  %v2913_v10 = vmul.f32 %v7336_v25, %v7459_v24  ;;  %v2915_v0 = vmul.f32 %v7336_v25, %v7366_v15 }
 0x1c1   : > { %v2870_v40 = vrot.slane %v2840_v59, 1  ;;  %v2451_v11 = vrot.slane %v2432_v31, 7  ;;  %v8718_v32 = vrot.slane %v7489_v22, 2  ;;  %v2873_v48 = vrot.slane %v2842_v30, 1 }
 0x1c2   : > { %v2830_v34 = vadd.f32 %v7452_v54, %v7552_v36  ;;  %v8719_v2 = vrot.slane %v7492_v46, 1  ;;  %v2943_v23 = vrot.slane %v2913_v10, 2  ;;  %v2946_v62 = vrot.slane %v2915_v0, 2 }
 0x1c3   : > { %v2781_v14 = vsel %vm1151_vm5, %v2779_v42, %v8718_v32  ;;  %v7643_v24 = vsel %vm838_vm0, 0.0, %v2451_v11  ;;  %v2475_v15 = vsel %vm838_vm0, %v2451_v11, 0.0  ;;  %v8720_v22 = vrot.slane %v7396_v13, 1 }
 0x1c4   : > { %v2809_v1 = vadd.f32 %v2781_v14, %v2733_v35  ;;  %v2872_v50 = vsel %vm1161_vm6, %v2870_v40, %v8719_v2  ;;  %v2488_v54 = vmul.f32 %v7259_v63, %v7643_v24  ;;  %v2513_v46 = vmul.f32 %v7249_v16, %v7643_v24  ;;  %v7675_v14 = vld [vmem:[%s8721_s8] ss:$0 sm:$0xff] }
 0x1c5   : > { %v2875_v20 = vsel %vm1161_vm6, %v2873_v48, %v8720_v22  ;;  %v2901_v3 = vadd.f32 %v2872_v50, %v2828_v55  ;;  %v2514_v36 = vmul.f32 %v7249_v16, %v2475_v15  ;;  %v2586_v45 = vmul.f32 %v7263_v49, %v7643_v24 }
 0x1c6   : > { %v2587_v47 = vmul.f32 %v7263_v49, %v2475_v15  ;;  %v2678_v52 = vmul.f32 %v7298_v5, %v7643_v24  ;;  %v2679_v13 = vmul.f32 %v7298_v5, %v2475_v15  ;;  %v2755_v6 = vmul.f32 %v7304_v33, %v2475_v15 }
 0x1c7   : > { %v2549_v59 = vrot.slane %v2513_v46, 1  ;;  %v2550_v31 = vrot.slane %v2514_v36, 1  ;;  %v2622_v63 = vrot.slane %v2586_v45, 2  ;;  %v7662_v35 = vmul.f32 %v7308_v37, %v2475_v15 }
 0x1c8   : > { %v2623_v42 = vrot.slane %v2587_v47, 2  ;;  %v2715_v16 = vrot.slane %v2678_v52, 1  ;;  %v2716_v30 = vrot.slane %v2679_v13, 1  ;;  %v2792_v55 = vrot.slane %v2755_v6, 2 }
 0x1c9   : > { %v2551_v40 = vsel %vm1161_vm6, %v2549_v59, %v2550_v31  ;;  %v2883_v49 = vrot.slane %v7662_v35, 1  ;;  %v7667_v10 = vmul.f32 %v7336_v25, %v2475_v15  ;;  %v2829_v5 = vadd.f32 %v7519_v39, %v2809_v1 }
 0x1ca   : > { %v2569_v0 = vadd.f32 %v2551_v40, %v2488_v54  ;;  %v2624_v11 = vsel %vm1151_vm5, %v2622_v63, %v2623_v42  ;;  %v2717_v32 = vsel %vm1161_vm6, %v2715_v16, %v2716_v30  ;;  %v8722_v48 = vrot.slane %v7503_v44, 2 }
 0x1cb   : > { %v2956_v50 = vrot.slane %v7667_v10, 2  ;;  %v2902_v15 = vadd.f32 %v2875_v20, %v2829_v5  ;;  %v8723_v39 = vrot.slane %v7399_v28, 2  ;;  %v2903_v46 = vadd.f32 %v7472_v17, %v2830_v34 }
 0x1cc   : > { %v2945_v2 = vsel %vm1151_vm5, %v2943_v23, %v8722_v48  ;;  %v2642_v54 = vadd.f32 %v2624_v11, %v2569_v0  ;;  %v2991_v36 = vadd.f32 %v7675_v14, %v7605_v12  ;;  %v2652_v44 = vmul.f32 %v7351_v4, %v7533_v61 }
 0x1cd   : > { %v2948_v1 = vsel %vm1151_vm5, %v2946_v62, %v8723_v39  ;;  %v2974_v22 = vadd.f32 %v2945_v2, %v2901_v3  ;;  %v2653_v20 = vmul.f32 %v7351_v4, %v7643_v24  ;;  %v2752_v28 = vmul.f32 %v7304_v33, %v7533_v61 }
 0x1ce   : > { %v2975_v45 = vadd.f32 %v2948_v1, %v2902_v15  ;;  %v2976_v62 = vadd.f32 %v7479_v7, %v2903_v46  ;;  %v2999_v3 = vmax.f32 %v2991_v36, 0.0  ;;  %v2660_v17 = vadd.f32 %v2652_v44, %v7455_v60 }
 0x1cf   : > { %v2988_v23 = vadd.f32 %v7675_v14, %v2974_v22  ;;  %v2754_v12 = vmul.f32 %v7304_v33, %v7643_v24  ;;  %v2661_v52 = vadd.f32 %v2653_v20, %v7603_v56  ;;  %v2788_v13 = vrot.slane %v2752_v28, 2 }
 0x1d0   : > { %v2989_v34 = vadd.f32 %v7675_v14, %v2975_v45  ;;  %v2990_v6 = vadd.f32 %v7675_v14, %v2976_v62  ;;  %v2736_v59 = vadd.f32 %v7595_v9, %v2660_v17  ;;  %v2824_v7 = vmul.f32 %v7341_v51, %v7643_v24 }
 0x1d1   : > { %v2996_v47 = vmax.f32 %v2988_v23, 0.0  ;;  %v2791_v31 = vrot.slane %v2754_v12, 2  ;;  %v2737_v63 = vadd.f32 %v2717_v32, %v2661_v52  ;;  %v2790_v60 = vsel %vm1151_vm5, %v2788_v13, %v2789_v27 }
 0x1d2   : > { %v2997_v61 = vmax.f32 %v2989_v34, 0.0  ;;  %v2825_v35 = vmul.f32 %v7341_v51, %v7496_v38  ;;  %v2998_v42 = vmax.f32 %v2990_v6, 0.0  ;;  %v2812_v16 = vadd.f32 %v2790_v60, %v2736_v59 }
 0x1d3   : > { %v2793_v56 = vsel %vm1151_vm5, %v2791_v31, %v2792_v55  ;;  %v2848_v9 = vmul.f32 %v7308_v37, %v7643_v24  ;;  %v2850_v10 = vmul.f32 %v7308_v37, %v7496_v38  ;;  %v2921_v58 = vmul.f32 %v7336_v25, %v7643_v24 }
 0x1d4   : > { %v3007_v30 = vpack.c.bf16 %v2997_v61, %v2996_v47  ;;  %v2813_v40 = vadd.f32 %v2793_v56, %v2737_v63  ;;  %v3008_v5 = vpack.c.bf16 %v2999_v3, %v2998_v42  ;;  %v2832_v27 = vadd.f32 %v2824_v7, %v2812_v16  ;;  %v8729_v47 = vld [vmem:[#allocation18_spill] sm:$0xff]  ;;  %v5941_v42 = vld [vmem:[%s8731_s5 + $0x8] sm:$0xff]  }
 0x1d5   : > { %v2882_v0 = vrot.slane %v2848_v9, 1  ;;  %v2923_v11 = vmul.f32 %v7336_v25, %v7496_v38  ;;  %v2885_v32 = vrot.slane %v2850_v10, 1  ;;  %v2955_v48 = vrot.slane %v2921_v58, 2  ;;  %5855 = vmatpush3.bf16.msra.mxu0 %v5941_v42  ;;  %v5942_v16 = vld [vmem:[%s8731_s5] sm:$0xff]  }
 0x1d6   : > { %5846 = vmatprep.mubr.msk.bf16.mxu1 %vm3023_vm8, %v3007_v30  ;;  %v2833_v55 = vadd.f32 %v2825_v35, %v2813_v40  ;;  %v2654_v2 = vmul.f32 %v7351_v4, %v7496_v38  ;;  %v2756_v24 = vmul.f32 %v7304_v33, %v7496_v38  ;;  %v2835_v39 = vadd.f32 %v7355_v43, %v7616_v57  ;;  %v8725_v57 = vld [vmem:[#allocation17_spill] sm:$0xff] }
 0x1d7   : > { %5847 = vmatmul.mubr.msk.bf16.vlgmr.msra.gmra.mxu1 %vm3023_vm8, %v3008_v5  ;;  %v2884_v37 = vsel %vm1161_vm6, %v2882_v0, %v2883_v49  ;;  %v2958_v15 = vrot.slane %v2923_v11, 2  ;;  %v2925_v1 = vmul.f32 %v7336_v25, %v7575_v8  ;;  %v8724_v22 = vrot.slane %v7515_v41, 1 }
 0x1d8   : > { %v2905_v36 = vadd.f32 %v2884_v37, %v2832_v27  ;;  %v2662_v4 = vadd.f32 %v2654_v2, %v2642_v54  ;;  %v2926_v44 = vmul.f32 %v7336_v25, %v7578_v19  ;;  %v2957_v45 = vsel %vm1151_vm5, %v2955_v48, %v2956_v50  ;;  %v8727_v19 = vld [vmem:[#allocation19_spill] sm:$0xff] }
 0x1d9   : > { %v2887_v46 = vsel %vm1161_vm6, %v2885_v32, %v8724_v22  ;;  %v2794_v23 = vrot.slane %v2756_v24, 2  ;;  %v2960_v33 = vsel %vm1151_vm5, %v2958_v15, %v2959_v26  ;;  %v8726_v41 = vrot.slane %v8725_v57, 1 }
 0x1da   : > { %v2906_v49 = vadd.f32 %v2887_v46, %v2833_v55  ;;  %v2978_v43 = vadd.f32 %v2957_v45, %v2905_v36  ;;  %v2738_v38 = vadd.f32 %v7543_v29, %v2662_v4  ;;  %v2888_v28 = vrot.slane %v7609_v53, 1  ;;  %v7791_v45 = vld [vmem:[%s8602_s0] sm:$0xff] }
 0x1db   : > { %v2908_v20 = vadd.f32 %v8726_v41, %v2835_v39  ;;  %v2889_v54 = vrot.slane %v7620_v18, 1  ;;  %v8728_v25 = vrot.slane %v8727_v19, 2  ;;  %v2826_v21 = vmul.f32 %v7341_v51, %v7575_v8  ;;  %v8735_v41 = vld [vmem:[#allocation13_spill] sm:$0xff] }
 0x1dc   : > { %v2979_v62 = vadd.f32 %v2960_v33, %v2906_v49  ;;  %v2992_v26 = vadd.f32 %v7675_v14, %v2978_v43  ;;  %v2961_v17 = vrot.slane %v2925_v1, 2  ;;  %v2962_v29 = vrot.slane %v2926_v44, 2 }
 0x1dd   : > { %v2796_v50 = vsel %vm1151_vm5, %v2794_v23, %v8728_v25  ;;  %v8730_v53 = vrot.slane %v8729_v47, 2  ;;  %v2890_v18 = vsel %vm1161_vm6, %v2888_v28, %v2889_v54  ;;  %v8732_v56 = vmov 0.0   ;;  %v8734_v23 = vld [vmem:[#allocation15_spill] sm:$0xff]  ;;  %v8736_v54 = vld [vmem:[#allocation12_spill] sm:$0xff] }
 0x1de   : > { %v2814_v3 = vadd.f32 %v2796_v50, %v2738_v38  ;;  %v2993_v12 = vadd.f32 %v7675_v14, %v2979_v62  ;;  %v3000_v13 = vmax.f32 %v2992_v26, 0.0  ;;  %v2963_v7 = vsel %vm1151_vm5, %v2961_v17, %v2962_v29  ;;  %5856 = vmatprep.subr.bf16.mxu0 %v8732_v56  ;;  %5858 = vmatprep.mubr.msk.bf16.mxu0 %vm6042_vm9, %v8732_v56  ;;  %v8737_v25 = vld [vmem:[#allocation16_spill] sm:$0xff] }
 0x1df   : > { %v2981_v52 = vadd.f32 %v8730_v53, %v2908_v20  ;;  %5857 = vmatpush3.bf16.msra.mxu0 %v5942_v16  ;;  %v7795_v33 = vrot.slane %v7791_v45, %v8734_v23  ;;  %v7803_v20 = vrot.slane %v7791_v45, %v8735_v41  ;;  %v7808_v62 = vrot.slane %v7791_v45, %v8736_v54 }
 0x1e0   : > { %v2834_v34 = vadd.f32 %v2826_v21, %v2814_v3  ;;  %v3001_v6 = vmax.f32 %v2993_v12, 0.0  ;;  %5874 = vmatprep.subr.bf16.mxu0 %v8732_v56  ;;  %v7813_v50 = vrot.slane %v7791_v45, %v8737_v25 }
 0x1e1   : > { %v2995_v8 = vadd.f32 %v7675_v14, %v2981_v52 }
 0x1e2   : > { %v2907_v59 = vadd.f32 %v2890_v18, %v2834_v34  ;;  %v3009_v31 = vpack.c.bf16 %v3001_v6, %v3000_v13 }
 0x1e3   : > { %v3003_v60 = vmax.f32 %v2995_v8, 0.0 }
 0x1e4   : > { %v2980_v51 = vadd.f32 %v2963_v7, %v2907_v59  ;;  %5850 = vmatprep.mubr.msk.bf16.mxu1 %vm3023_vm8, %v3009_v31 }
 0x1e6   : > { %v2994_v61 = vadd.f32 %v7675_v14, %v2980_v51  ;;  %v7773_v14 = vld [vmem:[%s8733_s28] ss:$0 sm:$0xff] }
 0x1e8   : > { %v3002_v63 = vmax.f32 %v2994_v61, 0.0 }
 0x1ea   : > { %v3010_v35 = vpack.c.bf16 %v3003_v60, %v3002_v63 }
 0x1ec   : > { %5851 = vmatmul.mubr.msk.bf16.gmra.mxu1 %vm3023_vm8, %v3010_v35 }
 0x1ed   : > { %5870 = vmatprep.mubr.msk.bf16.mxu1 %vm6042_vm9, %v8732_v56 }
 0x297   : > { %v5848_v9 = vpop.f32.mrf.mxu1 }
 0x298   : > { %v3079_v30 = vadd.f32 %v5848_v9, %v7773_v14 }
 0x299   : > { %v3070_v40 = vpop.f32.mrf.mxu1 }
 0x29a   : > { %v3071_v10 = vadd.f32 %v7773_v14, %v3070_v40  ;;  %v3103_v58 = vmax.f32 %v3079_v30, 0.0 }
 0x29b   : > { %v5849_v27 = vpop.f32.mrf.mxu1 }
 0x29c   : > { %v3101_v5 = vmax.f32 %v3071_v10, 0.0  ;;  %v3122_v11 = vrot.slane %v3103_v58, 7  ;;  %v3082_v55 = vadd.f32 %v5849_v27, %v7773_v14 }
 0x29d   : > { %v3073_v48 = vpop.f32.mrf.mxu1 }
 0x29e   : > { %v3120_v0 = vrot.slane %v3101_v5, 7  ;;  %v3138_v2 = vsel %vm838_vm0, 0.0, %v3122_v11  ;;  %v3104_v37 = vmax.f32 %v3082_v55, 0.0  ;;  %v3074_v24 = vadd.f32 %v7773_v14, %v3073_v48 }
 0x29f   : > { %v3245_v39 = vrot.slane %v3138_v2, 1  ;;  %v3253_v1 = vrot.slane %v3138_v2, 2  ;;  %v3261_v44 = vrot.slane %v3138_v2, 3  ;;  %v7798_v38 = vsel %vm838_vm0, %v3122_v11, 0.0 }
 0x2a0   : > { %v7779_v32 = vsel %vm838_vm0, 0.0, %v3120_v0  ;;  %v3123_v22 = vrot.slane %v3104_v37, 7  ;;  %v3102_v46 = vmax.f32 %v3074_v24, 0.0  ;;  %v3144_v17 = vsel %vm838_vm0, %v3120_v0, 0.0 }
 0x2a1   : > { %v3244_v15 = vrot.slane %v7779_v32, 1  ;;  %v3252_v36 = vrot.slane %v7779_v32, 2  ;;  %v3281_v49 = vsel %vm838_vm0, %v3138_v2, %v3245_v39  ;;  %v3313_v57 = vsel %vm838_vm0, %v3245_v39, %v3253_v1 }
 0x2a2   : > { %v3121_v43 = vrot.slane %v3102_v46, 7  ;;  %v3139_v28 = vsel %vm838_vm0, 0.0, %v3123_v22  ;;  %v3285_v3 = vsel %vm1111_vm1, %v3281_v49, %v3253_v1  ;;  %v3260_v29 = vrot.slane %v7779_v32, 3 }
 0x2a3   : > { %v3280_v4 = vsel %vm838_vm0, %v7779_v32, %v3244_v15  ;;  %v3273_v34 = vrot.slane %v7798_v38, 4  ;;  %v3317_v47 = vsel %vm1111_vm1, %v3313_v57, %v3261_v44  ;;  %v3157_v53 = vrot.slane %v3139_v28, 1 }
 0x2a4   : > { %v3284_v19 = vsel %vm1111_vm1, %v3280_v4, %v3252_v36  ;;  %v3137_v21 = vsel %vm838_vm0, 0.0, %v3121_v43  ;;  %v3165_v52 = vrot.slane %v3139_v28, 2  ;;  %v3297_v18 = vrot.slane %v3138_v2, 4 }
 0x2a5   : > { %v3156_v12 = vrot.slane %v3137_v21, 1  ;;  %v3305_v13 = vrot.slane %v7798_v38, 5  ;;  %v3288_v6 = vsel %vm1121_vm2, %v3284_v19, %v3260_v29  ;;  %v3164_v59 = vrot.slane %v3137_v21, 2 }
 0x2a6   : > { %v3289_v31 = vsel %vm1121_vm2, %v3285_v3, %v3261_v44  ;;  %v3272_v7 = vrot.slane %v3144_v17, 4  ;;  %v3172_v51 = vrot.slane %v3137_v21, 3  ;;  %v3321_v63 = vsel %vm1121_vm2, %v3317_v47, %v3297_v18  ;;  %v8739_v47 = vld [vmem:[#allocation11_spill] sm:$0xff] }
 0x2a7   : > { %v3192_v8 = vsel %vm838_vm0, %v3137_v21, %v3156_v12  ;;  %v3296_v60 = vrot.slane %v7779_v32, 4  ;;  %v3312_v35 = vsel %vm838_vm0, %v3244_v15, %v3252_v36  ;;  %v3173_v42 = vrot.slane %v3139_v28, 3 }
 0x2a8   : > { %v3292_v16 = vsel %vm1131_vm3, %v3288_v6, %v3272_v7  ;;  %v3193_v9 = vsel %vm838_vm0, %v3139_v28, %v3157_v53  ;;  %v3225_v30 = vsel %vm838_vm0, %v3157_v53, %v3165_v52  ;;  %v3224_v40 = vsel %vm838_vm0, %v3156_v12, %v3164_v59  ;;  %v8741_v7 = vld [vmem:[#allocation9_spill] sm:$0xff] }
 0x2a9   : > { %v3293_v10 = vsel %vm1131_vm3, %v3289_v31, %v3273_v34  ;;  %v3196_v58 = vsel %vm1111_vm1, %v3192_v8, %v3164_v59  ;;  %v3228_v5 = vsel %vm1111_vm1, %v3224_v40, %v3172_v51  ;;  %v3316_v0 = vsel %vm1111_vm1, %v3312_v35, %v3260_v29  ;;  %v8740_v31 = vld [vmem:[#allocation8_spill] sm:$0xff]  ;;  %v8742_v8 = vld [vmem:[#allocation10_spill] sm:$0xff] }
 0x2aa   : > { %v3145_v11 = vsel %vm838_vm0, %v3121_v43, 0.0  ;;  %v3208_v55 = vrot.slane %v3137_v21, 4  ;;  %v3380_v48 = vmul.f32 %v7795_v33, %v3292_v16  ;;  %v3197_v2 = vsel %vm1111_vm1, %v3193_v9, %v3165_v52 }
 0x2ab   : > { %v3229_v37 = vsel %vm1111_vm1, %v3225_v30, %v3173_v42  ;;  %v3147_v24 = vsel %vm838_vm0, %v3123_v22, 0.0  ;;  %v3209_v39 = vrot.slane %v3139_v28, 4  ;;  %v3200_v1 = vsel %vm1121_vm2, %v3196_v58, %v3172_v51 }
 0x2ac   : > { %v5852_v26 = vpop.f32.mrf.mxu1  ;;  %v3232_v46 = vsel %vm1121_vm2, %v3228_v5, %v3208_v55  ;;  %v3320_v36 = vsel %vm1121_vm2, %v3316_v0, %v3296_v60  ;;  %v3184_v4 = vrot.slane %v3145_v11, 4  ;;  %v3216_v44 = vrot.slane %v3145_v11, 5 }
 0x2ad   : > { %v3095_v32 = vadd.f32 %v5852_v26, %v7773_v14  ;;  %v3304_v43 = vrot.slane %v3144_v17, 5  ;;  %v3201_v38 = vsel %vm1121_vm2, %v3197_v2, %v3173_v42  ;;  %v3233_v57 = vsel %vm1121_vm2, %v3229_v37, %v3209_v39  ;;  %v8738_v17 = vld [vmem:[#allocation14_spill] sm:$0xff] }
 0x2ae   : > { %v3086_v61 = vpop.f32.mrf.mxu1  ;;  %v3185_v21 = vrot.slane %v3147_v24, 4  ;;  %v3217_v26 = vrot.slane %v3147_v24, 5  ;;  %v7849_v22 = vsel %vm1131_vm3, %v3200_v1, %v3184_v4  ;;  %v7852_v28 = vsel %vm1131_vm3, %v3232_v46, %v3216_v44 }
 0x2af   : > { %v3087_v27 = vadd.f32 %v7773_v14, %v3086_v61  ;;  %v3107_v19 = vmax.f32 %v3095_v32, 0.0  ;;  %v3325_v3 = vsel %vm1131_vm3, %v3321_v63, %v3305_v13  ;;  %v3381_v29 = vmul.f32 %v7795_v33, %v3293_v10 }
 0x2b0   : > { %v3324_v12 = vsel %vm1131_vm3, %v3320_v36, %v3304_v43  ;;  %v7859_v34 = vrot.slane %v7791_v45, %v8738_v17  ;;  %v3384_v53 = vadd.f32 %v3380_v48, %v8739_v47  ;;  %v3205_v52 = vsel %vm1131_vm3, %v3201_v38, %v3185_v21  ;;  %v5853_v59 = vpop.f32.mrf.mxu1 }
 0x2b1   : > { %v3105_v15 = vmax.f32 %v3087_v27, 0.0  ;;  %v3237_v18 = vsel %vm1131_vm3, %v3233_v57, %v3217_v26  ;;  %v3333_v13 = vmul.f32 %v8740_v31, %v7849_v22  ;;  %v3345_v51 = vmul.f32 %v8741_v7, %v7852_v28 }
 0x2b2   : > { %v3357_v61 = vmul.f32 %v8742_v8, %v7849_v22  ;;  %v3126_v45 = vrot.slane %v3107_v19, 7  ;;  %v3392_v63 = vmul.f32 %v7803_v20, %v3324_v12  ;;  %v3404_v60 = vmul.f32 %v7808_v62, %v3292_v16  ;;  %v3089_v55 = vpop.f32.mrf.mxu1 }
 0x2b3   : > { %v3124_v49 = vrot.slane %v3105_v15, 7  ;;  %v3334_v9 = vmul.f32 %v8740_v31, %v3205_v52  ;;  %v3346_v30 = vmul.f32 %v8741_v7, %v3237_v18  ;;  %v3358_v40 = vmul.f32 %v8742_v8, %v3205_v52 }
 0x2b4   : > { %v7878_v5 = vmul.f32 %v7808_v62, %v3293_v10  ;;  %v3396_v27 = vadd.f32 %v3392_v63, %v3384_v53  ;;  %v3349_v32 = vadd.f32 %v3345_v51, %v3333_v13  ;;  %v3365_v16 = vrot.slane %v3357_v61, 1 }
 0x2b5   : > { %v3140_v6 = vsel %vm838_vm0, 0.0, %v3124_v49  ;;  %v3148_v58 = vsel %vm838_vm0, %v3124_v49, 0.0  ;;  %v3142_v48 = vsel %vm838_vm0, 0.0, %v3126_v45  ;;  %v3098_v39 = vadd.f32 %v5853_v59, %v7773_v14 }
 0x2b6   : > { %v3246_v35 = vrot.slane %v3140_v6, 1  ;;  %v3254_v42 = vrot.slane %v3140_v6, 2  ;;  %v3262_v0 = vrot.slane %v3140_v6, 3  ;;  %v3274_v37 = vrot.slane %v3148_v58, 4 }
 0x2b7   : > { %v3412_v10 = vrot.slane %v3404_v60, 1  ;;  %v3350_v1 = vadd.f32 %v3346_v30, %v3334_v9  ;;  %v3366_v46 = vrot.slane %v3358_v40, 1  ;;  %v3090_v36 = vadd.f32 %v7773_v14, %v3089_v55  ;;  %v7899_v14 = vld [vmem:[%s8602_s0 + $0x8] ss:$0 sm:$0xff] }
 0x2b8   : > { %v3282_v11 = vsel %vm838_vm0, %v3140_v6, %v3246_v35  ;;  %v3314_v24 = vsel %vm838_vm0, %v3246_v35, %v3254_v42  ;;  %v3247_v4 = vrot.slane %v3142_v48, 1  ;;  %v3108_v43 = vmax.f32 %v3098_v39, 0.0 }
 0x2b9   : > { %v3286_v2 = vsel %vm1111_vm1, %v3282_v11, %v3254_v42  ;;  %v3318_v49 = vsel %vm1111_vm1, %v3314_v24, %v3262_v0  ;;  %v3373_v38 = vadd.f32 %v3365_v16, %v3349_v32  ;;  %v3255_v57 = vrot.slane %v3142_v48, 2 }
 0x2ba   : > { %v3290_v15 = vsel %vm1121_vm2, %v3286_v2, %v3262_v0  ;;  %v3298_v19 = vrot.slane %v3140_v6, 4  ;;  %v3106_v21 = vmax.f32 %v3090_v36, 0.0  ;;  %v3393_v26 = vmul.f32 %v7803_v20, %v3325_v3 }
 0x2bb   : > { %v3294_v44 = vsel %vm1131_vm3, %v3290_v15, %v3274_v37  ;;  %v3413_v12 = vrot.slane %v7878_v5, 1  ;;  %v7891_v47 = vadd.f32 %v3412_v10, %v3396_v27  ;;  %v7894_v53 = vsel %vm838_vm0, %v3126_v45, 0.0 }
 0x2bc   : > { %v3322_v59 = vsel %vm1121_vm2, %v3318_v49, %v3298_v19  ;;  %v3382_v13 = vmul.f32 %v7795_v33, %v3294_v44  ;;  %v3127_v6 = vrot.slane %v3108_v43, 7  ;;  %v3125_v51 = vrot.slane %v3106_v21, 7 }
 0x2bd   : > { %v3429_v3 = vmul.f32 %v7813_v50, %v3205_v52  ;;  %v3263_v61 = vrot.slane %v3142_v48, 3  ;;  %v3283_v63 = vsel %vm838_vm0, %v3142_v48, %v3247_v4  ;;  %v3306_v60 = vrot.slane %v3148_v58, 5 }
 0x2be   : > { %v7906_v45 = vmul.f32 %v7859_v34, %v3237_v18  ;;  %v3385_v35 = vadd.f32 %v3381_v29, %v3373_v38  ;;  %v3315_v42 = vsel %vm838_vm0, %v3247_v4, %v3255_v57  ;;  %v3374_v9 = vadd.f32 %v3366_v46, %v3350_v1 }
 0x2bf   : > { %v7910_v30 = vmul.f32 %v7899_v14, %v3205_v52  ;;  %v3428_v40 = vmul.f32 %v7813_v50, %v7849_v22  ;;  %v3275_v5 = vrot.slane %v7894_v53, 4  ;;  %v3326_v27 = vsel %vm1131_vm3, %v3322_v59, %v3306_v60 }
 0x2c0   : > { %v3287_v0 = vsel %vm1111_vm1, %v3283_v63, %v3255_v57  ;;  %v3386_v58 = vadd.f32 %v3382_v13, %v3374_v9  ;;  %v3143_v18 = vsel %vm838_vm0, 0.0, %v3127_v6  ;;  %v3141_v29 = vsel %vm838_vm0, 0.0, %v3125_v51 }
 0x2c1   : > { %v3299_v11 = vrot.slane %v3142_v48, 4  ;;  %v3307_v55 = vrot.slane %v7894_v53, 5  ;;  %v3319_v52 = vsel %vm1111_vm1, %v3315_v42, %v3263_v61  ;;  %v3158_v32 = vrot.slane %v3141_v29, 1 }
 0x2c2   : > { %v3397_v16 = vadd.f32 %v3393_v26, %v3385_v35  ;;  %v3394_v2 = vmul.f32 %v7803_v20, %v3326_v27  ;;  %v3149_v37 = vsel %vm838_vm0, %v3125_v51, 0.0  ;;  %v3166_v15 = vrot.slane %v3141_v29, 2 }
 0x2c3   : > { %v3291_v24 = vsel %vm1121_vm2, %v3287_v0, %v3263_v61  ;;  %v3406_v39 = vmul.f32 %v7808_v62, %v3294_v44  ;;  %v3159_v10 = vrot.slane %v3143_v18, 1  ;;  %v3174_v1 = vrot.slane %v3141_v29, 3 }
 0x2c4   : > { %v3323_v46 = vsel %vm1121_vm2, %v3319_v52, %v3299_v11  ;;  %v3398_v48 = vadd.f32 %v3394_v2, %v3386_v58  ;;  %v3167_v36 = vrot.slane %v3143_v18, 2  ;;  %v3194_v4 = vsel %vm838_vm0, %v3141_v29, %v3158_v32 }
 0x2c5   : > { %v3186_v49 = vrot.slane %v3149_v37, 4  ;;  %v3198_v43 = vsel %vm1111_vm1, %v3194_v4, %v3166_v15  ;;  %v3210_v38 = vrot.slane %v3141_v29, 4  ;;  %v3226_v57 = vsel %vm838_vm0, %v3158_v32, %v3166_v15 }
 0x2c6   : > { %v3421_v19 = vadd.f32 %v3413_v12, %v3397_v16  ;;  %v3202_v21 = vsel %vm1121_vm2, %v3198_v43, %v3174_v1  ;;  %v3218_v26 = vrot.slane %v3149_v37, 5  ;;  %v3230_v44 = vsel %vm1111_vm1, %v3226_v57, %v3174_v1 }
 0x2c7   : > { %v3414_v53 = vrot.slane %v3406_v39, 1  ;;  %v3195_v59 = vsel %vm838_vm0, %v3143_v18, %v3159_v10  ;;  %v3206_v13 = vsel %vm1131_vm3, %v3202_v21, %v3186_v49  ;;  %v3234_v51 = vsel %vm1121_vm2, %v3230_v44, %v3210_v38  ;;  %v5471_v44 = vld [vmem:[%s8743_s3] ss:$0 sm:$0xff] }
 0x2c8   : > { %v3175_v61 = vrot.slane %v3143_v18, 3  ;;  %v3238_v63 = vsel %vm1131_vm3, %v3234_v51, %v3218_v26  ;;  %v3335_v60 = vmul.f32 %v8740_v31, %v3206_v13  ;;  %v3359_v35 = vmul.f32 %v8742_v8, %v3206_v13 }
 0x2c9   : > { %v3295_v12 = vsel %vm1131_vm3, %v3291_v24, %v3275_v5  ;;  %v3422_v42 = vadd.f32 %v3414_v53, %v3398_v48  ;;  %v3227_v9 = vsel %vm838_vm0, %v3159_v10, %v3167_v36  ;;  %v3347_v27 = vmul.f32 %v8741_v7, %v3238_v63 }
 0x2ca   : > { %v3433_v0 = vadd.f32 %v3429_v3, %v3421_v19  ;;  %v3452_v58 = vmul.f32 %v7899_v14, %v7849_v22  ;;  %v3199_v29 = vsel %vm1111_vm1, %v3195_v59, %v3167_v36  ;;  %v3367_v11 = vrot.slane %v3359_v35, 1 }
 0x2cb   : > { %v3327_v52 = vsel %vm1131_vm3, %v3323_v46, %v3307_v55  ;;  %v3151_v31 = vsel %vm838_vm0, %v3127_v6, 0.0  ;;  %v3351_v32 = vadd.f32 %v3347_v27, %v3335_v60  ;;  %v3430_v8 = vmul.f32 %v7813_v50, %v3206_v13  ;;  %v5943_v27 = vld [vmem:[%s8500_s13 + $0x18] sm:$0xff]  }
 0x2cc   : > { %v3432_v5 = vadd.f32 %v3428_v40, %v7891_v47  ;;  %v3383_v16 = vmul.f32 %v7795_v33, %v3295_v12  ;;  %v3407_v7 = vmul.f32 %v7808_v62, %v3295_v12  ;;  %v3231_v3 = vsel %vm1111_vm1, %v3227_v9, %v3175_v61  ;;  %5863 = vmatpush3.bf16.msra.mxu1 %v5943_v27 }
 0x2cd   : > { %v3203_v22 = vsel %vm1121_vm2, %v3199_v29, %v3175_v61  ;;  %v3211_v2 = vrot.slane %v3143_v18, 4  ;;  %v3375_v37 = vadd.f32 %v3367_v11, %v3351_v32  ;;  %v3434_v15 = vadd.f32 %v3430_v8, %v3422_v42  ;;  %5864 = vmatprep.subr.bf16.mxu1 %v8732_v56  ;;  %v5946_v29 = vld [vmem:[%s8500_s13] sm:$0xff]   ;;  %v8745_v32 = vld [vmem:[#allocation5_spill] sm:$0xff] }
 0x2ce   : > { %v3440_v55 = vmul.f32 %v7859_v34, %v7852_v28  ;;  %v3445_v6 = vadd.f32 %v7906_v45, %v3433_v0  ;;  %v3395_v24 = vmul.f32 %v7803_v20, %v3327_v52  ;;  %v3187_v39 = vrot.slane %v3151_v31, 4  ;;  %v5944_v0 = vld [vmem:[%s8500_s13 + $0x10] sm:$0xff]   ;;  %v3569_v11 = vld [vmem:[%s8498_s11] sm:$0xff] }
 0x2cf   : > { %v3235_v47 = vsel %vm1121_vm2, %v3231_v3, %v3211_v2  ;;  %v3387_v33 = vadd.f32 %v3383_v16, %v3375_v37  ;;  %v3442_v62 = vmul.f32 %v7859_v34, %v3238_v63  ;;  %v3454_v40 = vmul.f32 %v7899_v14, %v3206_v13  ;;  %v8744_v52 = vld [vmem:[#allocation6_spill] sm:$0xff]  ;;  %v8746_v16 = vld [vmem:[#allocation7_spill] sm:$0xff] }
 0x2d0   : > { %v3461_v10 = vrot.slane %v7910_v30, 1  ;;  %v3207_v18 = vsel %vm1131_vm3, %v3203_v22, %v3187_v39  ;;  %v3219_v1 = vrot.slane %v3151_v31, 5  ;;  %v3444_v46 = vadd.f32 %v3440_v55, %v3432_v5  ;;  %5865 = vmatpush3.bf16.msra.mxu1 %v5944_v0  ;;  %v5472_v3 = vld [vmem:[%s8497_s10] ss:$0 sm:$0xff] }
 0x2d1   : > { %v3415_v48 = vrot.slane %v3407_v7, 1  ;;  %v3399_v28 = vadd.f32 %v3395_v24, %v3387_v33  ;;  %v3446_v36 = vadd.f32 %v3442_v62, %v3434_v15  ;;  %v3460_v45 = vrot.slane %v3452_v58, 1  ;;  %v5945_v58 = vld [vmem:[%s8500_s13 + $0x8] sm:$0xff]   ;;  %5866 = vmatprep.subr.bf16.mxu1 %v8732_v56 }
 0x2d2   : > { %v3469_v4 = vadd.f32 %v3461_v10, %v3445_v6  ;;  %v3239_v20 = vsel %vm1131_vm3, %v3235_v47, %v3219_v1  ;;  %v3431_v49 = vmul.f32 %v7813_v50, %v3207_v18  ;;  %v3455_v43 = vmul.f32 %v7899_v14, %v3207_v18 }
 0x2d3   : > { %v3423_v38 = vadd.f32 %v3415_v48, %v3399_v28  ;;  %v3462_v57 = vrot.slane %v3454_v40, 1  ;;  %v3468_v19 = vadd.f32 %v3460_v45, %v3444_v46  ;;  %v3443_v30 = vmul.f32 %v7859_v34, %v3239_v20 }
 0x2d4   : > { %v3479_v53 = vadd.f32 %v5471_v44, %v3469_v4  ;;  %v3463_v59 = vrot.slane %v3455_v43, 1  ;;  %5867 = vmatpush3.bf16.msra.mxu1 %v5945_v58  ;;  %v7989_v31 = vrot.slane %v3569_v11, %v8744_v52  ;;  %v7992_v8 = vrot.slane %v3569_v11, %v8745_v32 }
 0x2d5   : > { %v3435_v21 = vadd.f32 %v3431_v49, %v3423_v38  ;;  %v3470_v26 = vadd.f32 %v3462_v57, %v3446_v36  ;;  %v3478_v51 = vadd.f32 %v5471_v44, %v3468_v19  ;;  %5868 = vmatprep.subr.bf16.mxu1 %v8732_v56  ;;  %v7996_v7 = vrot.slane %v3569_v11, %v8746_v16 }
 0x2d6   : > { %v3483_v50 = vmax.f32 %v3479_v53, 0.0  ;;  %v3604_v5 = vmul.f32 0.0, %v7989_v31  ;;  %v3592_v2 = vmul.f32 0.0, %v7992_v8  ;;  %v8004_v10 = vrot.slane %v3569_v11, %v8734_v23 }
 0x2d7   : > { %v3447_v13 = vadd.f32 %v3443_v30, %v3435_v21  ;;  %v3480_v63 = vadd.f32 %v5471_v44, %v3470_v26  ;;  %v3482_v14 = vmax.f32 %v3478_v51, 0.0  ;;  %v3628_v15 = vmul.f32 0.0, %v7996_v7 }
 0x2d8   : > { %5869 = vmatpush3.bf16.msra.mxu1 %v5946_v29  ;;  %v3612_v37 = vrot.slane %v3604_v5, 1  ;;  %v8007_v18 = vrot.slane %v3569_v11, %v8735_v41  ;;  %v8012_v4 = vrot.slane %v3569_v11, %v8736_v54 }
 0x2d9   : > { %v3471_v61 = vadd.f32 %v3463_v59, %v3447_v13  ;;  %v3484_v35 = vmax.f32 %v3480_v63, 0.0  ;;  %v3495_v42 = vcombine.low %v3482_v14, %v3483_v50  ;;  %5886 = vmatprep.subr.bf16.mxu1 %v8732_v56  ;;  %v3636_v47 = vrot.slane %v3628_v15, 2 }
 0x2da   : > { %v3620_v39 = vadd.f32 %v3612_v37, %v3592_v2 }
 0x2db   : > { %v3481_v60 = vadd.f32 %v5471_v44, %v3471_v61 }
 0x2dc   : > { %v3644_v45 = vadd.f32 %v3636_v47, %v3620_v39 }
 0x2dd   : > { %v3485_v12 = vmax.f32 %v3481_v60, 0.0 }
 0x2df   : > { %v3496_v9 = vcombine.low %v3484_v35, %v3485_v12  ;;  %v3711_v35 = vrot.slane %v3569_v11, %v8737_v25  ;;  %v3723_v12 = vrot.slane %v3569_v11, %v8738_v17 }
 0x2e1   : > { %v3499_v34 = vpack.c.bf16 %v3496_v9, %v3495_v42 }
 0x2e3   : > { %5859 = vmatmul.mubr.msk.bf16.vlgmr.msra.gmra.mxu0 %vm3518_vm10, %v3499_v34 }
 0x2e4   : > { %5882 = vmatprep.mubr.msk.bf16.mxu0 %vm6042_vm9, %v8732_v56 }
 0x3a3   : > { %v3556_v22 = vpop.f32.mrf.mxu0 }
 0x3a4   : > { %v3557_v55 = vadd.f32 %v5472_v3, %v3556_v22 }
 0x3a5   : > { %v5860_v6 = vpop.f32.mrf.mxu0 }
 0x3a6   : > { %v3563_v24 = vmax.f32 %v3557_v55, 0.0  ;;  %v5476_v55 = vld [vmem:[%s8498_s11 + $0x8] ss:$0 sm:$0xff]  ;;  %v3715_v6 = vmul.f32 0.0, %v3711_v35 }
 0x3a7   : > { %v3559_v33 = vpop.f32.mrf.mxu0 }
 0x3a8   : > { %v3567_v62 = vcombine.high %v3563_v24, %v3563_v24  ;;  %v3572_v40 = vrot.slane %v3563_v24, 7  ;;  %v3560_v28 = vadd.f32 %v5472_v3, %v3559_v33  ;;  %v3727_v24 = vmul.f32 0.0, %v3723_v12 }
 0x3a9   : > { %v5861_v1 = vpop.f32.mrf.mxu0 }
 0x3aa   : > { %v3573_v46 = vrot.slane %v3567_v62, 7  ;;  %v3580_v48 = vsel %vm838_vm0, 0.0, %v3572_v40  ;;  %v3564_v44 = vmax.f32 %v3560_v28, 0.0 }
 0x3ab   : > { %v3584_v36 = vsel %vm1141_vm4, %v3580_v48, 0.0 }
 0x3ac   : > { %v3581_v20 = vsel %vm838_vm0, 0.0, %v3573_v46  ;;  %v3605_v49 = vmul.f32 %v7989_v31, %v3584_v36  ;;  %v3629_v43 = vmul.f32 %v7996_v7, %v3584_v36  ;;  %v3652_v57 = vmul.f32 %v8004_v10, %v3584_v36 }
 0x3ad   : > { %v3585_v38 = vsel %vm1141_vm4, %v3581_v20, 0.0  ;;  %v3664_v19 = vmul.f32 %v8007_v18, %v3584_v36  ;;  %v3593_v30 = vmul.f32 %v7992_v8, %v3584_v36  ;;  %v3688_v51 = vmul.f32 %v8012_v4, %v3584_v36 }
 0x3ae   : > { %v3606_v21 = vmul.f32 %v7989_v31, %v3585_v38  ;;  %v3613_v26 = vrot.slane %v3605_v49, 1  ;;  %v3630_v53 = vmul.f32 %v7996_v7, %v3585_v38  ;;  %v3637_v59 = vrot.slane %v3629_v43, 2 }
 0x3af   : > { %v3656_v13 = vadd.f32 %v3652_v57, %v3644_v45  ;;  %v3665_v50 = vmul.f32 %v8007_v18, %v3585_v38  ;;  %v3672_v60 = vrot.slane %v3664_v19, 1  ;;  %v3594_v14 = vmul.f32 %v7992_v8, %v3585_v38 }
 0x3b0   : > { %v3614_v61 = vrot.slane %v3606_v21, 1  ;;  %v3621_v63 = vadd.f32 %v3613_v26, %v3593_v30  ;;  %v3653_v9 = vmul.f32 %v8004_v10, %v3585_v38  ;;  %v3568_v27 = vcombine.high %v3564_v44, %v3564_v44 }
 0x3b1   : > { %v3680_v34 = vadd.f32 %v3672_v60, %v3656_v13  ;;  %v3638_v0 = vrot.slane %v3630_v53, 2  ;;  %v3696_v58 = vrot.slane %v3688_v51, 2  ;;  %v3574_v29 = vrot.slane %v3564_v44, 7 }
 0x3b2   : > { %v3645_v42 = vadd.f32 %v3637_v59, %v3621_v63  ;;  %v3622_v5 = vadd.f32 %v3614_v61, %v3594_v14  ;;  %v3673_v22 = vrot.slane %v3665_v50, 1  ;;  %v3689_v2 = vmul.f32 %v8012_v4, %v3585_v38 }
 0x3b3   : > { %v3575_v37 = vrot.slane %v3568_v27, 7  ;;  %v3704_v15 = vadd.f32 %v3696_v58, %v3680_v34  ;;  %v3582_v11 = vsel %vm838_vm0, 0.0, %v3574_v29  ;;  %v3712_v40 = vmul.f32 %v3711_v35, %v3585_v38 }
 0x3b4   : > { %v3657_v3 = vadd.f32 %v3653_v9, %v3645_v42  ;;  %v3586_v33 = vsel %vm1141_vm4, %v3582_v11, 0.0  ;;  %v3646_v62 = vadd.f32 %v3638_v0, %v3622_v5  ;;  %v3697_v28 = vrot.slane %v3689_v2, 2 }
 0x3b5   : > { %v3583_v47 = vsel %vm838_vm0, 0.0, %v3575_v37  ;;  %v3607_v46 = vmul.f32 %v7989_v31, %v3586_v33  ;;  %v3631_v48 = vmul.f32 %v7996_v7, %v3586_v33  ;;  %v3724_v36 = vmul.f32 %v3723_v12, %v3585_v38 }
 0x3b6   : > { %v3681_v39 = vadd.f32 %v3673_v22, %v3657_v3  ;;  %v3587_v1 = vsel %vm1141_vm4, %v3583_v47, 0.0  ;;  %v3654_v45 = vmul.f32 %v8004_v10, %v3586_v33  ;;  %v3748_v20 = vmul.f32 %v5476_v55, %v3585_v38 }
 0x3b7   : > { %v3716_v49 = vadd.f32 %v3712_v40, %v3704_v15  ;;  %v3595_v43 = vmul.f32 %v7992_v8, %v3586_v33  ;;  %v3615_v57 = vrot.slane %v3607_v46, 1  ;;  %v3666_v19 = vmul.f32 %v8007_v18, %v3586_v33 }
 0x3b8   : > { %v3705_v30 = vadd.f32 %v3697_v28, %v3681_v39  ;;  %v3658_v21 = vadd.f32 %v3654_v45, %v3646_v62  ;;  %v3667_v26 = vmul.f32 %v8007_v18, %v3587_v1  ;;  %v3690_v44 = vmul.f32 %v8012_v4, %v3586_v33 }
 0x3b9   : > { %v3623_v31 = vadd.f32 %v3615_v57, %v3595_v43  ;;  %v3639_v53 = vrot.slane %v3631_v48, 2  ;;  %v3655_v7 = vmul.f32 %v8004_v10, %v3587_v1  ;;  %v3674_v59 = vrot.slane %v3666_v19, 1 }
 0x3ba   : > { %v3691_v13 = vmul.f32 %v8012_v4, %v3587_v1  ;;  %v3698_v38 = vrot.slane %v3690_v44, 2  ;;  %v3713_v51 = vmul.f32 %v3711_v35, %v3586_v33  ;;  %v3725_v61 = vmul.f32 %v3723_v12, %v3586_v33  ;;  %v5949_v44 = vld [vmem:[%s8504_s17 + $0x8] sm:$0xff]  }
 0x3bb   : > { %v3647_v8 = vadd.f32 %v3639_v53, %v3623_v31  ;;  %v3682_v63 = vadd.f32 %v3674_v59, %v3658_v21  ;;  %v3726_v50 = vmul.f32 %v3723_v12, %v3587_v1  ;;  %v3749_v60 = vmul.f32 %v5476_v55, %v3586_v33  ;;  %v5947_v21 = vld [vmem:[%s8504_s17 + $0x18] sm:$0xff]   ;;  %v5950_v31 = vld [vmem:[%s8504_s17] sm:$0xff]  }
 0x3bc   : > { %v3732_v14 = vrot.slane %v3724_v36, 1  ;;  %v3675_v42 = vrot.slane %v3667_v26, 1  ;;  %v3733_v9 = vrot.slane %v3725_v61, 1  ;;  %v3717_v18 = vadd.f32 %v3713_v51, %v3705_v30  ;;  %5875 = vmatpush3.bf16.msra.mxu0 %v5947_v21  ;;  %v5948_v26 = vld [vmem:[%s8504_s17 + $0x10] sm:$0xff]   ;;  %v8070_v53 = vld [vmem:[%s8502_s15] sm:$0xff] }
 0x3bd   : > { %v3659_v34 = vadd.f32 %v3655_v7, %v3647_v8  ;;  %v3706_v27 = vadd.f32 %v3698_v38, %v3682_v63  ;;  %v3714_v0 = vmul.f32 %v3711_v35, %v3587_v1  ;;  %v3750_v58 = vmul.f32 %v5476_v55, %v3587_v1  ;;  %v5477_v35 = vld [vmem:[%s8499_s12] ss:$0 sm:$0xff]  ;;  %5876 = vmatprep.subr.bf16.mxu0 %v8732_v56 }
 0x3be   : > { %v3740_v29 = vadd.f32 %v3732_v14, %v3716_v49  ;;  %v3699_v10 = vrot.slane %v3691_v13, 2  ;;  %v3751_v5 = vmul.f32 0.0, %v5476_v55  ;;  %v3741_v3 = vadd.f32 %v3733_v9, %v3717_v18  ;;  %v5478_v13 = vld [vmem:[%s8501_s14] ss:$0 sm:$0xff] }
 0x3bf   : > { %v3683_v4 = vadd.f32 %v3675_v42, %v3659_v34  ;;  %v3718_v22 = vadd.f32 %v3714_v0, %v3706_v27  ;;  %v3734_v2 = vrot.slane %v3726_v50, 1  ;;  %v3757_v37 = vrot.slane %v3749_v60, 2  ;;  %v8747_v8 = vld [vmem:[#allocation2_spill] sm:$0xff]  ;;  %v8748_v50 = vld [vmem:[#allocation3_spill] sm:$0xff] }
 0x3c0   : > { %v3735_v15 = vrot.slane %v3727_v24, 1  ;;  %v3756_v11 = vrot.slane %v3748_v20, 2  ;;  %v3758_v47 = vrot.slane %v3750_v58, 2  ;;  %v3759_v40 = vrot.slane %v3751_v5, 2  ;;  %5877 = vmatpush3.bf16.msra.mxu0 %v5948_v26 }
 0x3c1   : > { %v3707_v12 = vadd.f32 %v3699_v10, %v3683_v4  ;;  %v3742_v39 = vadd.f32 %v3734_v2, %v3718_v22  ;;  %v3765_v33 = vadd.f32 %v3757_v37, %v3741_v3  ;;  %5878 = vmatprep.subr.bf16.mxu0 %v8732_v56  ;;  %v3947_v7 = vrot.slane %v8070_v53, %v8745_v32 }
 0x3c2   : > { %v3764_v48 = vadd.f32 %v3756_v11, %v3740_v29  ;;  %v3955_v59 = vrot.slane %v8070_v53, %v8744_v52  ;;  %v3963_v38 = vrot.slane %v8070_v53, %v8746_v16  ;;  %v3977_v2 = vrot.slane %v8070_v53, %v8734_v23 }
 0x3c3   : > { %v3719_v62 = vadd.f32 %v3715_v6, %v3707_v12  ;;  %v3766_v46 = vadd.f32 %v3758_v47, %v3742_v39  ;;  %v3775_v1 = vadd.f32 %v5477_v35, %v3765_v33  ;;  %v3948_v63 = vmul.f32 %v3947_v7, %v8747_v8 }
 0x3c4   : > { %v3774_v45 = vadd.f32 %v5477_v35, %v3764_v48  ;;  %5879 = vmatpush3.bf16.msra.mxu0 %v5949_v44  ;;  %v3956_v60 = vmul.f32 %v3955_v59, %v8748_v50  ;;  %v3964_v14 = vmul.f32 %v3963_v38, %v8747_v8  ;;  %v3985_v37 = vrot.slane %v8070_v53, %v8735_v41 }
 0x3c5   : > { %v3743_v55 = vadd.f32 %v3735_v15, %v3719_v62  ;;  %v3776_v28 = vadd.f32 %v5477_v35, %v3766_v46  ;;  %v3779_v24 = vmax.f32 %v3775_v1, 0.0  ;;  %5880 = vmatprep.subr.bf16.mxu0 %v8732_v56  ;;  %v3993_v15 = vrot.slane %v8070_v53, %v8736_v54 }
 0x3c6   : > { %v3778_v43 = vmax.f32 %v3774_v45, 0.0  ;;  %v3958_v58 = vadd.f32 %v3956_v60, %v3948_v63  ;;  %v3968_v29 = vrot.slane %v3964_v14, 1  ;;  %v4007_v63 = vrot.slane %v8070_v53, %v8737_v25 }
 0x3c7   : > { %v3767_v36 = vadd.f32 %v3759_v40, %v3743_v55  ;;  %v3780_v20 = vmax.f32 %v3776_v28, 0.0 }
 0x3c8   : > { %v3795_v19 = vcombine.low %v3778_v43, %v3779_v24  ;;  %5881 = vmatpush3.bf16.msra.mxu0 %v5950_v31  ;;  %v3972_v62 = vadd.f32 %v3968_v29, %v3958_v58  ;;  %v5484_v29 = vld [vmem:[%s8502_s15 + $0x8] ss:$0 sm:$0xff] }
 0x3c9   : > { %v3777_v49 = vadd.f32 %v5477_v35, %v3767_v36 }
 0x3cb   : > { %v3781_v57 = vmax.f32 %v3777_v49, 0.0 }
 0x3cd   : > { %v3796_v30 = vcombine.low %v3780_v20, %v3781_v57 }
 0x3cf   : > { %v3799_v6 = vpack.c.bf16 %v3796_v30, %v3795_v19 }
 0x3d1   : > { %5871 = vmatmul.mubr.msk.bf16.vlgmr.msra.gmra.mxu1 %vm3830_vm11, %v3799_v6 }
 0x3d2   : > { %5902 = vmatprep.mubr.msk.bf16.mxu1 %vm6042_vm9, %v8732_v56 }
 0x491   : > { %v3868_v51 = vpop.f32.mrf.mxu1 }
 0x492   : > { %v3869_v61 = vadd.f32 %v5478_v13, %v3868_v51 }
 0x493   : > { %v5872_v42 = vpop.f32.mrf.mxu1 }
 0x494   : > { %v3875_v9 = vmax.f32 %v3869_v61, 0.0 }
 0x495   : > { %v3871_v18 = vpop.f32.mrf.mxu1 }
 0x496   : > { %v3879_v34 = vcombine.high %v3875_v9, %v3875_v9  ;;  %v3884_v27 = vrot.slane %v3875_v9, 7  ;;  %v3872_v0 = vadd.f32 %v5478_v13, %v3871_v18 }
 0x497   : > { %v5873_v10 = vpop.f32.mrf.mxu1 }
 0x498   : > { %v3885_v5 = vrot.slane %v3879_v34, 7  ;;  %v3892_v3 = vsel %vm838_vm0, 0.0, %v3884_v27  ;;  %v3876_v4 = vmax.f32 %v3872_v0, 0.0 }
 0x499   : > { %v3896_v22 = vsel %vm1141_vm4, %v3892_v3, 0.0 }
 0x49a   : > { %v3893_v11 = vsel %vm838_vm0, 0.0, %v3885_v5  ;;  %v3924_v12 = vrot.slane %v3896_v22, 1  ;;  %v3928_v39 = vrot.slane %v3896_v22, 2  ;;  %v3936_v47 = vrot.slane %v3896_v22, 3 }
 0x49b   : > { %v3897_v33 = vsel %vm1141_vm4, %v3893_v11, 0.0  ;;  %v3880_v40 = vcombine.high %v3876_v4, %v3876_v4  ;;  %v3886_v46 = vrot.slane %v3876_v4, 7 }
 0x49c   : > { %v3902_v48 = vrot.slane %v3897_v33, 1  ;;  %v3906_v35 = vrot.slane %v3897_v33, 2  ;;  %v3914_v55 = vrot.slane %v3897_v33, 3  ;;  %v3932_v1 = vsel %vm838_vm0, %v3896_v22, %v3924_v12 }
 0x49d   : > { %v3934_v28 = vsel %vm1111_vm1, %v3932_v1, %v3928_v39  ;;  %v3940_v36 = vsel %vm838_vm0, %v3924_v12, %v3928_v39  ;;  %v3887_v45 = vrot.slane %v3880_v40, 7  ;;  %v3894_v49 = vsel %vm838_vm0, 0.0, %v3886_v46 }
 0x49e   : > { %v3910_v24 = vsel %vm838_vm0, %v3897_v33, %v3902_v48  ;;  %v3918_v20 = vsel %vm838_vm0, %v3902_v48, %v3906_v35  ;;  %v3942_v43 = vsel %vm1111_vm1, %v3940_v36, %v3936_v47  ;;  %v3978_v57 = vmul.f32 %v3977_v2, %v3934_v28 }
 0x49f   : > { %v3912_v19 = vsel %vm1111_vm1, %v3910_v24, %v3906_v35  ;;  %v3920_v30 = vsel %vm1111_vm1, %v3918_v20, %v3914_v55  ;;  %v3986_v6 = vmul.f32 %v3985_v37, %v3942_v43  ;;  %v3994_v21 = vmul.f32 %v3993_v15, %v3934_v28 }
 0x4a0   : > { %v3949_v26 = vmul.f32 %v3947_v7, %v3912_v19  ;;  %v3957_v44 = vmul.f32 %v3955_v59, %v3920_v30  ;;  %v3965_v31 = vmul.f32 %v3963_v38, %v3912_v19  ;;  %v3980_v13 = vadd.f32 %v3978_v57, %v3972_v62 }
 0x4a1   : > { %v3998_v51 = vrot.slane %v3994_v21, 1  ;;  %v3895_v61 = vsel %vm838_vm0, 0.0, %v3887_v45  ;;  %v3898_v8 = vsel %vm1141_vm4, %v3894_v49, 0.0  ;;  %v4015_v7 = vrot.slane %v8070_v53, %v8738_v17 }
 0x4a2   : > { %v3959_v50 = vadd.f32 %v3957_v44, %v3949_v26  ;;  %v3969_v60 = vrot.slane %v3965_v31, 1  ;;  %v3988_v14 = vadd.f32 %v3986_v6, %v3980_v13  ;;  %v3899_v42 = vsel %vm1141_vm4, %v3895_v61, 0.0 }
 0x4a3   : > { %v3903_v9 = vrot.slane %v3899_v42, 1  ;;  %v3925_v18 = vrot.slane %v3898_v8, 1  ;;  %v3929_v59 = vrot.slane %v3898_v8, 2  ;;  %v3937_v38 = vrot.slane %v3898_v8, 3 }
 0x4a4   : > { %v4002_v34 = vadd.f32 %v3998_v51, %v3988_v14  ;;  %v3907_v27 = vrot.slane %v3899_v42, 2  ;;  %v3973_v58 = vadd.f32 %v3969_v60, %v3959_v50  ;;  %v4008_v3 = vmul.f32 %v4007_v63, %v3912_v19  ;;  %v8749_v51 = vld [vmem:[#allocation4_spill] sm:$0xff]  ;;  %v5951_v60 = vld [vmem:[%s8508_s21 + $0x38] sm:$0xff]  }
 0x4a5   : > { %v3933_v0 = vsel %vm838_vm0, %v3898_v8, %v3925_v18  ;;  %v3941_v5 = vsel %vm838_vm0, %v3925_v18, %v3929_v59  ;;  %v3911_v4 = vsel %vm838_vm0, %v3899_v42, %v3903_v9  ;;  %v4016_v12 = vmul.f32 %v4015_v7, %v3920_v30  ;;  %5887 = vmatpush3.bf16.msra.mxu1 %v5951_v60  ;;  %v5952_v14 = vld [vmem:[%s8508_s21 + $0x30] sm:$0xff]   ;;  %v5955_v18 = vld [vmem:[%s8508_s21 + $0x18] sm:$0xff]  }
 0x4a6   : > { %v3935_v10 = vsel %vm1111_vm1, %v3933_v0, %v3929_v59  ;;  %v3943_v22 = vsel %vm1111_vm1, %v3941_v5, %v3937_v38  ;;  %v3915_v39 = vrot.slane %v3899_v42, 3  ;;  %v4010_v47 = vadd.f32 %v4008_v3, %v4002_v34  ;;  %5888 = vmatprep.subr.bf16.mxu1 %v8732_v56  ;;  %v5953_v42 = vld [vmem:[%s8508_s21 + $0x28] sm:$0xff]   ;;  %v5956_v34 = vld [vmem:[%s8508_s21 + $0x10] sm:$0xff]   ;;  %v5958_v59 = vld [vmem:[%s8508_s21] sm:$0xff]  }
 0x4a7   : > { %v3979_v53 = vmul.f32 %v3977_v2, %v3935_v10  ;;  %v3995_v11 = vmul.f32 %v3993_v15, %v3935_v10  ;;  %v3919_v33 = vsel %vm838_vm0, %v3903_v9, %v3907_v27  ;;  %v3987_v40 = vmul.f32 %v3985_v37, %v3943_v22  ;;  %v5485_v37 = vld [vmem:[%s8503_s16] ss:$0 sm:$0xff]  ;;  %v5959_v38 = vld [vmem:[%s8510_s23 + $0xf8] sm:$0xff]  }
 0x4a8   : > { %v4024_v46 = vmul.f32 %v5484_v29, %v3912_v19  ;;  %v3913_v48 = vsel %vm1111_vm1, %v3911_v4, %v3907_v27  ;;  %v4018_v1 = vadd.f32 %v4016_v12, %v4010_v47  ;;  %v3921_v28 = vsel %vm1111_vm1, %v3919_v33, %v3915_v39  ;;  %v5954_v9 = vld [vmem:[%s8508_s21 + $0x20] sm:$0xff]   ;;  %v5962_v27 = vld [vmem:[%s8510_s23 + $0x78] sm:$0xff]  }
 0x4a9   : > { %v3981_v62 = vadd.f32 %v3979_v53, %v3973_v58  ;;  %v3999_v55 = vrot.slane %v3995_v11, 1  ;;  %v4009_v45 = vmul.f32 %v4007_v63, %v3913_v48  ;;  %v4025_v49 = vmul.f32 %v5484_v29, %v3913_v48  ;;  %5889 = vmatpush3.bf16.msra.mxu1 %v5952_v14  ;;  %5657 = vmatprep.subr.bf16.mxu0 %v5962_v27  ;;  %v5964_v0 = vld [vmem:[%s8510_s23 + $0x38] sm:$0xff]   ;;  %v5966_v58 = vld [vmem:[%s8510_s23 + $0x70] sm:$0xff]   ;;  %v4148_v10 = vld [vmem:[%s8506_s19] sm:$0xff] }
 0x4aa   : > { %v4028_v2 = vrot.slane %v4024_v46, 1  ;;  %v4017_v24 = vmul.f32 %v4015_v7, %v3921_v28  ;;  %v6043_v43 = vmov 1983009808   ;;  %5890 = vmatprep.subr.bf16.mxu1 %v8732_v56  ;;  %v5957_v7 = vld [vmem:[%s8508_s21 + $0x8] sm:$0xff]   ;;  %v5968_v29 = vld [vmem:[%s8510_s23 + $0x30] sm:$0xff]   ;;  %v4184_v5 = vrot.slane %v4148_v10, %v8744_v52 }
 0x4ab   : > { %v3989_v35 = vadd.f32 %v3987_v40, %v3981_v62  ;;  %v4057_v57 = vunpack.c.l.s4 %v6043_v43  ;;  %v4029_v30 = vrot.slane %v4025_v49, 1  ;;  %v5486_v3 = vld [vmem:[%s8505_s18] ss:$0 sm:$0xff]  ;;  %v4176_v22 = vrot.slane %v4148_v10, %v8745_v32 }
 0x4ac   : > { %v4032_v20 = vadd.f32 %v4028_v2, %v4018_v1  ;;  %v4185_v53 = vmul.f32 0.0, %v4184_v5  ;;  %v4198_v11 = vrot.slane %v4148_v10, %v8746_v16  ;;  %v4212_v16 = vrot.slane %v4148_v10, %v8734_v23 }
 0x4ad   : > { %v4003_v36 = vadd.f32 %v3999_v55, %v3989_v35  ;;  %v4058_v26 = vunpack.c.0.s8 %v4057_v57  ;;  %5891 = vmatpush3.bf16.msra.mxu1 %v5953_v42  ;;  %v4177_v33 = vmul.f32 0.0, %v4176_v22  ;;  %v4234_v49 = vrot.slane %v4148_v10, %v8736_v54 }
 0x4ae   : > { %v4040_v21 = vadd.f32 %v5485_v37, %v4032_v20  ;;  %5892 = vmatprep.subr.bf16.mxu1 %v8732_v56  ;;  %v4189_v62 = vrot.slane %v4185_v53, 1  ;;  %v4199_v40 = vmul.f32 0.0, %v4198_v11  ;;  %vm4612_vm1 = vcmask 1046534  }
 0x4af   : > { %v4011_v15 = vadd.f32 %v4009_v45, %v4003_v36  ;;  %v8125_v61 = vsub.s32 %v4058_v26, %v8749_v51  ;;  %v4220_v45 = vrot.slane %v4148_v10, %v8735_v41  ;;  %vm8308_vm3 = vmor %vm4611_vm15, %vm4612_vm1 }
 0x4b0   : > { %v4042_v31 = vmax.f32 %v4040_v21, 0.0  ;;  %v4193_v1 = vadd.f32 %v4189_v62, %v4177_v33  ;;  %v4203_v28 = vrot.slane %v4199_v40, 2 }
 0x4b1   : > { %v4019_v19 = vadd.f32 %v4017_v24, %v4011_v15  ;;  %5893 = vmatpush3.bf16.msra.mxu1 %v5954_v9 }
 0x4b2   : > { %5894 = vmatprep.subr.bf16.mxu1 %v8732_v56  ;;  %v4207_v20 = vadd.f32 %v4203_v28, %v4193_v1  ;;  %v5960_v1 = vld [vmem:[%s8510_s23 + $0xb8] sm:$0xff]  }
 0x4b3   : > { %v4033_v6 = vadd.f32 %v4029_v30, %v4019_v19  ;;  %v4256_v19 = vrot.slane %v4148_v10, %v8738_v17  ;;  %v5492_v17 = vld [vmem:[%s8506_s19 + $0x8] ss:$0 sm:$0xff] }
 0x4b5   : > { %v4041_v44 = vadd.f32 %v5485_v37, %v4033_v6  ;;  %5895 = vmatpush3.bf16.msra.mxu1 %v5955_v18 }
 0x4b6   : > { %5896 = vmatprep.subr.bf16.mxu1 %v8732_v56 }
 0x4b7   : > { %v4043_v13 = vmax.f32 %v4041_v44, 0.0 }
 0x4b9   : > { %v4055_v8 = vcombine.low %v4042_v31, %v4043_v13  ;;  %5897 = vmatpush3.bf16.msra.mxu1 %v5956_v34  ;;  %v4248_v31 = vrot.slane %v4148_v10, %v8737_v25 }
 0x4ba   : > { %5898 = vmatprep.subr.bf16.mxu1 %v8732_v56 }
 0x4bb   : > { %v4062_v63 = vrot.slane %v4055_v8, %v8125_v61  ;;  %v4250_v10 = vmul.f32 0.0, %v4248_v31 }
 0x4bd   : > { %v4064_v50 = vpack.c.bf16 %v4062_v63, %v4062_v63  ;;  %5899 = vmatpush3.bf16.msra.mxu1 %v5957_v7 }
 0x4be   : > { %5900 = vmatprep.subr.bf16.mxu1 %v8732_v56 }
 0x4bf   : > { %5883 = vmatmul.mubr.msk.bf16.vlgmr.msra.gmra.mxu0 %vm3830_vm11, %v4064_v50 }
 0x4c0   : > { %5658 = vmatpush3.bf16.msra.mxu0 %v5964_v0 }
 0x4c1   : > { %5901 = vmatpush3.bf16.msra.mxu1 %v5958_v59  ;;  %5659 = vmatprep.subr.bf16.mxu0 %v5966_v58 }
 0x4c2   : > { %5679 = vmatprep.subr.bf16.mxu1 %v5959_v38  ;;  %v4258_v38 = vmul.f32 0.0, %v4256_v19 }
 0x4c4   : > { %5660 = vmatpush3.bf16.msra.mxu0 %v5968_v29 }
 0x57f   : > { %v4132_v4 = vpop.f32.mrf.mxu0 }
 0x580   : > { %v4133_v12 = vadd.f32 %v5486_v3, %v4132_v4 }
 0x581   : > { %v5884_v39 = vpop.f32.mrf.mxu0 }
 0x582   : > { %v4138_v47 = vmax.f32 %v4133_v12, 0.0 }
 0x583   : > { %v4135_v46 = vpop.f32.mrf.mxu0 }
 0x584   : > { %v4146_v48 = vrot.slane %v4138_v47, %v8125_v61  ;;  %v5493_v47 = vld [vmem:[%s8507_s20] ss:$0 sm:$0xff] }
 0x585   : > { %v5885_v52 = vpop.f32.mrf.mxu0 }
 0x586   : > { %v4147_v35 = vcombine.high %v4146_v48, %v4146_v48  ;;  %v4157_v55 = vrot.slane %v4146_v48, %v8125_v61 }
 0x588   : > { %v4164_v32 = vrot.slane %v4147_v35, %v8125_v61  ;;  %v4165_v36 = vrot.slane %v4157_v55, 7 }
 0x58a   : > { %v4166_v2 = vrot.slane %v4164_v32, 7  ;;  %v4169_v15 = vsel %vm838_vm0, 0.0, %v4165_v36  ;;  %v5961_v32 = vld [vmem:[%s8510_s23 + $0xf0] sm:$0xff]  }
 0x58b   : > { %v4171_v24 = vsel %vm1121_vm2, %v4169_v15, 0.0  ;;  %v5963_v36 = vld [vmem:[%s8510_s23 + $0xb0] sm:$0xff]   ;;  %v5971_v15 = vld [vmem:[%s8510_s23 + $0xa0] sm:$0xff]  }
 0x58c   : > { %v4170_v43 = vsel %vm838_vm0, 0.0, %v4166_v2  ;;  %v4186_v57 = vmul.f32 %v4184_v5, %v4171_v24  ;;  %v4200_v37 = vmul.f32 %v4198_v11, %v4171_v24  ;;  %v4213_v6 = vmul.f32 %v4212_v16, %v4171_v24  ;;  %v5970_v2 = vld [vmem:[%s8510_s23 + $0x68] sm:$0xff]  }
 0x58d   : > { %v4172_v30 = vsel %vm1121_vm2, %v4170_v43, 0.0  ;;  %v4221_v23 = vmul.f32 %v4220_v45, %v4171_v24  ;;  %v4235_v21 = vmul.f32 %v4234_v49, %v4171_v24  ;;  %v4178_v41 = vmul.f32 %v4176_v22, %v4171_v24  ;;  %v5972_v24 = vld [vmem:[%s8510_s23 + $0x28] sm:$0xff]   ;;  %5661 = vmatprep.subr.bf16.mxu0 %v5970_v2  ;;  %v5974_v43 = vld [vmem:[%s8510_s23 + $0x60] sm:$0xff]   ;;  %v5993_v2 = vld [vmem:[%s8510_s23 + $0x1f0] sm:$0xff]  }
 0x58e   : > { %v4190_v26 = vrot.slane %v4186_v57, 1  ;;  %v4215_v54 = vadd.f32 %v4213_v6, %v4207_v20  ;;  %v4204_v51 = vrot.slane %v4200_v37, 2  ;;  %v4222_v8 = vmul.f32 %v4220_v45, %v4172_v30  ;;  %v5967_v45 = vld [vmem:[%s8510_s23 + $0xa8] sm:$0xff]   ;;  %5662 = vmatpush3.bf16.msra.mxu0 %v5972_v24  ;;  %v5973_v20 = vld [vmem:[%s8510_s23 + $0xd8] sm:$0xff]   ;;  %v5976_v37 = vld [vmem:[%s8510_s23 + $0x20] sm:$0xff]  }
 0x58f   : > { %v4225_v44 = vrot.slane %v4221_v23, 1  ;;  %v4239_v50 = vrot.slane %v4235_v21, 2  ;;  %v4257_v60 = vmul.f32 %v4256_v19, %v4172_v30  ;;  %v4214_v42 = vmul.f32 %v4212_v16, %v4172_v30  ;;  %v5965_v16 = vld [vmem:[%s8510_s23 + $0xe8] sm:$0xff]   ;;  %v5975_v57 = vld [vmem:[%s8510_s23 + $0x98] sm:$0xff]   ;;  %5663 = vmatprep.subr.bf16.mxu0 %v5974_v43  ;;  %v5977_v19 = vld [vmem:[%s8510_s23 + $0xd0] sm:$0xff]  }
 0x590   : > { %v4194_v13 = vadd.f32 %v4190_v26, %v4178_v41  ;;  %v4236_v9 = vmul.f32 %v4234_v49, %v4172_v30  ;;  %v4249_v34 = vmul.f32 %v4248_v31, %v4172_v30  ;;  %v4226_v59 = vrot.slane %v4222_v8, 1  ;;  %v5969_v49 = vld [vmem:[%s8510_s23 + $0xe0] sm:$0xff]   ;;  %v5979_v6 = vld [vmem:[%s8510_s23 + $0x90] sm:$0xff]   ;;  %v5980_v23 = vld [vmem:[%s8510_s23 + $0x18] sm:$0xff]  }
 0x591   : > { %v4229_v63 = vadd.f32 %v4225_v44, %v4215_v54  ;;  %v4271_v27 = vmul.f32 %v5492_v17, %v4172_v30  ;;  %v4261_v0 = vrot.slane %v4257_v60, 1  ;;  %v4272_v5 = vmul.f32 0.0, %v5492_v17  ;;  %v5978_v30 = vld [vmem:[%s8510_s23 + $0x58] sm:$0xff]   ;;  %v5981_v21 = vld [vmem:[%s8510_s23 + $0xc8] sm:$0xff]   ;;  %v5982_v41 = vld [vmem:[%s8510_s23 + $0x50] sm:$0xff]  }
 0x592   : > { %v4208_v14 = vadd.f32 %v4204_v51, %v4194_v13  ;;  %v4240_v29 = vrot.slane %v4236_v9, 2  ;;  %v4262_v22 = vrot.slane %v4258_v38, 1  ;;  %5664 = vmatpush3.bf16.msra.mxu0 %v5976_v37  ;;  %v5983_v26 = vld [vmem:[%s8510_s23 + $0x88] sm:$0xff]   ;;  %v5984_v54 = vld [vmem:[%s8510_s23 + $0x10] sm:$0xff]   ;;  %v5985_v44 = vld [vmem:[%s8510_s23 + $0xc0] sm:$0xff]  }
 0x593   : > { %v4243_v18 = vadd.f32 %v4239_v50, %v4229_v63  ;;  %v4275_v53 = vrot.slane %v4271_v27, 2  ;;  %v4276_v12 = vrot.slane %v4272_v5, 2  ;;  %5665 = vmatprep.subr.bf16.mxu0 %v5978_v30  ;;  %v5986_v31 = vld [vmem:[%s8510_s23 + $0x48] sm:$0xff]   ;;  %v5987_v13 = vld [vmem:[%s8510_s23 + $0x80] sm:$0xff]   ;;  %v5989_v8 = vld [vmem:[%s8510_s23 + $0x1f8] sm:$0xff]  }
 0x594   : > { %v4216_v7 = vadd.f32 %v4214_v42, %v4208_v14  ;;  %v5988_v51 = vld [vmem:[%s8510_s23 + $0x8] sm:$0xff]   ;;  %v5990_v63 = vld [vmem:[%s8510_s23 + $0x40] sm:$0xff]   ;;  %v5994_v17 = vld [vmem:[%s8510_s23 + $0x178] sm:$0xff]  }
 0x595   : > { %v4251_v25 = vadd.f32 %v4249_v34, %v4243_v18  ;;  %v5992_v50 = vld [vmem:[%s8510_s23] sm:$0xff]   ;;  %v5995_v30 = vld [vmem:[%s8510_s23 + $0x1b0] sm:$0xff]  }
 0x596   : > { %v4230_v58 = vadd.f32 %v4226_v59, %v4216_v7  ;;  %5666 = vmatpush3.bf16.msra.mxu0 %v5980_v23  ;;  %v5494_v60 = vld [vmem:[%s8509_s22] ss:$0 sm:$0xff]  ;;  %v8295_v7 = vrot.slane %v8732_v56, %v8125_v61 }
 0x597   : > { %v4265_v3 = vadd.f32 %v4261_v0, %v4251_v25  ;;  %5667 = vmatprep.subr.bf16.mxu0 %v5982_v41 }
 0x598   : > { %v4244_v4 = vadd.f32 %v4240_v29, %v4230_v58  ;;  %v4599_v0 = vcombine.high %v8295_v7, %v8295_v7 }
 0x599   : > { %v4279_v39 = vadd.f32 %v4275_v53, %v4265_v3 }
 0x59a   : > { %v4252_v11 = vadd.f32 %v4250_v10, %v4244_v4  ;;  %5668 = vmatpush3.bf16.msra.mxu0 %v5984_v54  ;;  %v5503_v4 = vrot.slane %v8295_v7, 9  ;;  %v5997_v54 = vld [vmem:[%s8510_s23 + $0x1e8] sm:$0xff]  }
 0x59b   : > { %v4287_v40 = vadd.f32 %v5493_v47, %v4279_v39  ;;  %5669 = vmatprep.subr.bf16.mxu0 %v5986_v31  ;;  %v5998_v31 = vld [vmem:[%s8510_s23 + $0x170] sm:$0xff]  }
 0x59c   : > { %v4266_v33 = vadd.f32 %v4262_v22, %v4252_v11  ;;  %v4616_v22 = vrot.slane %v4599_v0, 7  ;;  %v6014_v0 = vld [vmem:[%s8510_s23 + $0x150] sm:$0xff]  }
 0x59d   : > { %v4289_v48 = vmax.f32 %v4287_v40, 0.0 }
 0x59e   : > { %v4280_v62 = vadd.f32 %v4276_v12, %v4266_v33  ;;  %5670 = vmatpush3.bf16.msra.mxu0 %v5988_v51  ;;  %v5999_v51 = vld [vmem:[%s8510_s23 + $0x1a8] sm:$0xff]   ;;  %v6021_v12 = vld [vmem:[%s8510_s23 + $0x140] sm:$0xff]  }
 0x59f   : > { %5671 = vmatprep.subr.bf16.mxu0 %v5990_v63  ;;  %v6001_v63 = vld [vmem:[%s8510_s23 + $0x1e0] sm:$0xff]  }
 0x5a0   : > { %v4288_v46 = vadd.f32 %v5493_v47, %v4280_v62 }
 0x5a2   : > { %v4290_v52 = vmax.f32 %v4288_v46, 0.0  ;;  %5672 = vmatpush3.bf16.msra.mxu0 %v5992_v50  ;;  %v4617_v46 = vsel %vm8308_vm3, %v5503_v4, %v4616_v22  ;;  %v6002_v50 = vld [vmem:[%s8510_s23 + $0x168] sm:$0xff]   ;;  %v6019_v4 = vld [vmem:[%s8510_s23 + $0x180] sm:$0xff]  }
 0x5a3   : > { %5701 = vmatprep.subr.bf16.mxu0 %v5994_v17  ;;  %v6003_v17 = vld [vmem:[%s8510_s23 + $0x1a0] sm:$0xff]   ;;  %v6020_v22 = vld [vmem:[%s8510_s23 + $0x108] sm:$0xff]  }
 0x5a4   : > { %v4310_v35 = vcombine.low %v4289_v48, %v4290_v52 }
 0x5a6   : > { %v4317_v55 = vrot.slane %v4310_v35, %v8125_v61 }
 0x5a8   : > { %v4319_v28 = vpack.c.bf16 %v4317_v55, %v4317_v55 }
 0x5aa   : > { %5903 = vmatmul.mubr.bf16.vlgmr.msra.gmra.mxu1 %v4319_v28 }
 0x5ab   : > { %5680 = vmatpush3.bf16.msra.mxu1 %v5960_v1 }
 0x5ac   : > { %5681 = vmatprep.subr.bf16.mxu1 %v5961_v32 }
 0x5af   : > { %5682 = vmatpush3.bf16.msra.mxu1 %v5963_v36 }
 0x5b0   : > { %5683 = vmatprep.subr.bf16.mxu1 %v5965_v16 }
 0x5b3   : > { %5684 = vmatpush3.bf16.msra.mxu1 %v5967_v45  ;;  %v5991_v45 = vld [vmem:[%s8510_s23 + $0x1b8] sm:$0xff]  }
 0x5b4   : > { %5685 = vmatprep.subr.bf16.mxu1 %v5969_v49 }
 0x5b7   : > { %5686 = vmatpush3.bf16.msra.mxu1 %v5971_v15 }
 0x5b8   : > { %5687 = vmatprep.subr.bf16.mxu1 %v5973_v20 }
 0x5bb   : > { %5688 = vmatpush3.bf16.msra.mxu1 %v5975_v57 }
 0x5bc   : > { %5689 = vmatprep.subr.bf16.mxu1 %v5977_v19 }
 0x5bf   : > { %5690 = vmatpush3.bf16.msra.mxu1 %v5979_v6 }
 0x5c0   : > { %5691 = vmatprep.subr.bf16.mxu1 %v5981_v21  ;;  %v5996_v21 = vld [vmem:[%s8510_s23 + $0x138] sm:$0xff]  }
 0x5c3   : > { %5692 = vmatpush3.bf16.msra.mxu1 %v5983_v26 }
 0x5c4   : > { %5693 = vmatprep.subr.bf16.mxu1 %v5985_v44 }
 0x5c7   : > { %5694 = vmatpush3.bf16.msra.mxu1 %v5987_v13 }
 0x5c8   : > { %5723 = vmatprep.subr.bf16.mxu1 %v5989_v8  ;;  %v6000_v8 = vld [vmem:[%s8510_s23 + $0x130] sm:$0xff]  }
 0x66a   : > { %v4408_v14 = vpop.f32.mrf.mxu1 }
 0x66b   : > { %v4409_v42 = vadd.f32 %v5494_v60, %v4408_v14  ;;  %v6004_v60 = vld [vmem:[%s8510_s23 + $0x128] sm:$0xff]   ;;  %v6005_v14 = vld [vmem:[%s8510_s23 + $0x1d8] sm:$0xff]  }
 0x66c   : > { %v5904_v9 = vpop.f32.mrf.mxu1 }
 0x66d   : > { %v4414_v18 = vmax.f32 %v4409_v42, 0.0  ;;  %v6006_v42 = vld [vmem:[%s8510_s23 + $0x160] sm:$0xff]   ;;  %v6007_v9 = vld [vmem:[%s8510_s23 + $0x198] sm:$0xff]  }
 0x66e   : > { %v4411_v34 = vpop.f32.mrf.mxu1 }
 0x66f   : > { %v4422_v59 = vrot.slane %v4414_v18, %v8125_v61  ;;  %v6008_v18 = vld [vmem:[%s8510_s23 + $0x120] sm:$0xff]   ;;  %v6009_v34 = vld [vmem:[%s8510_s23 + $0x1d0] sm:$0xff]  }
 0x670   : > { %v5905_v38 = vpop.f32.mrf.mxu1 }
 0x671   : > { %v4423_v27 = vcombine.high %v4422_v59, %v4422_v59  ;;  %v4575_v25 = vrot.slane %v4422_v59, %v8125_v61  ;;  %v6010_v59 = vld [vmem:[%s8510_s23 + $0x158] sm:$0xff]   ;;  %v6011_v38 = vld [vmem:[%s8510_s23 + $0x190] sm:$0xff]  }
 0x673   : > { %v4582_v58 = vrot.slane %v4423_v27, %v8125_v61  ;;  %v4583_v29 = vrot.slane %v4575_v25, 7  ;;  %v6012_v27 = vld [vmem:[%s8510_s23 + $0x118] sm:$0xff]   ;;  %v6013_v25 = vld [vmem:[%s8510_s23 + $0x1c8] sm:$0xff]  }
 0x675   : > { %v4584_v10 = vrot.slane %v4582_v58, 7  ;;  %v4587_v5 = vsel %vm838_vm0, 0.0, %v4583_v29  ;;  %v6015_v58 = vld [vmem:[%s8510_s23 + $0x188] sm:$0xff]   ;;  %v6016_v29 = vld [vmem:[%s8510_s23 + $0x110] sm:$0xff]  }
 0x676   : > { %v4589_v3 = vsel %vm1121_vm2, %v4587_v5, 0.0 }
 0x677   : > { %v4588_v53 = vsel %vm838_vm0, 0.0, %v4584_v10  ;;  %v4606_v11 = vrot.slane %v4589_v3, %v8125_v61  ;;  %v4635_v48 = vcombine.low %v8732_v56, %v4589_v3  ;;  %v6017_v10 = vld [vmem:[%s8510_s23 + $0x1c0] sm:$0xff]  }
 0x678   : > { %v8313_v39 = vsel %vm1121_vm2, %v4588_v53, 0.0 }
 0x679   : > { %v8317_v47 = vrot.slane %v8313_v39, %v8125_v61  ;;  %v4662_v33 = vcombine.low %v4589_v3, %v8313_v39  ;;  %v5506_v62 = vcombine.high %v8295_v7, %v4606_v11  ;;  %v4607_v40 = vcombine.high %v4606_v11, %v4606_v11  ;;  %v6018_v3 = vld [vmem:[%s8510_s23 + $0x148] sm:$0xff]  }
 0x67a   : > { %v5504_v55 = vrot.slane %v4606_v11, 9  ;;  %v4642_v43 = vrot.slane %v4635_v48, %v8125_v61  ;;  %v4689_v5 = vcombine.low %v8313_v39, %v8732_v56  ;;  %v6024_v48 = vld [vmem:[%s8510_s23 + $0x230] sm:$0xff]  }
 0x67b   : > { %v4669_v52 = vrot.slane %v4662_v33, %v8125_v61  ;;  %v4660_v35 = vrot.slane %v5506_v62, %v8125_v61  ;;  %v4620_v1 = vrot.slane %v4607_v40, 7  ;;  %v5507_v28 = vcombine.high %v4606_v11, %v8317_v47  ;;  %v6022_v33 = vld [vmem:[%s8510_s23 + $0x100] sm:$0xff]   ;;  %v6023_v40 = vld [vmem:[%s8510_s23 + $0x238] sm:$0xff]  }
 0x67c   : > { %v4630_v32 = vcombine.high %v8317_v47, %v8317_v47  ;;  %v5505_v24 = vrot.slane %v8317_v47, 9  ;;  %v4716_v41 = vpack.c.bf16 %v4642_v43, %v4642_v43  ;;  %v4696_v53 = vrot.slane %v4689_v5, %v8125_v61 }
 0x67d   : > { %v4719_v36 = vpack.c.bf16 %v4669_v52, %v4669_v52  ;;  %v4718_v16 = vpack.c.bf16 %v4660_v35, %v4660_v35  ;;  %v8334_v49 = vsel %vm8308_vm3, %v5504_v55, %v4620_v1  ;;  %v4687_v37 = vrot.slane %v5507_v28, %v8125_v61  ;;  %v6025_v52 = vld [vmem:[%s8510_s23 + $0x228] sm:$0xff]   ;;  %v6026_v35 = vld [vmem:[%s8510_s23 + $0x220] sm:$0xff]   ;;  %v6027_v55 = vld [vmem:[%s8510_s23 + $0x218] sm:$0xff]  }
 0x67e   : > { %v4644_v15 = vcombine.low %v4617_v46, %v8334_v49  ;;  %v4633_v20 = vrot.slane %v4630_v32, 7  ;;  %v4722_v39 = vpack.c.bf16 %v4696_v53, %v4696_v53  ;;  %v6028_v1 = vld [vmem:[%s8510_s23 + $0x210] sm:$0xff]   ;;  %v6029_v28 = vld [vmem:[%s8510_s23 + $0x208] sm:$0xff]   ;;  %v5508_v32 = vcombine.high %v8317_v47, %v8295_v7 }
 0x67f   : > { %5235 = vmatprep.mubr.bf16.mxu1 %v4719_v36  ;;  %v4721_v44 = vpack.c.bf16 %v4687_v37, %v4687_v37  ;;  %v6030_v36 = vld [vmem:[%s8510_s23 + $0x200] sm:$0xff]  }
 0x680   : > { %5236 = vmatmul.mubr.bf16.vlgmr.msra.gmra.mxu1 %v4718_v16  ;;  %v4651_v57 = vrot.slane %v4644_v15, %v8125_v61  ;;  %v8346_v19 = vsel %vm8308_vm3, %v5505_v24, %v4633_v20  ;;  %v4714_v16 = vrot.slane %v5508_v32, %v8125_v61 }
 0x681   : > { %5724 = vmatpush3.bf16.msra.mxu1 %v5991_v45  ;;  %v4698_v6 = vcombine.low %v8346_v19, %v4617_v46  ;;  %v4671_v11 = vcombine.low %v8334_v49, %v8346_v19 }
 0x682   : > { %5725 = vmatprep.subr.bf16.mxu1 %v5993_v2  ;;  %v4717_v23 = vpack.c.bf16 %v4651_v57, %v4651_v57  ;;  %v4724_v45 = vpack.c.bf16 %v4714_v16, %v4714_v16 }
 0x683   : > { %v4705_v26 = vrot.slane %v4698_v6, %v8125_v61  ;;  %v4678_v62 = vrot.slane %v4671_v11, %v8125_v61 }
 0x684   : > { %5195 = vmatprep.mubr.bf16.mxu0 %v4717_v23 }
 0x685   : > { %5726 = vmatpush3.bf16.msra.mxu1 %v5995_v30  ;;  %5196 = vmatmul.mubr.bf16.vlgmr.msra.gmra.mxu0 %v4716_v41  ;;  %v4723_v13 = vpack.c.bf16 %v4705_v26, %v4705_v26  ;;  %v4720_v46 = vpack.c.bf16 %v4678_v62, %v4678_v62  ;;  %v5509_v41 = vld [vmem:[%s8511_s24] ss:$0 sm:$0xff] }
 0x686   : > { %5702 = vmatpush3.bf16.msra.mxu0 %v5996_v21  ;;  %5275 = vmatprep.mubr.bf16.mxu0 %v4721_v44 }
 0x687   : > { %5315 = vmatprep.mubr.bf16.mxu1 %v4723_v13  ;;  %5727 = vmatprep.subr.bf16.mxu1 %v5997_v54 }
 0x688   : > { %5703 = vmatprep.subr.bf16.mxu0 %v5998_v31 }
 0x689   : > { %5728 = vmatpush3.bf16.msra.mxu1 %v5999_v51 }
 0x68a   : > { %5704 = vmatpush3.bf16.msra.mxu0 %v6000_v8  ;;  %5729 = vmatprep.subr.bf16.mxu1 %v6001_v63 }
 0x68b   : > { %5705 = vmatprep.subr.bf16.mxu0 %v6002_v50 }
 0x68d   : > { %5730 = vmatpush3.bf16.msra.mxu1 %v6003_v17 }
 0x68e   : > { %5706 = vmatpush3.bf16.msra.mxu0 %v6004_v60  ;;  %5731 = vmatprep.subr.bf16.mxu1 %v6005_v14 }
 0x68f   : > { %5707 = vmatprep.subr.bf16.mxu0 %v6006_v42 }
 0x691   : > { %5732 = vmatpush3.bf16.msra.mxu1 %v6007_v9 }
 0x692   : > { %5708 = vmatpush3.bf16.msra.mxu0 %v6008_v18  ;;  %5733 = vmatprep.subr.bf16.mxu1 %v6009_v34 }
 0x693   : > { %5709 = vmatprep.subr.bf16.mxu0 %v6010_v59 }
 0x695   : > { %5734 = vmatpush3.bf16.msra.mxu1 %v6011_v38 }
 0x696   : > { %5710 = vmatpush3.bf16.msra.mxu0 %v6012_v27  ;;  %5735 = vmatprep.subr.bf16.mxu1 %v6013_v25 }
 0x697   : > { %5711 = vmatprep.subr.bf16.mxu0 %v6014_v0 }
 0x699   : > { %5736 = vmatpush3.bf16.msra.mxu1 %v6015_v58 }
 0x69a   : > { %5712 = vmatpush3.bf16.msra.mxu0 %v6016_v29  ;;  %5737 = vmatprep.subr.bf16.mxu1 %v6017_v10 }
 0x69b   : > { %5713 = vmatprep.subr.bf16.mxu0 %v6018_v3 }
 0x69d   : > { %5738 = vmatpush3.bf16.msra.mxu1 %v6019_v4 }
 0x69e   : > { %5714 = vmatpush3.bf16.msra.mxu0 %v6020_v22 }
 0x69f   : > { %5715 = vmatprep.subr.bf16.mxu0 %v6021_v12 }
 0x6a0   : > { %5316 = vmatmul.mubr.bf16.vlgmr.msra.gmra.mxu1 %v4722_v39 }
 0x6a2   : > { %5716 = vmatpush3.bf16.msra.mxu0 %v6022_v33 }
 0x6a3   : > { %5906 = vmatprep.subr.bf16.mxu0 %v8732_v56 }
 0x6a5   : > { %5276 = vmatmul.mubr.bf16.vlgmr.msra.gmra.mxu0 %v4720_v46 }
 0x6a6   : > { %5907 = vmatpush3.bf16.msra.mxu0 %v6023_v40  ;;  %5922 = vmatprep.mubr.msk.bf16.mxu0 %vm6042_vm9, %v8732_v56 }
 0x6a7   : > { %5908 = vmatprep.subr.bf16.mxu0 %v8732_v56 }
 0x6aa   : > { %5909 = vmatpush3.bf16.msra.mxu0 %v6024_v48 }
 0x6ab   : > { %5910 = vmatprep.subr.bf16.mxu0 %v8732_v56 }
 0x6ae   : > { %5911 = vmatpush3.bf16.msra.mxu0 %v6025_v52 }
 0x6af   : > { %5912 = vmatprep.subr.bf16.mxu0 %v8732_v56 }
 0x6b2   : > { %5913 = vmatpush3.bf16.msra.mxu0 %v6026_v35 }
 0x6b3   : > { %5914 = vmatprep.subr.bf16.mxu0 %v8732_v56 }
 0x6b6   : > { %5915 = vmatpush3.bf16.msra.mxu0 %v6027_v55 }
 0x6b7   : > { %5916 = vmatprep.subr.bf16.mxu0 %v8732_v56 }
 0x6ba   : > { %5917 = vmatpush3.bf16.msra.mxu0 %v6028_v1 }
 0x6bb   : > { %5918 = vmatprep.subr.bf16.mxu0 %v8732_v56 }
 0x6be   : > { %5919 = vmatpush3.bf16.msra.mxu0 %v6029_v28 }
 0x6bf   : > { %5920 = vmatprep.subr.bf16.mxu0 %v8732_v56 }
 0x6c2   : > { %5921 = vmatpush3.bf16.msra.mxu0 %v6030_v36 }
 0x6c5   : > { %5923 = vmatmul.mubr.bf16.vlgmr.msra.gmra.mxu0 %v4724_v45 }
 0x740   : > { %v5695_v49 = vpop.f32.mrf.mxu1 }
 0x742   : > { %v5696_v2 = vpop.f32.mrf.mxu1 }
 0x743   : > { %v5697_v54 = vadd.f32 %v5696_v2, %v5695_v49 }
 0x744   : > { %v5698_v15 = vpop.f32.mrf.mxu1 }
 0x745   : > { %v5673_v24 = vpop.f32.mrf.mxu0 }
 0x746   : > { %v5699_v20 = vpop.f32.mrf.mxu1 }
 0x747   : > { %v5674_v43 = vpop.f32.mrf.mxu0 }
 0x748   : > { %v5675_v21 = vadd.f32 %v5674_v43, %v5673_v24 }
 0x749   : > { %v5676_v57 = vpop.f32.mrf.mxu0 }
 0x74a   : > { %v5198_v26 = vadd.f32 %v5675_v21, %v5509_v41 }
 0x74b   : > { %v5677_v7 = vpop.f32.mrf.mxu0 }
 0x74c   : > { %v5238_v31 = vadd.f32 %v5697_v54, %v5198_v26 }
 0x760   : > { %v5739_v47 = vpop.f32.mrf.mxu1 }
 0x762   : > { %v5740_v37 = vpop.f32.mrf.mxu1 }
 0x763   : > { %v5741_v51 = vadd.f32 %v5740_v37, %v5739_v47 }
 0x764   : > { %v5742_v19 = vpop.f32.mrf.mxu1 }
 0x765   : > { %v5717_v30 = vpop.f32.mrf.mxu0 }
 0x766   : > { %v5743_v6 = vpop.f32.mrf.mxu1 }
 0x767   : > { %v5718_v56 = vpop.f32.mrf.mxu0 }
 0x768   : > { %v5719_v44 = vadd.f32 %v5718_v56, %v5717_v30 }
 0x769   : > { %v5720_v23 = vpop.f32.mrf.mxu0 }
 0x76a   : > { %v5278_v13 = vadd.f32 %v5719_v44, %v5238_v31 }
 0x76b   : > { %v5721_v61 = vpop.f32.mrf.mxu0 }
 0x76c   : > { %v5318_v8 = vadd.f32 %v5741_v51, %v5278_v13 }
 0x785   : > { %v5357_v63 = vpop.f32.mrf.mxu0 }
 0x786   : > { %v5358_v50 = vadd.f32 %v5357_v63, %v5318_v8 }
 0x787   : > { %v5924_v17 = vpop.f32.mrf.mxu0 }
 0x788   : > { %5363 = vst [vmem:[%s762_s4] sm:$0xf] %v5358_v50 }
 0x789   : > { %v5360_v60 = vpop.f32.mrf.mxu0 }
 0x78b   : > { %v5925_v14 = vpop.f32.mrf.mxu0 }
 0x78c PF: > { %s35_s29 = sadd.s32 1, %s6038_s29  }
 0x78d   : > { %p32_p4 = scmp.ge.s32.totalorder %s35_s29, 4  }
 0x78f   :  { %34 = sbr.rel (!%p32_p4) target bundleno = 11 (0xb), region = 150 }

</bundles_post_ra>
